<compile_context>
chip_gen: v6e
topology: v6e:2x2x1
jax: 0.10.0
libtpu: 0.0.40
codegen_flags: <defaults>
</compile_context>

<pallas_src>
import functools
import math

import jax
import jax.numpy as jnp
from jax import lax
from jax.experimental import pallas as pl
from jax.experimental.pallas import tpu as pltpu


# ---------------------------------------------------------------------------
# In-kernel helpers (traced inline inside the single fused kernel)
# ---------------------------------------------------------------------------

def _add_layernorm(a, b, gamma, beta, eps):
    """LayerNorm(a + b) * gamma + beta over the last axis (nn.LayerNorm), f32."""
    z = a + b
    mean = jnp.mean(z, axis=-1, keepdims=True)
    zc = z - mean
    var = jnp.mean(zc * zc, axis=-1, keepdims=True)
    return zc * lax.rsqrt(var + eps) * gamma + beta


def _mha(q_rows, kv_rows, mask, wq, wk, wv, wo, bo, heads, head_dim, embed):
    """Multi-head attention over batch-flattened rows.

    q_rows: (Rq, E) f32, kv_rows: (Rk, E) f32.
    mask:   (Rq, Rk) f32 that already contains the batch-block-diagonal
            structure (so flattened batches never attend to each other).
    wq/wk/wv: (E, E) bf16 block-diagonal per-head projections (wq pre-scaled
            by 1/sqrt(E)); wo: (E, E) bf16; bo: (1, E) f32.

    Heads use lane masks rather than 8-lane slices: zeroing the non-head lanes
    of q (and v) before a full-E contraction equals the per-head contraction,
    avoiding sub-lane-width slices and vreg relayouts, and letting the output
    projection be a single ctx @ Wo matmul.
    """
    q_p = jnp.dot(q_rows.astype(jnp.bfloat16), wq,
                  preferred_element_type=jnp.float32)                   # (Rq,E)
    k_p = jnp.dot(kv_rows.astype(jnp.bfloat16), wk,
                  preferred_element_type=jnp.float32).astype(jnp.bfloat16)
    v_p = jnp.dot(kv_rows.astype(jnp.bfloat16), wv,
                  preferred_element_type=jnp.float32)                   # (Rk,E)

    lane = lax.broadcasted_iota(jnp.int32, (1, embed), 1)
    neg_big = jnp.float32(-1e20)

    ctx = None
    for h in range(heads):                   # static unroll (heads is tiny)
        lo = h * head_dim
        in_head = ((lane >= lo) & (lane < lo + head_dim)).astype(jnp.float32)
        qh = (q_p * in_head).astype(jnp.bfloat16)                       # (Rq,E)
        vh = (v_p * in_head).astype(jnp.bfloat16)                       # (Rk,E)

        # Full-E contraction; non-head lanes contribute exactly zero.
        energy = lax.dot_general(qh, k_p, (((1,), (1,)), ((), ())),
                                 preferred_element_type=jnp.float32)    # (Rq,Rk)
        energy = jnp.where(mask < 0.5, neg_big, energy)

        m = jnp.max(energy, axis=-1, keepdims=True)
        p = jnp.exp(energy - m)
        denom = jnp.sum(p, axis=-1, keepdims=True)
        attn = p * pl.reciprocal(denom, approx=True)

        contrib = jnp.dot(attn.astype(jnp.bfloat16), vh,
                          preferred_element_type=jnp.float32)           # (Rq,E)
        ctx = contrib if ctx is None else ctx + contrib

    out = jnp.dot(ctx.astype(jnp.bfloat16), wo,
                  preferred_element_type=jnp.float32)                   # (Rq,E)
    return out + bo


# ---------------------------------------------------------------------------
# Single fused kernel: embeddings -> all DecoderBlocks -> fc_out (padded)
# ---------------------------------------------------------------------------

def _decoder_kernel(
    # data
    x_ref, enc_ref, tmask_ref, smask_ref,
    # stacked per-layer weights (leading axis = layer)
    wq1_ref, wk1_ref, wv1_ref, wo1_ref, bo1_ref, ng_ref, nb_ref,
    wq2_ref, wk2_ref, wv2_ref, wo2_ref, bo2_ref, n1g_ref, n1b_ref,
    ff1w_ref, ff1b_ref, ff2w_ref, ff2b_ref, n2g_ref, n2b_ref,
    # final projection (vocab padded to 128 lanes)
    fcw_ref, fcb_ref,
    # output
    out_ref,
    *, num_layers, heads, head_dim, embed, eps):
    h = x_ref[...]            # (B*L, E)  f32 residual stream
    enc = enc_ref[...]        # (B*S, E)  f32
    tmask = tmask_ref[...]    # (B*L, B*L) batch-block-diag * trg mask
    smask = smask_ref[...]    # (B*L, B*S) batch-block-diag * src mask

    for l in range(num_layers):                       # static unroll
        # --- DecoderBlock: masked self-attention + add & norm ---------------
        a1 = _mha(h, h, tmask, wq1_ref[l], wk1_ref[l], wv1_ref[l],
                  wo1_ref[l], bo1_ref[l], heads, head_dim, embed)
        query = _add_layernorm(a1, h, ng_ref[l], nb_ref[l], eps)

        # --- TransformerBlock: cross-attention over enc_out + add & norm ----
        a2 = _mha(query, enc, smask, wq2_ref[l], wk2_ref[l], wv2_ref[l],
                  wo2_ref[l], bo2_ref[l], heads, head_dim, embed)
        y = _add_layernorm(a2, query, n1g_ref[l], n1b_ref[l], eps)

        # --- feed-forward (Linear -> ReLU -> Linear) + add & norm -----------
        z = jnp.dot(y.astype(jnp.bfloat16), ff1w_ref[l],
                    preferred_element_type=jnp.float32) + ff1b_ref[l]
        z = jnp.maximum(z, 0.0)
        ff = jnp.dot(z.astype(jnp.bfloat16), ff2w_ref[l],
                     preferred_element_type=jnp.float32) + ff2b_ref[l]
        h = _add_layernorm(ff, y, n2g_ref[l], n2b_ref[l], eps)

    # Final fc_out, lane-dense (vocab padded to a multiple of 128 lanes).
    logits = jnp.dot(h.astype(jnp.bfloat16), fcw_ref[...],
                     preferred_element_type=jnp.float32) + fcb_ref[...]
    out_ref[...] = logits.astype(out_ref.dtype)


def _decoder_pallas_call(weights, fc_w, fc_b, x_rows, enc_rows, tmask, smask,
                         heads, embed):
    num_layers = weights[0].shape[0]
    head_dim = embed // heads
    bl = x_rows.shape[0]
    v_pad = fc_w.shape[1]
    kernel = functools.partial(
        _decoder_kernel, num_layers=num_layers, heads=heads,
        head_dim=head_dim, embed=embed, eps=1e-5)
    # No grid: everything (activations + all weights, a few tens of KiB) fits
    # comfortably in VMEM on v5e/v6e/v7x; the whole forward is one step.
    return pl.pallas_call(
        kernel,
        out_shape=jax.ShapeDtypeStruct((bl, v_pad), jnp.float32),
        compiler_params=pltpu.CompilerParams(
            vmem_limit_bytes=32 * 1024 * 1024),
    )(x_rows, enc_rows, tmask, smask, *weights, fc_w, fc_b)


# ---------------------------------------------------------------------------
# One-time parameter packing (hoisted out of the forward path)
# ---------------------------------------------------------------------------

def pack_decoder_params(params, heads, embed_size):
    """PyTorch-shaped params -> fused-kernel operands.

    Done ONCE (outside jit): kron(I_heads, W) block-diagonal per-head
    projections, 1/sqrt(E) fold into Wq, bf16 casts for all MXU weights,
    per-layer stacking, and vocab padding of fc_out to 128 lanes.
    """
    E = embed_size
    scale = 1.0 / math.sqrt(E)
    eye_h = jnp.eye(heads, dtype=jnp.float32)

    def attn(p):
        wq = (jnp.kron(eye_h, p["Wq"]) * scale).astype(jnp.bfloat16)
        wk = jnp.kron(eye_h, p["Wk"]).astype(jnp.bfloat16)
        wv = jnp.kron(eye_h, p["Wv"]).astype(jnp.bfloat16)
        wo = p["Wo"].astype(jnp.bfloat16)
        bo = p["bo"].reshape(1, E).astype(jnp.float32)
        return (wq, wk, wv, wo, bo)

    per = [[] for _ in range(20)]
    for lp in params["layers"]:
        tb = lp["tblock"]
        items = (
            attn(lp["self_attn"])
            + (lp["norm_g"].reshape(1, E), lp["norm_b"].reshape(1, E))
            + attn(tb["attn"])
            + (tb["norm1_g"].reshape(1, E), tb["norm1_b"].reshape(1, E),
               tb["ff1_w"].astype(jnp.bfloat16),
               tb["ff1_b"].reshape(1, -1).astype(jnp.float32),
               tb["ff2_w"].astype(jnp.bfloat16),
               tb["ff2_b"].reshape(1, -1).astype(jnp.float32),
               tb["norm2_g"].reshape(1, E), tb["norm2_b"].reshape(1, E))
        )
        for i, it in enumerate(items):
            per[i].append(it)
    weights = tuple(jnp.stack(ws, axis=0) for ws in per)

    vocab = params["fc_w"].shape[1]
    v_pad = max(128, ((vocab + 127) // 128) * 128)
    fc_w = jnp.zeros((E, v_pad), jnp.float32).at[:, :vocab].set(params["fc_w"])
    fc_b = jnp.zeros((1, v_pad), jnp.float32).at[:, :vocab].set(
        params["fc_b"].reshape(1, -1))

    return {
        "word_emb": params["word_emb"].astype(jnp.float32),
        "pos_emb": params["pos_emb"].astype(jnp.float32),
        "weights": weights,
        "fc_w": fc_w.astype(jnp.bfloat16),
        "fc_b": fc_b,
    }


# ---------------------------------------------------------------------------
# Model forward (thin JAX glue around the single Pallas kernel)
# ---------------------------------------------------------------------------

def decoder_forward(packed, x_tokens, enc_out, src_mask, trg_mask, *,
                    heads, embed_size):
    """Mirrors Decoder.forward(x, enc_out, src_mask, trg_mask) in eval mode."""
    N, L = x_tokens.shape
    S = enc_out.shape[1]
    E = embed_size

    # TODO(synk): embedding row gather stays in JAX glue (data-dependent
    # gather); could be moved into the kernel with scalar-prefetch Element
    # specs at larger scales.
    positions = jnp.arange(L, dtype=jnp.int32)[None, :]
    h = packed["word_emb"][x_tokens] + packed["pos_emb"][positions]   # (N,L,E)
    x_rows = h.reshape(N * L, E).astype(jnp.float32)
    enc_rows = enc_out.reshape(N * S, E).astype(jnp.float32)

    # Flatten the batch into rows; encode "no cross-batch attention" as a
    # batch-block-diagonal mask so the kernel needs no batch grid/loop.
    eye_n = jnp.eye(N, dtype=jnp.float32)
    tm = jnp.broadcast_to(
        trg_mask.reshape(N, trg_mask.shape[-2], trg_mask.shape[-1])
        .astype(jnp.float32), (N, L, L))
    sm = jnp.broadcast_to(
        src_mask.reshape(N, src_mask.shape[-2], src_mask.shape[-1])
        .astype(jnp.float32), (N, L, S))
    tmask = (eye_n[:, None, :, None] * tm[:, :, None, :]).reshape(N * L, N * L)
    smask = (eye_n[:, None, :, None] * sm[:, :, None, :]).reshape(N * L, N * S)

    logits = _decoder_pallas_call(packed["weights"], packed["fc_w"],
                                  packed["fc_b"], x_rows, enc_rows,
                                  tmask, smask, heads, E)
    vocab = packed["word_emb"].shape[0]
    return logits.reshape(N, L, -1)[:, :, :vocab]


# ---------------------------------------------------------------------------
# Deterministic parameter initialization (shapes match the PyTorch module)
# ---------------------------------------------------------------------------

def _init_attention_params(key, embed_size, heads):
    D = embed_size // heads
    k1, k2, k3, k4, k5 = jax.random.split(key, 5)
    s = 0.1
    return {
        "Wq": jax.random.normal(k1, (D, D), jnp.float32) * s,
        "Wk": jax.random.normal(k2, (D, D), jnp.float32) * s,
        "Wv": jax.random.normal(k3, (D, D), jnp.float32) * s,
        "Wo": jax.random.normal(k4, (embed_size, embed_size), jnp.float32) * s,
        "bo": jax.random.normal(k5, (embed_size,), jnp.float32) * s,
    }


def _init_transformer_block_params(key, embed_size, heads, forward_expansion):
    k1, k2, k3, k4, k5 = jax.random.split(key, 5)
    hidden = forward_expansion * embed_size
    s = 0.1
    return {
        "attn": _init_attention_params(k1, embed_size, heads),
        "norm1_g": jnp.ones((embed_size,), jnp.float32),
        "norm1_b": jnp.zeros((embed_size,), jnp.float32),
        "norm2_g": jnp.ones((embed_size,), jnp.float32),
        "norm2_b": jnp.zeros((embed_size,), jnp.float32),
        "ff1_w": jax.random.normal(k2, (embed_size, hidden), jnp.float32) * s,
        "ff1_b": jax.random.normal(k3, (hidden,), jnp.float32) * s,
        "ff2_w": jax.random.normal(k4, (hidden, embed_size), jnp.float32) * s,
        "ff2_b": jax.random.normal(k5, (embed_size,), jnp.float32) * s,
    }


def _init_decoder_block_params(key, embed_size, heads, forward_expansion):
    k1, k2 = jax.random.split(key)
    return {
        "self_attn": _init_attention_params(k1, embed_size, heads),
        "norm_g": jnp.ones((embed_size,), jnp.float32),
        "norm_b": jnp.zeros((embed_size,), jnp.float32),
        "tblock": _init_transformer_block_params(k2, embed_size, heads,
                                                 forward_expansion),
    }


def init_decoder_params(key, trg_vocab_size, embed_size, num_layers, heads,
                        forward_expansion, max_length):
    keys = jax.random.split(key, num_layers + 4)
    s = 0.1
    return {
        "word_emb": jax.random.normal(keys[0], (trg_vocab_size, embed_size),
                                      jnp.float32) * s,
        "pos_emb": jax.random.normal(keys[1], (max_length, embed_size),
                                     jnp.float32) * s,
        "layers": [
            _init_decoder_block_params(keys[2 + i], embed_size, heads,
                                       forward_expansion)
            for i in range(num_layers)
        ],
        "fc_w": jax.random.normal(keys[num_layers + 2],
                                  (embed_size, trg_vocab_size), jnp.float32) * s,
        "fc_b": jax.random.normal(keys[num_layers + 3],
                                  (trg_vocab_size,), jnp.float32) * s,
    }


# ---------------------------------------------------------------------------
# Driver
# ---------------------------------------------------------------------------

if __name__ == "__main__":
    trg_vocab_size = 50
    embed_size = 32
    num_layers = 2
    heads = 4
    forward_expansion = 4
    max_length = 16

    N = 2          # batch
    trg_len = 8    # target (decoder) sequence length
    src_len = 8    # source (encoder output) sequence length

    key = jax.random.PRNGKey(0)
    kp, kx, ke = jax.random.split(key, 3)

    params = init_decoder_params(kp, trg_vocab_size, embed_size, num_layers,
                                 heads, forward_expansion, max_length)
    packed = pack_decoder_params(params, heads, embed_size)   # hoisted, once

    x_tokens = jax.random.randint(kx, (N, trg_len), 0, trg_vocab_size,
                                  dtype=jnp.int32)
    enc_out = jax.random.normal(ke, (N, src_len, embed_size), jnp.float32)

    # src_mask: (N, 1, 1, src_len) all-ones; trg_mask: causal (N, 1, trg, trg).
    src_mask = jnp.ones((N, 1, 1, src_len), jnp.float32)
    trg_mask = jnp.tril(jnp.ones((trg_len, trg_len), jnp.float32))[None, None]
    trg_mask = jnp.broadcast_to(trg_mask, (N, 1, trg_len, trg_len))

    fwd = jax.jit(functools.partial(decoder_forward, heads=heads,
                                    embed_size=embed_size))
    out = fwd(packed, x_tokens, enc_out, src_mask, trg_mask)
    out = jax.block_until_ready(out)

    assert out.shape == (N, trg_len, trg_vocab_size), out.shape
    assert bool(jnp.all(jnp.isfinite(out)))
    print("KERNEL_OK")
</pallas_src>

<mosaic_0001>
module attributes {stable_mosaic.version = 11 : i64} {
  func.func @_decoder_kernel(%arg0: memref<16x32xf32, #tpu.memory_space<vmem>>, %arg1: memref<16x32xf32, #tpu.memory_space<vmem>>, %arg2: memref<16x16xf32, #tpu.memory_space<vmem>>, %arg3: memref<16x16xf32, #tpu.memory_space<vmem>>, %arg4: memref<2x32x32xbf16, #tpu.memory_space<vmem>>, %arg5: memref<2x32x32xbf16, #tpu.memory_space<vmem>>, %arg6: memref<2x32x32xbf16, #tpu.memory_space<vmem>>, %arg7: memref<2x32x32xbf16, #tpu.memory_space<vmem>>, %arg8: memref<2x1x32xf32, #tpu.memory_space<vmem>>, %arg9: memref<2x1x32xf32, #tpu.memory_space<vmem>>, %arg10: memref<2x1x32xf32, #tpu.memory_space<vmem>>, %arg11: memref<2x32x32xbf16, #tpu.memory_space<vmem>>, %arg12: memref<2x32x32xbf16, #tpu.memory_space<vmem>>, %arg13: memref<2x32x32xbf16, #tpu.memory_space<vmem>>, %arg14: memref<2x32x32xbf16, #tpu.memory_space<vmem>>, %arg15: memref<2x1x32xf32, #tpu.memory_space<vmem>>, %arg16: memref<2x1x32xf32, #tpu.memory_space<vmem>>, %arg17: memref<2x1x32xf32, #tpu.memory_space<vmem>>, %arg18: memref<2x32x128xbf16, #tpu.memory_space<vmem>>, %arg19: memref<2x1x128xf32, #tpu.memory_space<vmem>>, %arg20: memref<2x128x32xbf16, #tpu.memory_space<vmem>>, %arg21: memref<2x1x32xf32, #tpu.memory_space<vmem>>, %arg22: memref<2x1x32xf32, #tpu.memory_space<vmem>>, %arg23: memref<2x1x32xf32, #tpu.memory_space<vmem>>, %arg24: memref<32x128xbf16, #tpu.memory_space<vmem>>, %arg25: memref<1x128xf32, #tpu.memory_space<vmem>>, %arg26: memref<16x128xf32, #tpu.memory_space<vmem>>) attributes {dimension_semantics = [], scalar_prefetch = 0 : i64, scratch_operands = 0 : i64, tpu.core_type = #tpu.core_type<tc>} {
    %c0 = arith.constant 0 : index
    %c0_0 = arith.constant 0 : index
    %0 = vector.load %arg0[%c0, %c0_0] : memref<16x32xf32, #tpu.memory_space<vmem>>, vector<16x32xf32>
    %c0_1 = arith.constant 0 : index
    %c0_2 = arith.constant 0 : index
    %1 = vector.load %arg1[%c0_1, %c0_2] : memref<16x32xf32, #tpu.memory_space<vmem>>, vector<16x32xf32>
    %c0_3 = arith.constant 0 : index
    %c0_4 = arith.constant 0 : index
    %2 = vector.load %arg2[%c0_3, %c0_4] : memref<16x16xf32, #tpu.memory_space<vmem>>, vector<16x16xf32>
    %c0_5 = arith.constant 0 : index
    %c0_6 = arith.constant 0 : index
    %3 = vector.load %arg3[%c0_5, %c0_6] : memref<16x16xf32, #tpu.memory_space<vmem>>, vector<16x16xf32>
    %c0_7 = arith.constant 0 : index
    %c0_8 = arith.constant 0 : index
    %c0_9 = arith.constant 0 : index
    %4 = vector.load %arg4[%c0_7, %c0_8, %c0_9] : memref<2x32x32xbf16, #tpu.memory_space<vmem>>, vector<1x32x32xbf16>
    %5 = vector.shape_cast %4 : vector<1x32x32xbf16> to vector<32x32xbf16>
    %c0_10 = arith.constant 0 : index
    %c0_11 = arith.constant 0 : index
    %c0_12 = arith.constant 0 : index
    %6 = vector.load %arg5[%c0_10, %c0_11, %c0_12] : memref<2x32x32xbf16, #tpu.memory_space<vmem>>, vector<1x32x32xbf16>
    %7 = vector.shape_cast %6 : vector<1x32x32xbf16> to vector<32x32xbf16>
    %c0_13 = arith.constant 0 : index
    %c0_14 = arith.constant 0 : index
    %c0_15 = arith.constant 0 : index
    %8 = vector.load %arg6[%c0_13, %c0_14, %c0_15] : memref<2x32x32xbf16, #tpu.memory_space<vmem>>, vector<1x32x32xbf16>
    %9 = vector.shape_cast %8 : vector<1x32x32xbf16> to vector<32x32xbf16>
    %c0_16 = arith.constant 0 : index
    %c0_17 = arith.constant 0 : index
    %c0_18 = arith.constant 0 : index
    %10 = vector.load %arg7[%c0_16, %c0_17, %c0_18] : memref<2x32x32xbf16, #tpu.memory_space<vmem>>, vector<1x32x32xbf16>
    %11 = vector.shape_cast %10 : vector<1x32x32xbf16> to vector<32x32xbf16>
    %c0_19 = arith.constant 0 : index
    %c0_20 = arith.constant 0 : index
    %c0_21 = arith.constant 0 : index
    %12 = vector.load %arg8[%c0_19, %c0_20, %c0_21] : memref<2x1x32xf32, #tpu.memory_space<vmem>>, vector<1x1x32xf32>
    %13 = vector.shape_cast %12 : vector<1x1x32xf32> to vector<1x32xf32>
    %14 = arith.truncf %0 : vector<16x32xf32> to vector<16x32xbf16>
    %cst = arith.constant dense<0.000000e+00> : vector<16x32xf32>
    %15 = tpu.matmul %14, %5, %cst {dimension_numbers = #tpu.dot_dimension_numbers<[1], [0], [0], [1], [0, 0, 1, 1], [], []>} : vector<16x32xbf16>, vector<32x32xbf16>, vector<16x32xf32> -> vector<16x32xf32>
    %16 = arith.truncf %0 : vector<16x32xf32> to vector<16x32xbf16>
    %cst_22 = arith.constant dense<0.000000e+00> : vector<16x32xf32>
    %17 = tpu.matmul %16, %7, %cst_22 {dimension_numbers = #tpu.dot_dimension_numbers<[1], [0], [0], [1], [0, 0, 1, 1], [], []>} : vector<16x32xbf16>, vector<32x32xbf16>, vector<16x32xf32> -> vector<16x32xf32>
    %18 = arith.truncf %17 : vector<16x32xf32> to vector<16x32xbf16>
    %19 = arith.truncf %0 : vector<16x32xf32> to vector<16x32xbf16>
    %cst_23 = arith.constant dense<0.000000e+00> : vector<16x32xf32>
    %20 = tpu.matmul %19, %9, %cst_23 {dimension_numbers = #tpu.dot_dimension_numbers<[1], [0], [0], [1], [0, 0, 1, 1], [], []>} : vector<16x32xbf16>, vector<32x32xbf16>, vector<16x32xf32> -> vector<16x32xf32>
    %21 = tpu.iota {dimensions = array<i32: 1>} : vector<1x32xi32>
    %c0_i32 = arith.constant 0 : i32
    %22 = vector.broadcast %c0_i32 : i32 to vector<1x32xi32>
    %23 = arith.cmpi sge, %21, %22 : vector<1x32xi32>
    %c8_i32 = arith.constant 8 : i32
    %24 = vector.broadcast %c8_i32 : i32 to vector<1x32xi32>
    %25 = arith.cmpi slt, %21, %24 : vector<1x32xi32>
    %26 = arith.andi %23, %25 : vector<1x32xi1>
    %27 = arith.extui %26 : vector<1x32xi1> to vector<1x32xi32>
    %28 = arith.sitofp %27 : vector<1x32xi32> to vector<1x32xf32>
    %29 = vector.broadcast %28 : vector<1x32xf32> to vector<16x32xf32>
    %30 = arith.mulf %15, %29 : vector<16x32xf32>
    %31 = arith.truncf %30 : vector<16x32xf32> to vector<16x32xbf16>
    %32 = vector.broadcast %28 : vector<1x32xf32> to vector<16x32xf32>
    %33 = arith.mulf %20, %32 : vector<16x32xf32>
    %34 = arith.truncf %33 : vector<16x32xf32> to vector<16x32xbf16>
    %cst_24 = arith.constant dense<0.000000e+00> : vector<16x16xf32>
    %35 = tpu.matmul %31, %18, %cst_24 {dimension_numbers = #tpu.dot_dimension_numbers<[1], [1], [0], [0], [0, 0, 1, 0], [], []>} : vector<16x32xbf16>, vector<16x32xbf16>, vector<16x16xf32> -> vector<16x16xf32>
    %cst_25 = arith.constant 5.000000e-01 : f32
    %36 = vector.broadcast %cst_25 : f32 to vector<16x16xf32>
    %37 = arith.cmpf olt, %2, %36 : vector<16x16xf32>
    %cst_26 = arith.constant -1.000000e+20 : f32
    %38 = vector.broadcast %cst_26 : f32 to vector<16x16xf32>
    %39 = arith.select %37, %38, %35 : vector<16x16xi1>, vector<16x16xf32>
    %cst_27 = arith.constant dense<0xFF800000> : vector<16xf32>
    %40 = vector.multi_reduction <maximumf>, %39, %cst_27 [1] : vector<16x16xf32> to vector<16xf32>
    %41 = vector.shape_cast %40 : vector<16xf32> to vector<16x1xf32>
    %42 = vector.broadcast %41 : vector<16x1xf32> to vector<16x16xf32>
    %43 = arith.subf %39, %42 : vector<16x16xf32>
    %44 = math.exp %43 : vector<16x16xf32>
    %cst_28 = arith.constant dense<0.000000e+00> : vector<16xf32>
    %45 = vector.multi_reduction <add>, %44, %cst_28 [1] : vector<16x16xf32> to vector<16xf32>
    %46 = vector.shape_cast %45 : vector<16xf32> to vector<16x1xf32>
    %47 = tpu.reciprocal %46 {approx = true} : vector<16x1xf32> -> vector<16x1xf32>
    %48 = vector.broadcast %47 : vector<16x1xf32> to vector<16x16xf32>
    %49 = arith.mulf %44, %48 : vector<16x16xf32>
    %50 = arith.truncf %49 : vector<16x16xf32> to vector<16x16xbf16>
    %cst_29 = arith.constant dense<0.000000e+00> : vector<16x32xf32>
    %51 = tpu.matmul %50, %34, %cst_29 {dimension_numbers = #tpu.dot_dimension_numbers<[1], [0], [0], [1], [0, 0, 1, 1], [], []>} : vector<16x16xbf16>, vector<16x32xbf16>, vector<16x32xf32> -> vector<16x32xf32>
    %c8_i32_30 = arith.constant 8 : i32
    %52 = vector.broadcast %c8_i32_30 : i32 to vector<1x32xi32>
    %53 = arith.cmpi sge, %21, %52 : vector<1x32xi32>
    %c16_i32 = arith.constant 16 : i32
    %54 = vector.broadcast %c16_i32 : i32 to vector<1x32xi32>
    %55 = arith.cmpi slt, %21, %54 : vector<1x32xi32>
    %56 = arith.andi %53, %55 : vector<1x32xi1>
    %57 = arith.extui %56 : vector<1x32xi1> to vector<1x32xi32>
    %58 = arith.sitofp %57 : vector<1x32xi32> to vector<1x32xf32>
    %59 = vector.broadcast %58 : vector<1x32xf32> to vector<16x32xf32>
    %60 = arith.mulf %15, %59 : vector<16x32xf32>
    %61 = arith.truncf %60 : vector<16x32xf32> to vector<16x32xbf16>
    %62 = vector.broadcast %58 : vector<1x32xf32> to vector<16x32xf32>
    %63 = arith.mulf %20, %62 : vector<16x32xf32>
    %64 = arith.truncf %63 : vector<16x32xf32> to vector<16x32xbf16>
    %cst_31 = arith.constant dense<0.000000e+00> : vector<16x16xf32>
    %65 = tpu.matmul %61, %18, %cst_31 {dimension_numbers = #tpu.dot_dimension_numbers<[1], [1], [0], [0], [0, 0, 1, 0], [], []>} : vector<16x32xbf16>, vector<16x32xbf16>, vector<16x16xf32> -> vector<16x16xf32>
    %cst_32 = arith.constant 5.000000e-01 : f32
    %66 = vector.broadcast %cst_32 : f32 to vector<16x16xf32>
    %67 = arith.cmpf olt, %2, %66 : vector<16x16xf32>
    %cst_33 = arith.constant -1.000000e+20 : f32
    %68 = vector.broadcast %cst_33 : f32 to vector<16x16xf32>
    %69 = arith.select %67, %68, %65 : vector<16x16xi1>, vector<16x16xf32>
    %cst_34 = arith.constant dense<0xFF800000> : vector<16xf32>
    %70 = vector.multi_reduction <maximumf>, %69, %cst_34 [1] : vector<16x16xf32> to vector<16xf32>
    %71 = vector.shape_cast %70 : vector<16xf32> to vector<16x1xf32>
    %72 = vector.broadcast %71 : vector<16x1xf32> to vector<16x16xf32>
    %73 = arith.subf %69, %72 : vector<16x16xf32>
    %74 = math.exp %73 : vector<16x16xf32>
    %cst_35 = arith.constant dense<0.000000e+00> : vector<16xf32>
    %75 = vector.multi_reduction <add>, %74, %cst_35 [1] : vector<16x16xf32> to vector<16xf32>
    %76 = vector.shape_cast %75 : vector<16xf32> to vector<16x1xf32>
    %77 = tpu.reciprocal %76 {approx = true} : vector<16x1xf32> -> vector<16x1xf32>
    %78 = vector.broadcast %77 : vector<16x1xf32> to vector<16x16xf32>
    %79 = arith.mulf %74, %78 : vector<16x16xf32>
    %80 = arith.truncf %79 : vector<16x16xf32> to vector<16x16xbf16>
    %cst_36 = arith.constant dense<0.000000e+00> : vector<16x32xf32>
    %81 = tpu.matmul %80, %64, %cst_36 {dimension_numbers = #tpu.dot_dimension_numbers<[1], [0], [0], [1], [0, 0, 1, 1], [], []>} : vector<16x16xbf16>, vector<16x32xbf16>, vector<16x32xf32> -> vector<16x32xf32>
    %82 = arith.addf %51, %81 : vector<16x32xf32>
    %c16_i32_37 = arith.constant 16 : i32
    %83 = vector.broadcast %c16_i32_37 : i32 to vector<1x32xi32>
    %84 = arith.cmpi sge, %21, %83 : vector<1x32xi32>
    %c24_i32 = arith.constant 24 : i32
    %85 = vector.broadcast %c24_i32 : i32 to vector<1x32xi32>
    %86 = arith.cmpi slt, %21, %85 : vector<1x32xi32>
    %87 = arith.andi %84, %86 : vector<1x32xi1>
    %88 = arith.extui %87 : vector<1x32xi1> to vector<1x32xi32>
    %89 = arith.sitofp %88 : vector<1x32xi32> to vector<1x32xf32>
    %90 = vector.broadcast %89 : vector<1x32xf32> to vector<16x32xf32>
    %91 = arith.mulf %15, %90 : vector<16x32xf32>
    %92 = arith.truncf %91 : vector<16x32xf32> to vector<16x32xbf16>
    %93 = vector.broadcast %89 : vector<1x32xf32> to vector<16x32xf32>
    %94 = arith.mulf %20, %93 : vector<16x32xf32>
    %95 = arith.truncf %94 : vector<16x32xf32> to vector<16x32xbf16>
    %cst_38 = arith.constant dense<0.000000e+00> : vector<16x16xf32>
    %96 = tpu.matmul %92, %18, %cst_38 {dimension_numbers = #tpu.dot_dimension_numbers<[1], [1], [0], [0], [0, 0, 1, 0], [], []>} : vector<16x32xbf16>, vector<16x32xbf16>, vector<16x16xf32> -> vector<16x16xf32>
    %cst_39 = arith.constant 5.000000e-01 : f32
    %97 = vector.broadcast %cst_39 : f32 to vector<16x16xf32>
    %98 = arith.cmpf olt, %2, %97 : vector<16x16xf32>
    %cst_40 = arith.constant -1.000000e+20 : f32
    %99 = vector.broadcast %cst_40 : f32 to vector<16x16xf32>
    %100 = arith.select %98, %99, %96 : vector<16x16xi1>, vector<16x16xf32>
    %cst_41 = arith.constant dense<0xFF800000> : vector<16xf32>
    %101 = vector.multi_reduction <maximumf>, %100, %cst_41 [1] : vector<16x16xf32> to vector<16xf32>
    %102 = vector.shape_cast %101 : vector<16xf32> to vector<16x1xf32>
    %103 = vector.broadcast %102 : vector<16x1xf32> to vector<16x16xf32>
    %104 = arith.subf %100, %103 : vector<16x16xf32>
    %105 = math.exp %104 : vector<16x16xf32>
    %cst_42 = arith.constant dense<0.000000e+00> : vector<16xf32>
    %106 = vector.multi_reduction <add>, %105, %cst_42 [1] : vector<16x16xf32> to vector<16xf32>
    %107 = vector.shape_cast %106 : vector<16xf32> to vector<16x1xf32>
    %108 = tpu.reciprocal %107 {approx = true} : vector<16x1xf32> -> vector<16x1xf32>
    %109 = vector.broadcast %108 : vector<16x1xf32> to vector<16x16xf32>
    %110 = arith.mulf %105, %109 : vector<16x16xf32>
    %111 = arith.truncf %110 : vector<16x16xf32> to vector<16x16xbf16>
    %cst_43 = arith.constant dense<0.000000e+00> : vector<16x32xf32>
    %112 = tpu.matmul %111, %95, %cst_43 {dimension_numbers = #tpu.dot_dimension_numbers<[1], [0], [0], [1], [0, 0, 1, 1], [], []>} : vector<16x16xbf16>, vector<16x32xbf16>, vector<16x32xf32> -> vector<16x32xf32>
    %113 = arith.addf %82, %112 : vector<16x32xf32>
    %c24_i32_44 = arith.constant 24 : i32
    %114 = vector.broadcast %c24_i32_44 : i32 to vector<1x32xi32>
    %115 = arith.cmpi sge, %21, %114 : vector<1x32xi32>
    %c32_i32 = arith.constant 32 : i32
    %116 = vector.broadcast %c32_i32 : i32 to vector<1x32xi32>
    %117 = arith.cmpi slt, %21, %116 : vector<1x32xi32>
    %118 = arith.andi %115, %117 : vector<1x32xi1>
    %119 = arith.extui %118 : vector<1x32xi1> to vector<1x32xi32>
    %120 = arith.sitofp %119 : vector<1x32xi32> to vector<1x32xf32>
    %121 = vector.broadcast %120 : vector<1x32xf32> to vector<16x32xf32>
    %122 = arith.mulf %15, %121 : vector<16x32xf32>
    %123 = arith.truncf %122 : vector<16x32xf32> to vector<16x32xbf16>
    %124 = vector.broadcast %120 : vector<1x32xf32> to vector<16x32xf32>
    %125 = arith.mulf %20, %124 : vector<16x32xf32>
    %126 = arith.truncf %125 : vector<16x32xf32> to vector<16x32xbf16>
    %cst_45 = arith.constant dense<0.000000e+00> : vector<16x16xf32>
    %127 = tpu.matmul %123, %18, %cst_45 {dimension_numbers = #tpu.dot_dimension_numbers<[1], [1], [0], [0], [0, 0, 1, 0], [], []>} : vector<16x32xbf16>, vector<16x32xbf16>, vector<16x16xf32> -> vector<16x16xf32>
    %cst_46 = arith.constant 5.000000e-01 : f32
    %128 = vector.broadcast %cst_46 : f32 to vector<16x16xf32>
    %129 = arith.cmpf olt, %2, %128 : vector<16x16xf32>
    %cst_47 = arith.constant -1.000000e+20 : f32
    %130 = vector.broadcast %cst_47 : f32 to vector<16x16xf32>
    %131 = arith.select %129, %130, %127 : vector<16x16xi1>, vector<16x16xf32>
    %cst_48 = arith.constant dense<0xFF800000> : vector<16xf32>
    %132 = vector.multi_reduction <maximumf>, %131, %cst_48 [1] : vector<16x16xf32> to vector<16xf32>
    %133 = vector.shape_cast %132 : vector<16xf32> to vector<16x1xf32>
    %134 = vector.broadcast %133 : vector<16x1xf32> to vector<16x16xf32>
    %135 = arith.subf %131, %134 : vector<16x16xf32>
    %136 = math.exp %135 : vector<16x16xf32>
    %cst_49 = arith.constant dense<0.000000e+00> : vector<16xf32>
    %137 = vector.multi_reduction <add>, %136, %cst_49 [1] : vector<16x16xf32> to vector<16xf32>
    %138 = vector.shape_cast %137 : vector<16xf32> to vector<16x1xf32>
    %139 = tpu.reciprocal %138 {approx = true} : vector<16x1xf32> -> vector<16x1xf32>
    %140 = vector.broadcast %139 : vector<16x1xf32> to vector<16x16xf32>
    %141 = arith.mulf %136, %140 : vector<16x16xf32>
    %142 = arith.truncf %141 : vector<16x16xf32> to vector<16x16xbf16>
    %cst_50 = arith.constant dense<0.000000e+00> : vector<16x32xf32>
    %143 = tpu.matmul %142, %126, %cst_50 {dimension_numbers = #tpu.dot_dimension_numbers<[1], [0], [0], [1], [0, 0, 1, 1], [], []>} : vector<16x16xbf16>, vector<16x32xbf16>, vector<16x32xf32> -> vector<16x32xf32>
    %144 = arith.addf %113, %143 : vector<16x32xf32>
    %145 = arith.truncf %144 : vector<16x32xf32> to vector<16x32xbf16>
    %cst_51 = arith.constant dense<0.000000e+00> : vector<16x32xf32>
    %146 = tpu.matmul %145, %11, %cst_51 {dimension_numbers = #tpu.dot_dimension_numbers<[1], [0], [0], [1], [0, 0, 1, 1], [], []>} : vector<16x32xbf16>, vector<32x32xbf16>, vector<16x32xf32> -> vector<16x32xf32>
    %147 = vector.broadcast %13 : vector<1x32xf32> to vector<16x32xf32>
    %148 = arith.addf %146, %147 : vector<16x32xf32>
    %c0_52 = arith.constant 0 : index
    %c0_53 = arith.constant 0 : index
    %c0_54 = arith.constant 0 : index
    %149 = vector.load %arg9[%c0_52, %c0_53, %c0_54] : memref<2x1x32xf32, #tpu.memory_space<vmem>>, vector<1x1x32xf32>
    %150 = vector.shape_cast %149 : vector<1x1x32xf32> to vector<1x32xf32>
    %c0_55 = arith.constant 0 : index
    %c0_56 = arith.constant 0 : index
    %c0_57 = arith.constant 0 : index
    %151 = vector.load %arg10[%c0_55, %c0_56, %c0_57] : memref<2x1x32xf32, #tpu.memory_space<vmem>>, vector<1x1x32xf32>
    %152 = vector.shape_cast %151 : vector<1x1x32xf32> to vector<1x32xf32>
    %153 = arith.addf %148, %0 : vector<16x32xf32>
    %cst_58 = arith.constant dense<0.000000e+00> : vector<16xf32>
    %154 = vector.multi_reduction <add>, %153, %cst_58 [1] : vector<16x32xf32> to vector<16xf32>
    %155 = vector.shape_cast %154 : vector<16xf32> to vector<16x1xf32>
    %cst_59 = arith.constant 3.200000e+01 : f32
    %156 = vector.broadcast %cst_59 : f32 to vector<16x1xf32>
    %157 = arith.divf %155, %156 : vector<16x1xf32>
    %158 = vector.broadcast %157 : vector<16x1xf32> to vector<16x32xf32>
    %159 = arith.subf %153, %158 : vector<16x32xf32>
    %160 = arith.mulf %159, %159 : vector<16x32xf32>
    %cst_60 = arith.constant dense<0.000000e+00> : vector<16xf32>
    %161 = vector.multi_reduction <add>, %160, %cst_60 [1] : vector<16x32xf32> to vector<16xf32>
    %162 = vector.shape_cast %161 : vector<16xf32> to vector<16x1xf32>
    %cst_61 = arith.constant 3.200000e+01 : f32
    %163 = vector.broadcast %cst_61 : f32 to vector<16x1xf32>
    %164 = arith.divf %162, %163 : vector<16x1xf32>
    %cst_62 = arith.constant 9.99999974E-6 : f32
    %165 = vector.broadcast %cst_62 : f32 to vector<16x1xf32>
    %166 = arith.addf %164, %165 : vector<16x1xf32>
    %167 = math.rsqrt %166 : vector<16x1xf32>
    %168 = vector.broadcast %167 : vector<16x1xf32> to vector<16x32xf32>
    %169 = arith.mulf %159, %168 : vector<16x32xf32>
    %170 = vector.broadcast %150 : vector<1x32xf32> to vector<16x32xf32>
    %171 = arith.mulf %169, %170 : vector<16x32xf32>
    %172 = vector.broadcast %152 : vector<1x32xf32> to vector<16x32xf32>
    %173 = arith.addf %171, %172 : vector<16x32xf32>
    %c0_63 = arith.constant 0 : index
    %c0_64 = arith.constant 0 : index
    %c0_65 = arith.constant 0 : index
    %174 = vector.load %arg11[%c0_63, %c0_64, %c0_65] : memref<2x32x32xbf16, #tpu.memory_space<vmem>>, vector<1x32x32xbf16>
    %175 = vector.shape_cast %174 : vector<1x32x32xbf16> to vector<32x32xbf16>
    %c0_66 = arith.constant 0 : index
    %c0_67 = arith.constant 0 : index
    %c0_68 = arith.constant 0 : index
    %176 = vector.load %arg12[%c0_66, %c0_67, %c0_68] : memref<2x32x32xbf16, #tpu.memory_space<vmem>>, vector<1x32x32xbf16>
    %177 = vector.shape_cast %176 : vector<1x32x32xbf16> to vector<32x32xbf16>
    %c0_69 = arith.constant 0 : index
    %c0_70 = arith.constant 0 : index
    %c0_71 = arith.constant 0 : index
    %178 = vector.load %arg13[%c0_69, %c0_70, %c0_71] : memref<2x32x32xbf16, #tpu.memory_space<vmem>>, vector<1x32x32xbf16>
    %179 = vector.shape_cast %178 : vector<1x32x32xbf16> to vector<32x32xbf16>
    %c0_72 = arith.constant 0 : index
    %c0_73 = arith.constant 0 : index
    %c0_74 = arith.constant 0 : index
    %180 = vector.load %arg14[%c0_72, %c0_73, %c0_74] : memref<2x32x32xbf16, #tpu.memory_space<vmem>>, vector<1x32x32xbf16>
    %181 = vector.shape_cast %180 : vector<1x32x32xbf16> to vector<32x32xbf16>
    %c0_75 = arith.constant 0 : index
    %c0_76 = arith.constant 0 : index
    %c0_77 = arith.constant 0 : index
    %182 = vector.load %arg15[%c0_75, %c0_76, %c0_77] : memref<2x1x32xf32, #tpu.memory_space<vmem>>, vector<1x1x32xf32>
    %183 = vector.shape_cast %182 : vector<1x1x32xf32> to vector<1x32xf32>
    %184 = arith.truncf %173 : vector<16x32xf32> to vector<16x32xbf16>
    %cst_78 = arith.constant dense<0.000000e+00> : vector<16x32xf32>
    %185 = tpu.matmul %184, %175, %cst_78 {dimension_numbers = #tpu.dot_dimension_numbers<[1], [0], [0], [1], [0, 0, 1, 1], [], []>} : vector<16x32xbf16>, vector<32x32xbf16>, vector<16x32xf32> -> vector<16x32xf32>
    %186 = arith.truncf %1 : vector<16x32xf32> to vector<16x32xbf16>
    %cst_79 = arith.constant dense<0.000000e+00> : vector<16x32xf32>
    %187 = tpu.matmul %186, %177, %cst_79 {dimension_numbers = #tpu.dot_dimension_numbers<[1], [0], [0], [1], [0, 0, 1, 1], [], []>} : vector<16x32xbf16>, vector<32x32xbf16>, vector<16x32xf32> -> vector<16x32xf32>
    %188 = arith.truncf %187 : vector<16x32xf32> to vector<16x32xbf16>
    %189 = arith.truncf %1 : vector<16x32xf32> to vector<16x32xbf16>
    %cst_80 = arith.constant dense<0.000000e+00> : vector<16x32xf32>
    %190 = tpu.matmul %189, %179, %cst_80 {dimension_numbers = #tpu.dot_dimension_numbers<[1], [0], [0], [1], [0, 0, 1, 1], [], []>} : vector<16x32xbf16>, vector<32x32xbf16>, vector<16x32xf32> -> vector<16x32xf32>
    %191 = tpu.iota {dimensions = array<i32: 1>} : vector<1x32xi32>
    %c0_i32_81 = arith.constant 0 : i32
    %192 = vector.broadcast %c0_i32_81 : i32 to vector<1x32xi32>
    %193 = arith.cmpi sge, %191, %192 : vector<1x32xi32>
    %c8_i32_82 = arith.constant 8 : i32
    %194 = vector.broadcast %c8_i32_82 : i32 to vector<1x32xi32>
    %195 = arith.cmpi slt, %191, %194 : vector<1x32xi32>
    %196 = arith.andi %193, %195 : vector<1x32xi1>
    %197 = arith.extui %196 : vector<1x32xi1> to vector<1x32xi32>
    %198 = arith.sitofp %197 : vector<1x32xi32> to vector<1x32xf32>
    %199 = vector.broadcast %198 : vector<1x32xf32> to vector<16x32xf32>
    %200 = arith.mulf %185, %199 : vector<16x32xf32>
    %201 = arith.truncf %200 : vector<16x32xf32> to vector<16x32xbf16>
    %202 = vector.broadcast %198 : vector<1x32xf32> to vector<16x32xf32>
    %203 = arith.mulf %190, %202 : vector<16x32xf32>
    %204 = arith.truncf %203 : vector<16x32xf32> to vector<16x32xbf16>
    %cst_83 = arith.constant dense<0.000000e+00> : vector<16x16xf32>
    %205 = tpu.matmul %201, %188, %cst_83 {dimension_numbers = #tpu.dot_dimension_numbers<[1], [1], [0], [0], [0, 0, 1, 0], [], []>} : vector<16x32xbf16>, vector<16x32xbf16>, vector<16x16xf32> -> vector<16x16xf32>
    %cst_84 = arith.constant 5.000000e-01 : f32
    %206 = vector.broadcast %cst_84 : f32 to vector<16x16xf32>
    %207 = arith.cmpf olt, %3, %206 : vector<16x16xf32>
    %cst_85 = arith.constant -1.000000e+20 : f32
    %208 = vector.broadcast %cst_85 : f32 to vector<16x16xf32>
    %209 = arith.select %207, %208, %205 : vector<16x16xi1>, vector<16x16xf32>
    %cst_86 = arith.constant dense<0xFF800000> : vector<16xf32>
    %210 = vector.multi_reduction <maximumf>, %209, %cst_86 [1] : vector<16x16xf32> to vector<16xf32>
    %211 = vector.shape_cast %210 : vector<16xf32> to vector<16x1xf32>
    %212 = vector.broadcast %211 : vector<16x1xf32> to vector<16x16xf32>
    %213 = arith.subf %209, %212 : vector<16x16xf32>
    %214 = math.exp %213 : vector<16x16xf32>
    %cst_87 = arith.constant dense<0.000000e+00> : vector<16xf32>
    %215 = vector.multi_reduction <add>, %214, %cst_87 [1] : vector<16x16xf32> to vector<16xf32>
    %216 = vector.shape_cast %215 : vector<16xf32> to vector<16x1xf32>
    %217 = tpu.reciprocal %216 {approx = true} : vector<16x1xf32> -> vector<16x1xf32>
    %218 = vector.broadcast %217 : vector<16x1xf32> to vector<16x16xf32>
    %219 = arith.mulf %214, %218 : vector<16x16xf32>
    %220 = arith.truncf %219 : vector<16x16xf32> to vector<16x16xbf16>
    %cst_88 = arith.constant dense<0.000000e+00> : vector<16x32xf32>
    %221 = tpu.matmul %220, %204, %cst_88 {dimension_numbers = #tpu.dot_dimension_numbers<[1], [0], [0], [1], [0, 0, 1, 1], [], []>} : vector<16x16xbf16>, vector<16x32xbf16>, vector<16x32xf32> -> vector<16x32xf32>
    %c8_i32_89 = arith.constant 8 : i32
    %222 = vector.broadcast %c8_i32_89 : i32 to vector<1x32xi32>
    %223 = arith.cmpi sge, %191, %222 : vector<1x32xi32>
    %c16_i32_90 = arith.constant 16 : i32
    %224 = vector.broadcast %c16_i32_90 : i32 to vector<1x32xi32>
    %225 = arith.cmpi slt, %191, %224 : vector<1x32xi32>
    %226 = arith.andi %223, %225 : vector<1x32xi1>
    %227 = arith.extui %226 : vector<1x32xi1> to vector<1x32xi32>
    %228 = arith.sitofp %227 : vector<1x32xi32> to vector<1x32xf32>
    %229 = vector.broadcast %228 : vector<1x32xf32> to vector<16x32xf32>
    %230 = arith.mulf %185, %229 : vector<16x32xf32>
    %231 = arith.truncf %230 : vector<16x32xf32> to vector<16x32xbf16>
    %232 = vector.broadcast %228 : vector<1x32xf32> to vector<16x32xf32>
    %233 = arith.mulf %190, %232 : vector<16x32xf32>
    %234 = arith.truncf %233 : vector<16x32xf32> to vector<16x32xbf16>
    %cst_91 = arith.constant dense<0.000000e+00> : vector<16x16xf32>
    %235 = tpu.matmul %231, %188, %cst_91 {dimension_numbers = #tpu.dot_dimension_numbers<[1], [1], [0], [0], [0, 0, 1, 0], [], []>} : vector<16x32xbf16>, vector<16x32xbf16>, vector<16x16xf32> -> vector<16x16xf32>
    %cst_92 = arith.constant 5.000000e-01 : f32
    %236 = vector.broadcast %cst_92 : f32 to vector<16x16xf32>
    %237 = arith.cmpf olt, %3, %236 : vector<16x16xf32>
    %cst_93 = arith.constant -1.000000e+20 : f32
    %238 = vector.broadcast %cst_93 : f32 to vector<16x16xf32>
    %239 = arith.select %237, %238, %235 : vector<16x16xi1>, vector<16x16xf32>
    %cst_94 = arith.constant dense<0xFF800000> : vector<16xf32>
    %240 = vector.multi_reduction <maximumf>, %239, %cst_94 [1] : vector<16x16xf32> to vector<16xf32>
    %241 = vector.shape_cast %240 : vector<16xf32> to vector<16x1xf32>
    %242 = vector.broadcast %241 : vector<16x1xf32> to vector<16x16xf32>
    %243 = arith.subf %239, %242 : vector<16x16xf32>
    %244 = math.exp %243 : vector<16x16xf32>
    %cst_95 = arith.constant dense<0.000000e+00> : vector<16xf32>
    %245 = vector.multi_reduction <add>, %244, %cst_95 [1] : vector<16x16xf32> to vector<16xf32>
    %246 = vector.shape_cast %245 : vector<16xf32> to vector<16x1xf32>
    %247 = tpu.reciprocal %246 {approx = true} : vector<16x1xf32> -> vector<16x1xf32>
    %248 = vector.broadcast %247 : vector<16x1xf32> to vector<16x16xf32>
    %249 = arith.mulf %244, %248 : vector<16x16xf32>
    %250 = arith.truncf %249 : vector<16x16xf32> to vector<16x16xbf16>
    %cst_96 = arith.constant dense<0.000000e+00> : vector<16x32xf32>
    %251 = tpu.matmul %250, %234, %cst_96 {dimension_numbers = #tpu.dot_dimension_numbers<[1], [0], [0], [1], [0, 0, 1, 1], [], []>} : vector<16x16xbf16>, vector<16x32xbf16>, vector<16x32xf32> -> vector<16x32xf32>
    %252 = arith.addf %221, %251 : vector<16x32xf32>
    %c16_i32_97 = arith.constant 16 : i32
    %253 = vector.broadcast %c16_i32_97 : i32 to vector<1x32xi32>
    %254 = arith.cmpi sge, %191, %253 : vector<1x32xi32>
    %c24_i32_98 = arith.constant 24 : i32
    %255 = vector.broadcast %c24_i32_98 : i32 to vector<1x32xi32>
    %256 = arith.cmpi slt, %191, %255 : vector<1x32xi32>
    %257 = arith.andi %254, %256 : vector<1x32xi1>
    %258 = arith.extui %257 : vector<1x32xi1> to vector<1x32xi32>
    %259 = arith.sitofp %258 : vector<1x32xi32> to vector<1x32xf32>
    %260 = vector.broadcast %259 : vector<1x32xf32> to vector<16x32xf32>
    %261 = arith.mulf %185, %260 : vector<16x32xf32>
    %262 = arith.truncf %261 : vector<16x32xf32> to vector<16x32xbf16>
    %263 = vector.broadcast %259 : vector<1x32xf32> to vector<16x32xf32>
    %264 = arith.mulf %190, %263 : vector<16x32xf32>
    %265 = arith.truncf %264 : vector<16x32xf32> to vector<16x32xbf16>
    %cst_99 = arith.constant dense<0.000000e+00> : vector<16x16xf32>
    %266 = tpu.matmul %262, %188, %cst_99 {dimension_numbers = #tpu.dot_dimension_numbers<[1], [1], [0], [0], [0, 0, 1, 0], [], []>} : vector<16x32xbf16>, vector<16x32xbf16>, vector<16x16xf32> -> vector<16x16xf32>
    %cst_100 = arith.constant 5.000000e-01 : f32
    %267 = vector.broadcast %cst_100 : f32 to vector<16x16xf32>
    %268 = arith.cmpf olt, %3, %267 : vector<16x16xf32>
    %cst_101 = arith.constant -1.000000e+20 : f32
    %269 = vector.broadcast %cst_101 : f32 to vector<16x16xf32>
    %270 = arith.select %268, %269, %266 : vector<16x16xi1>, vector<16x16xf32>
    %cst_102 = arith.constant dense<0xFF800000> : vector<16xf32>
    %271 = vector.multi_reduction <maximumf>, %270, %cst_102 [1] : vector<16x16xf32> to vector<16xf32>
    %272 = vector.shape_cast %271 : vector<16xf32> to vector<16x1xf32>
    %273 = vector.broadcast %272 : vector<16x1xf32> to vector<16x16xf32>
    %274 = arith.subf %270, %273 : vector<16x16xf32>
    %275 = math.exp %274 : vector<16x16xf32>
    %cst_103 = arith.constant dense<0.000000e+00> : vector<16xf32>
    %276 = vector.multi_reduction <add>, %275, %cst_103 [1] : vector<16x16xf32> to vector<16xf32>
    %277 = vector.shape_cast %276 : vector<16xf32> to vector<16x1xf32>
    %278 = tpu.reciprocal %277 {approx = true} : vector<16x1xf32> -> vector<16x1xf32>
    %279 = vector.broadcast %278 : vector<16x1xf32> to vector<16x16xf32>
    %280 = arith.mulf %275, %279 : vector<16x16xf32>
    %281 = arith.truncf %280 : vector<16x16xf32> to vector<16x16xbf16>
    %cst_104 = arith.constant dense<0.000000e+00> : vector<16x32xf32>
    %282 = tpu.matmul %281, %265, %cst_104 {dimension_numbers = #tpu.dot_dimension_numbers<[1], [0], [0], [1], [0, 0, 1, 1], [], []>} : vector<16x16xbf16>, vector<16x32xbf16>, vector<16x32xf32> -> vector<16x32xf32>
    %283 = arith.addf %252, %282 : vector<16x32xf32>
    %c24_i32_105 = arith.constant 24 : i32
    %284 = vector.broadcast %c24_i32_105 : i32 to vector<1x32xi32>
    %285 = arith.cmpi sge, %191, %284 : vector<1x32xi32>
    %c32_i32_106 = arith.constant 32 : i32
    %286 = vector.broadcast %c32_i32_106 : i32 to vector<1x32xi32>
    %287 = arith.cmpi slt, %191, %286 : vector<1x32xi32>
    %288 = arith.andi %285, %287 : vector<1x32xi1>
    %289 = arith.extui %288 : vector<1x32xi1> to vector<1x32xi32>
    %290 = arith.sitofp %289 : vector<1x32xi32> to vector<1x32xf32>
    %291 = vector.broadcast %290 : vector<1x32xf32> to vector<16x32xf32>
    %292 = arith.mulf %185, %291 : vector<16x32xf32>
    %293 = arith.truncf %292 : vector<16x32xf32> to vector<16x32xbf16>
    %294 = vector.broadcast %290 : vector<1x32xf32> to vector<16x32xf32>
    %295 = arith.mulf %190, %294 : vector<16x32xf32>
    %296 = arith.truncf %295 : vector<16x32xf32> to vector<16x32xbf16>
    %cst_107 = arith.constant dense<0.000000e+00> : vector<16x16xf32>
    %297 = tpu.matmul %293, %188, %cst_107 {dimension_numbers = #tpu.dot_dimension_numbers<[1], [1], [0], [0], [0, 0, 1, 0], [], []>} : vector<16x32xbf16>, vector<16x32xbf16>, vector<16x16xf32> -> vector<16x16xf32>
    %cst_108 = arith.constant 5.000000e-01 : f32
    %298 = vector.broadcast %cst_108 : f32 to vector<16x16xf32>
    %299 = arith.cmpf olt, %3, %298 : vector<16x16xf32>
    %cst_109 = arith.constant -1.000000e+20 : f32
    %300 = vector.broadcast %cst_109 : f32 to vector<16x16xf32>
    %301 = arith.select %299, %300, %297 : vector<16x16xi1>, vector<16x16xf32>
    %cst_110 = arith.constant dense<0xFF800000> : vector<16xf32>
    %302 = vector.multi_reduction <maximumf>, %301, %cst_110 [1] : vector<16x16xf32> to vector<16xf32>
    %303 = vector.shape_cast %302 : vector<16xf32> to vector<16x1xf32>
    %304 = vector.broadcast %303 : vector<16x1xf32> to vector<16x16xf32>
    %305 = arith.subf %301, %304 : vector<16x16xf32>
    %306 = math.exp %305 : vector<16x16xf32>
    %cst_111 = arith.constant dense<0.000000e+00> : vector<16xf32>
    %307 = vector.multi_reduction <add>, %306, %cst_111 [1] : vector<16x16xf32> to vector<16xf32>
    %308 = vector.shape_cast %307 : vector<16xf32> to vector<16x1xf32>
    %309 = tpu.reciprocal %308 {approx = true} : vector<16x1xf32> -> vector<16x1xf32>
    %310 = vector.broadcast %309 : vector<16x1xf32> to vector<16x16xf32>
    %311 = arith.mulf %306, %310 : vector<16x16xf32>
    %312 = arith.truncf %311 : vector<16x16xf32> to vector<16x16xbf16>
    %cst_112 = arith.constant dense<0.000000e+00> : vector<16x32xf32>
    %313 = tpu.matmul %312, %296, %cst_112 {dimension_numbers = #tpu.dot_dimension_numbers<[1], [0], [0], [1], [0, 0, 1, 1], [], []>} : vector<16x16xbf16>, vector<16x32xbf16>, vector<16x32xf32> -> vector<16x32xf32>
    %314 = arith.addf %283, %313 : vector<16x32xf32>
    %315 = arith.truncf %314 : vector<16x32xf32> to vector<16x32xbf16>
    %cst_113 = arith.constant dense<0.000000e+00> : vector<16x32xf32>
    %316 = tpu.matmul %315, %181, %cst_113 {dimension_numbers = #tpu.dot_dimension_numbers<[1], [0], [0], [1], [0, 0, 1, 1], [], []>} : vector<16x32xbf16>, vector<32x32xbf16>, vector<16x32xf32> -> vector<16x32xf32>
    %317 = vector.broadcast %183 : vector<1x32xf32> to vector<16x32xf32>
    %318 = arith.addf %316, %317 : vector<16x32xf32>
    %c0_114 = arith.constant 0 : index
    %c0_115 = arith.constant 0 : index
    %c0_116 = arith.constant 0 : index
    %319 = vector.load %arg16[%c0_114, %c0_115, %c0_116] : memref<2x1x32xf32, #tpu.memory_space<vmem>>, vector<1x1x32xf32>
    %320 = vector.shape_cast %319 : vector<1x1x32xf32> to vector<1x32xf32>
    %c0_117 = arith.constant 0 : index
    %c0_118 = arith.constant 0 : index
    %c0_119 = arith.constant 0 : index
    %321 = vector.load %arg17[%c0_117, %c0_118, %c0_119] : memref<2x1x32xf32, #tpu.memory_space<vmem>>, vector<1x1x32xf32>
    %322 = vector.shape_cast %321 : vector<1x1x32xf32> to vector<1x32xf32>
    %323 = arith.addf %318, %173 : vector<16x32xf32>
    %cst_120 = arith.constant dense<0.000000e+00> : vector<16xf32>
    %324 = vector.multi_reduction <add>, %323, %cst_120 [1] : vector<16x32xf32> to vector<16xf32>
    %325 = vector.shape_cast %324 : vector<16xf32> to vector<16x1xf32>
    %cst_121 = arith.constant 3.200000e+01 : f32
    %326 = vector.broadcast %cst_121 : f32 to vector<16x1xf32>
    %327 = arith.divf %325, %326 : vector<16x1xf32>
    %328 = vector.broadcast %327 : vector<16x1xf32> to vector<16x32xf32>
    %329 = arith.subf %323, %328 : vector<16x32xf32>
    %330 = arith.mulf %329, %329 : vector<16x32xf32>
    %cst_122 = arith.constant dense<0.000000e+00> : vector<16xf32>
    %331 = vector.multi_reduction <add>, %330, %cst_122 [1] : vector<16x32xf32> to vector<16xf32>
    %332 = vector.shape_cast %331 : vector<16xf32> to vector<16x1xf32>
    %cst_123 = arith.constant 3.200000e+01 : f32
    %333 = vector.broadcast %cst_123 : f32 to vector<16x1xf32>
    %334 = arith.divf %332, %333 : vector<16x1xf32>
    %cst_124 = arith.constant 9.99999974E-6 : f32
    %335 = vector.broadcast %cst_124 : f32 to vector<16x1xf32>
    %336 = arith.addf %334, %335 : vector<16x1xf32>
    %337 = math.rsqrt %336 : vector<16x1xf32>
    %338 = vector.broadcast %337 : vector<16x1xf32> to vector<16x32xf32>
    %339 = arith.mulf %329, %338 : vector<16x32xf32>
    %340 = vector.broadcast %320 : vector<1x32xf32> to vector<16x32xf32>
    %341 = arith.mulf %339, %340 : vector<16x32xf32>
    %342 = vector.broadcast %322 : vector<1x32xf32> to vector<16x32xf32>
    %343 = arith.addf %341, %342 : vector<16x32xf32>
    %344 = arith.truncf %343 : vector<16x32xf32> to vector<16x32xbf16>
    %c0_125 = arith.constant 0 : index
    %c0_126 = arith.constant 0 : index
    %c0_127 = arith.constant 0 : index
    %345 = vector.load %arg18[%c0_125, %c0_126, %c0_127] : memref<2x32x128xbf16, #tpu.memory_space<vmem>>, vector<1x32x128xbf16>
    %346 = vector.shape_cast %345 : vector<1x32x128xbf16> to vector<32x128xbf16>
    %cst_128 = arith.constant dense<0.000000e+00> : vector<16x128xf32>
    %347 = tpu.matmul %344, %346, %cst_128 {dimension_numbers = #tpu.dot_dimension_numbers<[1], [0], [0], [1], [0, 0, 1, 1], [], []>} : vector<16x32xbf16>, vector<32x128xbf16>, vector<16x128xf32> -> vector<16x128xf32>
    %c0_129 = arith.constant 0 : index
    %c0_130 = arith.constant 0 : index
    %c0_131 = arith.constant 0 : index
    %348 = vector.load %arg19[%c0_129, %c0_130, %c0_131] : memref<2x1x128xf32, #tpu.memory_space<vmem>>, vector<1x1x128xf32>
    %349 = vector.shape_cast %348 : vector<1x1x128xf32> to vector<1x128xf32>
    %350 = vector.broadcast %349 : vector<1x128xf32> to vector<16x128xf32>
    %351 = arith.addf %347, %350 : vector<16x128xf32>
    %cst_132 = arith.constant 0.000000e+00 : f32
    %352 = vector.broadcast %cst_132 : f32 to vector<16x128xf32>
    %353 = arith.maximumf %351, %352 : vector<16x128xf32>
    %354 = arith.truncf %353 : vector<16x128xf32> to vector<16x128xbf16>
    %c0_133 = arith.constant 0 : index
    %c0_134 = arith.constant 0 : index
    %c0_135 = arith.constant 0 : index
    %355 = vector.load %arg20[%c0_133, %c0_134, %c0_135] : memref<2x128x32xbf16, #tpu.memory_space<vmem>>, vector<1x128x32xbf16>
    %356 = vector.shape_cast %355 : vector<1x128x32xbf16> to vector<128x32xbf16>
    %cst_136 = arith.constant dense<0.000000e+00> : vector<16x32xf32>
    %357 = tpu.matmul %354, %356, %cst_136 {dimension_numbers = #tpu.dot_dimension_numbers<[1], [0], [0], [1], [0, 0, 1, 1], [], []>} : vector<16x128xbf16>, vector<128x32xbf16>, vector<16x32xf32> -> vector<16x32xf32>
    %c0_137 = arith.constant 0 : index
    %c0_138 = arith.constant 0 : index
    %c0_139 = arith.constant 0 : index
    %358 = vector.load %arg21[%c0_137, %c0_138, %c0_139] : memref<2x1x32xf32, #tpu.memory_space<vmem>>, vector<1x1x32xf32>
    %359 = vector.shape_cast %358 : vector<1x1x32xf32> to vector<1x32xf32>
    %360 = vector.broadcast %359 : vector<1x32xf32> to vector<16x32xf32>
    %361 = arith.addf %357, %360 : vector<16x32xf32>
    %c0_140 = arith.constant 0 : index
    %c0_141 = arith.constant 0 : index
    %c0_142 = arith.constant 0 : index
    %362 = vector.load %arg22[%c0_140, %c0_141, %c0_142] : memref<2x1x32xf32, #tpu.memory_space<vmem>>, vector<1x1x32xf32>
    %363 = vector.shape_cast %362 : vector<1x1x32xf32> to vector<1x32xf32>
    %c0_143 = arith.constant 0 : index
    %c0_144 = arith.constant 0 : index
    %c0_145 = arith.constant 0 : index
    %364 = vector.load %arg23[%c0_143, %c0_144, %c0_145] : memref<2x1x32xf32, #tpu.memory_space<vmem>>, vector<1x1x32xf32>
    %365 = vector.shape_cast %364 : vector<1x1x32xf32> to vector<1x32xf32>
    %366 = arith.addf %361, %343 : vector<16x32xf32>
    %cst_146 = arith.constant dense<0.000000e+00> : vector<16xf32>
    %367 = vector.multi_reduction <add>, %366, %cst_146 [1] : vector<16x32xf32> to vector<16xf32>
    %368 = vector.shape_cast %367 : vector<16xf32> to vector<16x1xf32>
    %cst_147 = arith.constant 3.200000e+01 : f32
    %369 = vector.broadcast %cst_147 : f32 to vector<16x1xf32>
    %370 = arith.divf %368, %369 : vector<16x1xf32>
    %371 = vector.broadcast %370 : vector<16x1xf32> to vector<16x32xf32>
    %372 = arith.subf %366, %371 : vector<16x32xf32>
    %373 = arith.mulf %372, %372 : vector<16x32xf32>
    %cst_148 = arith.constant dense<0.000000e+00> : vector<16xf32>
    %374 = vector.multi_reduction <add>, %373, %cst_148 [1] : vector<16x32xf32> to vector<16xf32>
    %375 = vector.shape_cast %374 : vector<16xf32> to vector<16x1xf32>
    %cst_149 = arith.constant 3.200000e+01 : f32
    %376 = vector.broadcast %cst_149 : f32 to vector<16x1xf32>
    %377 = arith.divf %375, %376 : vector<16x1xf32>
    %cst_150 = arith.constant 9.99999974E-6 : f32
    %378 = vector.broadcast %cst_150 : f32 to vector<16x1xf32>
    %379 = arith.addf %377, %378 : vector<16x1xf32>
    %380 = math.rsqrt %379 : vector<16x1xf32>
    %381 = vector.broadcast %380 : vector<16x1xf32> to vector<16x32xf32>
    %382 = arith.mulf %372, %381 : vector<16x32xf32>
    %383 = vector.broadcast %363 : vector<1x32xf32> to vector<16x32xf32>
    %384 = arith.mulf %382, %383 : vector<16x32xf32>
    %385 = vector.broadcast %365 : vector<1x32xf32> to vector<16x32xf32>
    %386 = arith.addf %384, %385 : vector<16x32xf32>
    %c1 = arith.constant 1 : index
    %c0_151 = arith.constant 0 : index
    %c0_152 = arith.constant 0 : index
    %387 = vector.load %arg4[%c1, %c0_151, %c0_152] : memref<2x32x32xbf16, #tpu.memory_space<vmem>>, vector<1x32x32xbf16>
    %388 = vector.shape_cast %387 : vector<1x32x32xbf16> to vector<32x32xbf16>
    %c1_153 = arith.constant 1 : index
    %c0_154 = arith.constant 0 : index
    %c0_155 = arith.constant 0 : index
    %389 = vector.load %arg5[%c1_153, %c0_154, %c0_155] : memref<2x32x32xbf16, #tpu.memory_space<vmem>>, vector<1x32x32xbf16>
    %390 = vector.shape_cast %389 : vector<1x32x32xbf16> to vector<32x32xbf16>
    %c1_156 = arith.constant 1 : index
    %c0_157 = arith.constant 0 : index
    %c0_158 = arith.constant 0 : index
    %391 = vector.load %arg6[%c1_156, %c0_157, %c0_158] : memref<2x32x32xbf16, #tpu.memory_space<vmem>>, vector<1x32x32xbf16>
    %392 = vector.shape_cast %391 : vector<1x32x32xbf16> to vector<32x32xbf16>
    %c1_159 = arith.constant 1 : index
    %c0_160 = arith.constant 0 : index
    %c0_161 = arith.constant 0 : index
    %393 = vector.load %arg7[%c1_159, %c0_160, %c0_161] : memref<2x32x32xbf16, #tpu.memory_space<vmem>>, vector<1x32x32xbf16>
    %394 = vector.shape_cast %393 : vector<1x32x32xbf16> to vector<32x32xbf16>
    %c1_162 = arith.constant 1 : index
    %c0_163 = arith.constant 0 : index
    %c0_164 = arith.constant 0 : index
    %395 = vector.load %arg8[%c1_162, %c0_163, %c0_164] : memref<2x1x32xf32, #tpu.memory_space<vmem>>, vector<1x1x32xf32>
    %396 = vector.shape_cast %395 : vector<1x1x32xf32> to vector<1x32xf32>
    %397 = arith.truncf %386 : vector<16x32xf32> to vector<16x32xbf16>
    %cst_165 = arith.constant dense<0.000000e+00> : vector<16x32xf32>
    %398 = tpu.matmul %397, %388, %cst_165 {dimension_numbers = #tpu.dot_dimension_numbers<[1], [0], [0], [1], [0, 0, 1, 1], [], []>} : vector<16x32xbf16>, vector<32x32xbf16>, vector<16x32xf32> -> vector<16x32xf32>
    %399 = arith.truncf %386 : vector<16x32xf32> to vector<16x32xbf16>
    %cst_166 = arith.constant dense<0.000000e+00> : vector<16x32xf32>
    %400 = tpu.matmul %399, %390, %cst_166 {dimension_numbers = #tpu.dot_dimension_numbers<[1], [0], [0], [1], [0, 0, 1, 1], [], []>} : vector<16x32xbf16>, vector<32x32xbf16>, vector<16x32xf32> -> vector<16x32xf32>
    %401 = arith.truncf %400 : vector<16x32xf32> to vector<16x32xbf16>
    %402 = arith.truncf %386 : vector<16x32xf32> to vector<16x32xbf16>
    %cst_167 = arith.constant dense<0.000000e+00> : vector<16x32xf32>
    %403 = tpu.matmul %402, %392, %cst_167 {dimension_numbers = #tpu.dot_dimension_numbers<[1], [0], [0], [1], [0, 0, 1, 1], [], []>} : vector<16x32xbf16>, vector<32x32xbf16>, vector<16x32xf32> -> vector<16x32xf32>
    %404 = tpu.iota {dimensions = array<i32: 1>} : vector<1x32xi32>
    %c0_i32_168 = arith.constant 0 : i32
    %405 = vector.broadcast %c0_i32_168 : i32 to vector<1x32xi32>
    %406 = arith.cmpi sge, %404, %405 : vector<1x32xi32>
    %c8_i32_169 = arith.constant 8 : i32
    %407 = vector.broadcast %c8_i32_169 : i32 to vector<1x32xi32>
    %408 = arith.cmpi slt, %404, %407 : vector<1x32xi32>
    %409 = arith.andi %406, %408 : vector<1x32xi1>
    %410 = arith.extui %409 : vector<1x32xi1> to vector<1x32xi32>
    %411 = arith.sitofp %410 : vector<1x32xi32> to vector<1x32xf32>
    %412 = vector.broadcast %411 : vector<1x32xf32> to vector<16x32xf32>
    %413 = arith.mulf %398, %412 : vector<16x32xf32>
    %414 = arith.truncf %413 : vector<16x32xf32> to vector<16x32xbf16>
    %415 = vector.broadcast %411 : vector<1x32xf32> to vector<16x32xf32>
    %416 = arith.mulf %403, %415 : vector<16x32xf32>
    %417 = arith.truncf %416 : vector<16x32xf32> to vector<16x32xbf16>
    %cst_170 = arith.constant dense<0.000000e+00> : vector<16x16xf32>
    %418 = tpu.matmul %414, %401, %cst_170 {dimension_numbers = #tpu.dot_dimension_numbers<[1], [1], [0], [0], [0, 0, 1, 0], [], []>} : vector<16x32xbf16>, vector<16x32xbf16>, vector<16x16xf32> -> vector<16x16xf32>
    %cst_171 = arith.constant 5.000000e-01 : f32
    %419 = vector.broadcast %cst_171 : f32 to vector<16x16xf32>
    %420 = arith.cmpf olt, %2, %419 : vector<16x16xf32>
    %cst_172 = arith.constant -1.000000e+20 : f32
    %421 = vector.broadcast %cst_172 : f32 to vector<16x16xf32>
    %422 = arith.select %420, %421, %418 : vector<16x16xi1>, vector<16x16xf32>
    %cst_173 = arith.constant dense<0xFF800000> : vector<16xf32>
    %423 = vector.multi_reduction <maximumf>, %422, %cst_173 [1] : vector<16x16xf32> to vector<16xf32>
    %424 = vector.shape_cast %423 : vector<16xf32> to vector<16x1xf32>
    %425 = vector.broadcast %424 : vector<16x1xf32> to vector<16x16xf32>
    %426 = arith.subf %422, %425 : vector<16x16xf32>
    %427 = math.exp %426 : vector<16x16xf32>
    %cst_174 = arith.constant dense<0.000000e+00> : vector<16xf32>
    %428 = vector.multi_reduction <add>, %427, %cst_174 [1] : vector<16x16xf32> to vector<16xf32>
    %429 = vector.shape_cast %428 : vector<16xf32> to vector<16x1xf32>
    %430 = tpu.reciprocal %429 {approx = true} : vector<16x1xf32> -> vector<16x1xf32>
    %431 = vector.broadcast %430 : vector<16x1xf32> to vector<16x16xf32>
    %432 = arith.mulf %427, %431 : vector<16x16xf32>
    %433 = arith.truncf %432 : vector<16x16xf32> to vector<16x16xbf16>
    %cst_175 = arith.constant dense<0.000000e+00> : vector<16x32xf32>
    %434 = tpu.matmul %433, %417, %cst_175 {dimension_numbers = #tpu.dot_dimension_numbers<[1], [0], [0], [1], [0, 0, 1, 1], [], []>} : vector<16x16xbf16>, vector<16x32xbf16>, vector<16x32xf32> -> vector<16x32xf32>
    %c8_i32_176 = arith.constant 8 : i32
    %435 = vector.broadcast %c8_i32_176 : i32 to vector<1x32xi32>
    %436 = arith.cmpi sge, %404, %435 : vector<1x32xi32>
    %c16_i32_177 = arith.constant 16 : i32
    %437 = vector.broadcast %c16_i32_177 : i32 to vector<1x32xi32>
    %438 = arith.cmpi slt, %404, %437 : vector<1x32xi32>
    %439 = arith.andi %436, %438 : vector<1x32xi1>
    %440 = arith.extui %439 : vector<1x32xi1> to vector<1x32xi32>
    %441 = arith.sitofp %440 : vector<1x32xi32> to vector<1x32xf32>
    %442 = vector.broadcast %441 : vector<1x32xf32> to vector<16x32xf32>
    %443 = arith.mulf %398, %442 : vector<16x32xf32>
    %444 = arith.truncf %443 : vector<16x32xf32> to vector<16x32xbf16>
    %445 = vector.broadcast %441 : vector<1x32xf32> to vector<16x32xf32>
    %446 = arith.mulf %403, %445 : vector<16x32xf32>
    %447 = arith.truncf %446 : vector<16x32xf32> to vector<16x32xbf16>
    %cst_178 = arith.constant dense<0.000000e+00> : vector<16x16xf32>
    %448 = tpu.matmul %444, %401, %cst_178 {dimension_numbers = #tpu.dot_dimension_numbers<[1], [1], [0], [0], [0, 0, 1, 0], [], []>} : vector<16x32xbf16>, vector<16x32xbf16>, vector<16x16xf32> -> vector<16x16xf32>
    %cst_179 = arith.constant 5.000000e-01 : f32
    %449 = vector.broadcast %cst_179 : f32 to vector<16x16xf32>
    %450 = arith.cmpf olt, %2, %449 : vector<16x16xf32>
    %cst_180 = arith.constant -1.000000e+20 : f32
    %451 = vector.broadcast %cst_180 : f32 to vector<16x16xf32>
    %452 = arith.select %450, %451, %448 : vector<16x16xi1>, vector<16x16xf32>
    %cst_181 = arith.constant dense<0xFF800000> : vector<16xf32>
    %453 = vector.multi_reduction <maximumf>, %452, %cst_181 [1] : vector<16x16xf32> to vector<16xf32>
    %454 = vector.shape_cast %453 : vector<16xf32> to vector<16x1xf32>
    %455 = vector.broadcast %454 : vector<16x1xf32> to vector<16x16xf32>
    %456 = arith.subf %452, %455 : vector<16x16xf32>
    %457 = math.exp %456 : vector<16x16xf32>
    %cst_182 = arith.constant dense<0.000000e+00> : vector<16xf32>
    %458 = vector.multi_reduction <add>, %457, %cst_182 [1] : vector<16x16xf32> to vector<16xf32>
    %459 = vector.shape_cast %458 : vector<16xf32> to vector<16x1xf32>
    %460 = tpu.reciprocal %459 {approx = true} : vector<16x1xf32> -> vector<16x1xf32>
    %461 = vector.broadcast %460 : vector<16x1xf32> to vector<16x16xf32>
    %462 = arith.mulf %457, %461 : vector<16x16xf32>
    %463 = arith.truncf %462 : vector<16x16xf32> to vector<16x16xbf16>
    %cst_183 = arith.constant dense<0.000000e+00> : vector<16x32xf32>
    %464 = tpu.matmul %463, %447, %cst_183 {dimension_numbers = #tpu.dot_dimension_numbers<[1], [0], [0], [1], [0, 0, 1, 1], [], []>} : vector<16x16xbf16>, vector<16x32xbf16>, vector<16x32xf32> -> vector<16x32xf32>
    %465 = arith.addf %434, %464 : vector<16x32xf32>
    %c16_i32_184 = arith.constant 16 : i32
    %466 = vector.broadcast %c16_i32_184 : i32 to vector<1x32xi32>
    %467 = arith.cmpi sge, %404, %466 : vector<1x32xi32>
    %c24_i32_185 = arith.constant 24 : i32
    %468 = vector.broadcast %c24_i32_185 : i32 to vector<1x32xi32>
    %469 = arith.cmpi slt, %404, %468 : vector<1x32xi32>
    %470 = arith.andi %467, %469 : vector<1x32xi1>
    %471 = arith.extui %470 : vector<1x32xi1> to vector<1x32xi32>
    %472 = arith.sitofp %471 : vector<1x32xi32> to vector<1x32xf32>
    %473 = vector.broadcast %472 : vector<1x32xf32> to vector<16x32xf32>
    %474 = arith.mulf %398, %473 : vector<16x32xf32>
    %475 = arith.truncf %474 : vector<16x32xf32> to vector<16x32xbf16>
    %476 = vector.broadcast %472 : vector<1x32xf32> to vector<16x32xf32>
    %477 = arith.mulf %403, %476 : vector<16x32xf32>
    %478 = arith.truncf %477 : vector<16x32xf32> to vector<16x32xbf16>
    %cst_186 = arith.constant dense<0.000000e+00> : vector<16x16xf32>
    %479 = tpu.matmul %475, %401, %cst_186 {dimension_numbers = #tpu.dot_dimension_numbers<[1], [1], [0], [0], [0, 0, 1, 0], [], []>} : vector<16x32xbf16>, vector<16x32xbf16>, vector<16x16xf32> -> vector<16x16xf32>
    %cst_187 = arith.constant 5.000000e-01 : f32
    %480 = vector.broadcast %cst_187 : f32 to vector<16x16xf32>
    %481 = arith.cmpf olt, %2, %480 : vector<16x16xf32>
    %cst_188 = arith.constant -1.000000e+20 : f32
    %482 = vector.broadcast %cst_188 : f32 to vector<16x16xf32>
    %483 = arith.select %481, %482, %479 : vector<16x16xi1>, vector<16x16xf32>
    %cst_189 = arith.constant dense<0xFF800000> : vector<16xf32>
    %484 = vector.multi_reduction <maximumf>, %483, %cst_189 [1] : vector<16x16xf32> to vector<16xf32>
    %485 = vector.shape_cast %484 : vector<16xf32> to vector<16x1xf32>
    %486 = vector.broadcast %485 : vector<16x1xf32> to vector<16x16xf32>
    %487 = arith.subf %483, %486 : vector<16x16xf32>
    %488 = math.exp %487 : vector<16x16xf32>
    %cst_190 = arith.constant dense<0.000000e+00> : vector<16xf32>
    %489 = vector.multi_reduction <add>, %488, %cst_190 [1] : vector<16x16xf32> to vector<16xf32>
    %490 = vector.shape_cast %489 : vector<16xf32> to vector<16x1xf32>
    %491 = tpu.reciprocal %490 {approx = true} : vector<16x1xf32> -> vector<16x1xf32>
    %492 = vector.broadcast %491 : vector<16x1xf32> to vector<16x16xf32>
    %493 = arith.mulf %488, %492 : vector<16x16xf32>
    %494 = arith.truncf %493 : vector<16x16xf32> to vector<16x16xbf16>
    %cst_191 = arith.constant dense<0.000000e+00> : vector<16x32xf32>
    %495 = tpu.matmul %494, %478, %cst_191 {dimension_numbers = #tpu.dot_dimension_numbers<[1], [0], [0], [1], [0, 0, 1, 1], [], []>} : vector<16x16xbf16>, vector<16x32xbf16>, vector<16x32xf32> -> vector<16x32xf32>
    %496 = arith.addf %465, %495 : vector<16x32xf32>
    %c24_i32_192 = arith.constant 24 : i32
    %497 = vector.broadcast %c24_i32_192 : i32 to vector<1x32xi32>
    %498 = arith.cmpi sge, %404, %497 : vector<1x32xi32>
    %c32_i32_193 = arith.constant 32 : i32
    %499 = vector.broadcast %c32_i32_193 : i32 to vector<1x32xi32>
    %500 = arith.cmpi slt, %404, %499 : vector<1x32xi32>
    %501 = arith.andi %498, %500 : vector<1x32xi1>
    %502 = arith.extui %501 : vector<1x32xi1> to vector<1x32xi32>
    %503 = arith.sitofp %502 : vector<1x32xi32> to vector<1x32xf32>
    %504 = vector.broadcast %503 : vector<1x32xf32> to vector<16x32xf32>
    %505 = arith.mulf %398, %504 : vector<16x32xf32>
    %506 = arith.truncf %505 : vector<16x32xf32> to vector<16x32xbf16>
    %507 = vector.broadcast %503 : vector<1x32xf32> to vector<16x32xf32>
    %508 = arith.mulf %403, %507 : vector<16x32xf32>
    %509 = arith.truncf %508 : vector<16x32xf32> to vector<16x32xbf16>
    %cst_194 = arith.constant dense<0.000000e+00> : vector<16x16xf32>
    %510 = tpu.matmul %506, %401, %cst_194 {dimension_numbers = #tpu.dot_dimension_numbers<[1], [1], [0], [0], [0, 0, 1, 0], [], []>} : vector<16x32xbf16>, vector<16x32xbf16>, vector<16x16xf32> -> vector<16x16xf32>
    %cst_195 = arith.constant 5.000000e-01 : f32
    %511 = vector.broadcast %cst_195 : f32 to vector<16x16xf32>
    %512 = arith.cmpf olt, %2, %511 : vector<16x16xf32>
    %cst_196 = arith.constant -1.000000e+20 : f32
    %513 = vector.broadcast %cst_196 : f32 to vector<16x16xf32>
    %514 = arith.select %512, %513, %510 : vector<16x16xi1>, vector<16x16xf32>
    %cst_197 = arith.constant dense<0xFF800000> : vector<16xf32>
    %515 = vector.multi_reduction <maximumf>, %514, %cst_197 [1] : vector<16x16xf32> to vector<16xf32>
    %516 = vector.shape_cast %515 : vector<16xf32> to vector<16x1xf32>
    %517 = vector.broadcast %516 : vector<16x1xf32> to vector<16x16xf32>
    %518 = arith.subf %514, %517 : vector<16x16xf32>
    %519 = math.exp %518 : vector<16x16xf32>
    %cst_198 = arith.constant dense<0.000000e+00> : vector<16xf32>
    %520 = vector.multi_reduction <add>, %519, %cst_198 [1] : vector<16x16xf32> to vector<16xf32>
    %521 = vector.shape_cast %520 : vector<16xf32> to vector<16x1xf32>
    %522 = tpu.reciprocal %521 {approx = true} : vector<16x1xf32> -> vector<16x1xf32>
    %523 = vector.broadcast %522 : vector<16x1xf32> to vector<16x16xf32>
    %524 = arith.mulf %519, %523 : vector<16x16xf32>
    %525 = arith.truncf %524 : vector<16x16xf32> to vector<16x16xbf16>
    %cst_199 = arith.constant dense<0.000000e+00> : vector<16x32xf32>
    %526 = tpu.matmul %525, %509, %cst_199 {dimension_numbers = #tpu.dot_dimension_numbers<[1], [0], [0], [1], [0, 0, 1, 1], [], []>} : vector<16x16xbf16>, vector<16x32xbf16>, vector<16x32xf32> -> vector<16x32xf32>
    %527 = arith.addf %496, %526 : vector<16x32xf32>
    %528 = arith.truncf %527 : vector<16x32xf32> to vector<16x32xbf16>
    %cst_200 = arith.constant dense<0.000000e+00> : vector<16x32xf32>
    %529 = tpu.matmul %528, %394, %cst_200 {dimension_numbers = #tpu.dot_dimension_numbers<[1], [0], [0], [1], [0, 0, 1, 1], [], []>} : vector<16x32xbf16>, vector<32x32xbf16>, vector<16x32xf32> -> vector<16x32xf32>
    %530 = vector.broadcast %396 : vector<1x32xf32> to vector<16x32xf32>
    %531 = arith.addf %529, %530 : vector<16x32xf32>
    %c1_201 = arith.constant 1 : index
    %c0_202 = arith.constant 0 : index
    %c0_203 = arith.constant 0 : index
    %532 = vector.load %arg9[%c1_201, %c0_202, %c0_203] : memref<2x1x32xf32, #tpu.memory_space<vmem>>, vector<1x1x32xf32>
    %533 = vector.shape_cast %532 : vector<1x1x32xf32> to vector<1x32xf32>
    %c1_204 = arith.constant 1 : index
    %c0_205 = arith.constant 0 : index
    %c0_206 = arith.constant 0 : index
    %534 = vector.load %arg10[%c1_204, %c0_205, %c0_206] : memref<2x1x32xf32, #tpu.memory_space<vmem>>, vector<1x1x32xf32>
    %535 = vector.shape_cast %534 : vector<1x1x32xf32> to vector<1x32xf32>
    %536 = arith.addf %531, %386 : vector<16x32xf32>
    %cst_207 = arith.constant dense<0.000000e+00> : vector<16xf32>
    %537 = vector.multi_reduction <add>, %536, %cst_207 [1] : vector<16x32xf32> to vector<16xf32>
    %538 = vector.shape_cast %537 : vector<16xf32> to vector<16x1xf32>
    %cst_208 = arith.constant 3.200000e+01 : f32
    %539 = vector.broadcast %cst_208 : f32 to vector<16x1xf32>
    %540 = arith.divf %538, %539 : vector<16x1xf32>
    %541 = vector.broadcast %540 : vector<16x1xf32> to vector<16x32xf32>
    %542 = arith.subf %536, %541 : vector<16x32xf32>
    %543 = arith.mulf %542, %542 : vector<16x32xf32>
    %cst_209 = arith.constant dense<0.000000e+00> : vector<16xf32>
    %544 = vector.multi_reduction <add>, %543, %cst_209 [1] : vector<16x32xf32> to vector<16xf32>
    %545 = vector.shape_cast %544 : vector<16xf32> to vector<16x1xf32>
    %cst_210 = arith.constant 3.200000e+01 : f32
    %546 = vector.broadcast %cst_210 : f32 to vector<16x1xf32>
    %547 = arith.divf %545, %546 : vector<16x1xf32>
    %cst_211 = arith.constant 9.99999974E-6 : f32
    %548 = vector.broadcast %cst_211 : f32 to vector<16x1xf32>
    %549 = arith.addf %547, %548 : vector<16x1xf32>
    %550 = math.rsqrt %549 : vector<16x1xf32>
    %551 = vector.broadcast %550 : vector<16x1xf32> to vector<16x32xf32>
    %552 = arith.mulf %542, %551 : vector<16x32xf32>
    %553 = vector.broadcast %533 : vector<1x32xf32> to vector<16x32xf32>
    %554 = arith.mulf %552, %553 : vector<16x32xf32>
    %555 = vector.broadcast %535 : vector<1x32xf32> to vector<16x32xf32>
    %556 = arith.addf %554, %555 : vector<16x32xf32>
    %c1_212 = arith.constant 1 : index
    %c0_213 = arith.constant 0 : index
    %c0_214 = arith.constant 0 : index
    %557 = vector.load %arg11[%c1_212, %c0_213, %c0_214] : memref<2x32x32xbf16, #tpu.memory_space<vmem>>, vector<1x32x32xbf16>
    %558 = vector.shape_cast %557 : vector<1x32x32xbf16> to vector<32x32xbf16>
    %c1_215 = arith.constant 1 : index
    %c0_216 = arith.constant 0 : index
    %c0_217 = arith.constant 0 : index
    %559 = vector.load %arg12[%c1_215, %c0_216, %c0_217] : memref<2x32x32xbf16, #tpu.memory_space<vmem>>, vector<1x32x32xbf16>
    %560 = vector.shape_cast %559 : vector<1x32x32xbf16> to vector<32x32xbf16>
    %c1_218 = arith.constant 1 : index
    %c0_219 = arith.constant 0 : index
    %c0_220 = arith.constant 0 : index
    %561 = vector.load %arg13[%c1_218, %c0_219, %c0_220] : memref<2x32x32xbf16, #tpu.memory_space<vmem>>, vector<1x32x32xbf16>
    %562 = vector.shape_cast %561 : vector<1x32x32xbf16> to vector<32x32xbf16>
    %c1_221 = arith.constant 1 : index
    %c0_222 = arith.constant 0 : index
    %c0_223 = arith.constant 0 : index
    %563 = vector.load %arg14[%c1_221, %c0_222, %c0_223] : memref<2x32x32xbf16, #tpu.memory_space<vmem>>, vector<1x32x32xbf16>
    %564 = vector.shape_cast %563 : vector<1x32x32xbf16> to vector<32x32xbf16>
    %c1_224 = arith.constant 1 : index
    %c0_225 = arith.constant 0 : index
    %c0_226 = arith.constant 0 : index
    %565 = vector.load %arg15[%c1_224, %c0_225, %c0_226] : memref<2x1x32xf32, #tpu.memory_space<vmem>>, vector<1x1x32xf32>
    %566 = vector.shape_cast %565 : vector<1x1x32xf32> to vector<1x32xf32>
    %567 = arith.truncf %556 : vector<16x32xf32> to vector<16x32xbf16>
    %cst_227 = arith.constant dense<0.000000e+00> : vector<16x32xf32>
    %568 = tpu.matmul %567, %558, %cst_227 {dimension_numbers = #tpu.dot_dimension_numbers<[1], [0], [0], [1], [0, 0, 1, 1], [], []>} : vector<16x32xbf16>, vector<32x32xbf16>, vector<16x32xf32> -> vector<16x32xf32>
    %569 = arith.truncf %1 : vector<16x32xf32> to vector<16x32xbf16>
    %cst_228 = arith.constant dense<0.000000e+00> : vector<16x32xf32>
    %570 = tpu.matmul %569, %560, %cst_228 {dimension_numbers = #tpu.dot_dimension_numbers<[1], [0], [0], [1], [0, 0, 1, 1], [], []>} : vector<16x32xbf16>, vector<32x32xbf16>, vector<16x32xf32> -> vector<16x32xf32>
    %571 = arith.truncf %570 : vector<16x32xf32> to vector<16x32xbf16>
    %572 = arith.truncf %1 : vector<16x32xf32> to vector<16x32xbf16>
    %cst_229 = arith.constant dense<0.000000e+00> : vector<16x32xf32>
    %573 = tpu.matmul %572, %562, %cst_229 {dimension_numbers = #tpu.dot_dimension_numbers<[1], [0], [0], [1], [0, 0, 1, 1], [], []>} : vector<16x32xbf16>, vector<32x32xbf16>, vector<16x32xf32> -> vector<16x32xf32>
    %574 = tpu.iota {dimensions = array<i32: 1>} : vector<1x32xi32>
    %c0_i32_230 = arith.constant 0 : i32
    %575 = vector.broadcast %c0_i32_230 : i32 to vector<1x32xi32>
    %576 = arith.cmpi sge, %574, %575 : vector<1x32xi32>
    %c8_i32_231 = arith.constant 8 : i32
    %577 = vector.broadcast %c8_i32_231 : i32 to vector<1x32xi32>
    %578 = arith.cmpi slt, %574, %577 : vector<1x32xi32>
    %579 = arith.andi %576, %578 : vector<1x32xi1>
    %580 = arith.extui %579 : vector<1x32xi1> to vector<1x32xi32>
    %581 = arith.sitofp %580 : vector<1x32xi32> to vector<1x32xf32>
    %582 = vector.broadcast %581 : vector<1x32xf32> to vector<16x32xf32>
    %583 = arith.mulf %568, %582 : vector<16x32xf32>
    %584 = arith.truncf %583 : vector<16x32xf32> to vector<16x32xbf16>
    %585 = vector.broadcast %581 : vector<1x32xf32> to vector<16x32xf32>
    %586 = arith.mulf %573, %585 : vector<16x32xf32>
    %587 = arith.truncf %586 : vector<16x32xf32> to vector<16x32xbf16>
    %cst_232 = arith.constant dense<0.000000e+00> : vector<16x16xf32>
    %588 = tpu.matmul %584, %571, %cst_232 {dimension_numbers = #tpu.dot_dimension_numbers<[1], [1], [0], [0], [0, 0, 1, 0], [], []>} : vector<16x32xbf16>, vector<16x32xbf16>, vector<16x16xf32> -> vector<16x16xf32>
    %cst_233 = arith.constant 5.000000e-01 : f32
    %589 = vector.broadcast %cst_233 : f32 to vector<16x16xf32>
    %590 = arith.cmpf olt, %3, %589 : vector<16x16xf32>
    %cst_234 = arith.constant -1.000000e+20 : f32
    %591 = vector.broadcast %cst_234 : f32 to vector<16x16xf32>
    %592 = arith.select %590, %591, %588 : vector<16x16xi1>, vector<16x16xf32>
    %cst_235 = arith.constant dense<0xFF800000> : vector<16xf32>
    %593 = vector.multi_reduction <maximumf>, %592, %cst_235 [1] : vector<16x16xf32> to vector<16xf32>
    %594 = vector.shape_cast %593 : vector<16xf32> to vector<16x1xf32>
    %595 = vector.broadcast %594 : vector<16x1xf32> to vector<16x16xf32>
    %596 = arith.subf %592, %595 : vector<16x16xf32>
    %597 = math.exp %596 : vector<16x16xf32>
    %cst_236 = arith.constant dense<0.000000e+00> : vector<16xf32>
    %598 = vector.multi_reduction <add>, %597, %cst_236 [1] : vector<16x16xf32> to vector<16xf32>
    %599 = vector.shape_cast %598 : vector<16xf32> to vector<16x1xf32>
    %600 = tpu.reciprocal %599 {approx = true} : vector<16x1xf32> -> vector<16x1xf32>
    %601 = vector.broadcast %600 : vector<16x1xf32> to vector<16x16xf32>
    %602 = arith.mulf %597, %601 : vector<16x16xf32>
    %603 = arith.truncf %602 : vector<16x16xf32> to vector<16x16xbf16>
    %cst_237 = arith.constant dense<0.000000e+00> : vector<16x32xf32>
    %604 = tpu.matmul %603, %587, %cst_237 {dimension_numbers = #tpu.dot_dimension_numbers<[1], [0], [0], [1], [0, 0, 1, 1], [], []>} : vector<16x16xbf16>, vector<16x32xbf16>, vector<16x32xf32> -> vector<16x32xf32>
    %c8_i32_238 = arith.constant 8 : i32
    %605 = vector.broadcast %c8_i32_238 : i32 to vector<1x32xi32>
    %606 = arith.cmpi sge, %574, %605 : vector<1x32xi32>
    %c16_i32_239 = arith.constant 16 : i32
    %607 = vector.broadcast %c16_i32_239 : i32 to vector<1x32xi32>
    %608 = arith.cmpi slt, %574, %607 : vector<1x32xi32>
    %609 = arith.andi %606, %608 : vector<1x32xi1>
    %610 = arith.extui %609 : vector<1x32xi1> to vector<1x32xi32>
    %611 = arith.sitofp %610 : vector<1x32xi32> to vector<1x32xf32>
    %612 = vector.broadcast %611 : vector<1x32xf32> to vector<16x32xf32>
    %613 = arith.mulf %568, %612 : vector<16x32xf32>
    %614 = arith.truncf %613 : vector<16x32xf32> to vector<16x32xbf16>
    %615 = vector.broadcast %611 : vector<1x32xf32> to vector<16x32xf32>
    %616 = arith.mulf %573, %615 : vector<16x32xf32>
    %617 = arith.truncf %616 : vector<16x32xf32> to vector<16x32xbf16>
    %cst_240 = arith.constant dense<0.000000e+00> : vector<16x16xf32>
    %618 = tpu.matmul %614, %571, %cst_240 {dimension_numbers = #tpu.dot_dimension_numbers<[1], [1], [0], [0], [0, 0, 1, 0], [], []>} : vector<16x32xbf16>, vector<16x32xbf16>, vector<16x16xf32> -> vector<16x16xf32>
    %cst_241 = arith.constant 5.000000e-01 : f32
    %619 = vector.broadcast %cst_241 : f32 to vector<16x16xf32>
    %620 = arith.cmpf olt, %3, %619 : vector<16x16xf32>
    %cst_242 = arith.constant -1.000000e+20 : f32
    %621 = vector.broadcast %cst_242 : f32 to vector<16x16xf32>
    %622 = arith.select %620, %621, %618 : vector<16x16xi1>, vector<16x16xf32>
    %cst_243 = arith.constant dense<0xFF800000> : vector<16xf32>
    %623 = vector.multi_reduction <maximumf>, %622, %cst_243 [1] : vector<16x16xf32> to vector<16xf32>
    %624 = vector.shape_cast %623 : vector<16xf32> to vector<16x1xf32>
    %625 = vector.broadcast %624 : vector<16x1xf32> to vector<16x16xf32>
    %626 = arith.subf %622, %625 : vector<16x16xf32>
    %627 = math.exp %626 : vector<16x16xf32>
    %cst_244 = arith.constant dense<0.000000e+00> : vector<16xf32>
    %628 = vector.multi_reduction <add>, %627, %cst_244 [1] : vector<16x16xf32> to vector<16xf32>
    %629 = vector.shape_cast %628 : vector<16xf32> to vector<16x1xf32>
    %630 = tpu.reciprocal %629 {approx = true} : vector<16x1xf32> -> vector<16x1xf32>
    %631 = vector.broadcast %630 : vector<16x1xf32> to vector<16x16xf32>
    %632 = arith.mulf %627, %631 : vector<16x16xf32>
    %633 = arith.truncf %632 : vector<16x16xf32> to vector<16x16xbf16>
    %cst_245 = arith.constant dense<0.000000e+00> : vector<16x32xf32>
    %634 = tpu.matmul %633, %617, %cst_245 {dimension_numbers = #tpu.dot_dimension_numbers<[1], [0], [0], [1], [0, 0, 1, 1], [], []>} : vector<16x16xbf16>, vector<16x32xbf16>, vector<16x32xf32> -> vector<16x32xf32>
    %635 = arith.addf %604, %634 : vector<16x32xf32>
    %c16_i32_246 = arith.constant 16 : i32
    %636 = vector.broadcast %c16_i32_246 : i32 to vector<1x32xi32>
    %637 = arith.cmpi sge, %574, %636 : vector<1x32xi32>
    %c24_i32_247 = arith.constant 24 : i32
    %638 = vector.broadcast %c24_i32_247 : i32 to vector<1x32xi32>
    %639 = arith.cmpi slt, %574, %638 : vector<1x32xi32>
    %640 = arith.andi %637, %639 : vector<1x32xi1>
    %641 = arith.extui %640 : vector<1x32xi1> to vector<1x32xi32>
    %642 = arith.sitofp %641 : vector<1x32xi32> to vector<1x32xf32>
    %643 = vector.broadcast %642 : vector<1x32xf32> to vector<16x32xf32>
    %644 = arith.mulf %568, %643 : vector<16x32xf32>
    %645 = arith.truncf %644 : vector<16x32xf32> to vector<16x32xbf16>
    %646 = vector.broadcast %642 : vector<1x32xf32> to vector<16x32xf32>
    %647 = arith.mulf %573, %646 : vector<16x32xf32>
    %648 = arith.truncf %647 : vector<16x32xf32> to vector<16x32xbf16>
    %cst_248 = arith.constant dense<0.000000e+00> : vector<16x16xf32>
    %649 = tpu.matmul %645, %571, %cst_248 {dimension_numbers = #tpu.dot_dimension_numbers<[1], [1], [0], [0], [0, 0, 1, 0], [], []>} : vector<16x32xbf16>, vector<16x32xbf16>, vector<16x16xf32> -> vector<16x16xf32>
    %cst_249 = arith.constant 5.000000e-01 : f32
    %650 = vector.broadcast %cst_249 : f32 to vector<16x16xf32>
    %651 = arith.cmpf olt, %3, %650 : vector<16x16xf32>
    %cst_250 = arith.constant -1.000000e+20 : f32
    %652 = vector.broadcast %cst_250 : f32 to vector<16x16xf32>
    %653 = arith.select %651, %652, %649 : vector<16x16xi1>, vector<16x16xf32>
    %cst_251 = arith.constant dense<0xFF800000> : vector<16xf32>
    %654 = vector.multi_reduction <maximumf>, %653, %cst_251 [1] : vector<16x16xf32> to vector<16xf32>
    %655 = vector.shape_cast %654 : vector<16xf32> to vector<16x1xf32>
    %656 = vector.broadcast %655 : vector<16x1xf32> to vector<16x16xf32>
    %657 = arith.subf %653, %656 : vector<16x16xf32>
    %658 = math.exp %657 : vector<16x16xf32>
    %cst_252 = arith.constant dense<0.000000e+00> : vector<16xf32>
    %659 = vector.multi_reduction <add>, %658, %cst_252 [1] : vector<16x16xf32> to vector<16xf32>
    %660 = vector.shape_cast %659 : vector<16xf32> to vector<16x1xf32>
    %661 = tpu.reciprocal %660 {approx = true} : vector<16x1xf32> -> vector<16x1xf32>
    %662 = vector.broadcast %661 : vector<16x1xf32> to vector<16x16xf32>
    %663 = arith.mulf %658, %662 : vector<16x16xf32>
    %664 = arith.truncf %663 : vector<16x16xf32> to vector<16x16xbf16>
    %cst_253 = arith.constant dense<0.000000e+00> : vector<16x32xf32>
    %665 = tpu.matmul %664, %648, %cst_253 {dimension_numbers = #tpu.dot_dimension_numbers<[1], [0], [0], [1], [0, 0, 1, 1], [], []>} : vector<16x16xbf16>, vector<16x32xbf16>, vector<16x32xf32> -> vector<16x32xf32>
    %666 = arith.addf %635, %665 : vector<16x32xf32>
    %c24_i32_254 = arith.constant 24 : i32
    %667 = vector.broadcast %c24_i32_254 : i32 to vector<1x32xi32>
    %668 = arith.cmpi sge, %574, %667 : vector<1x32xi32>
    %c32_i32_255 = arith.constant 32 : i32
    %669 = vector.broadcast %c32_i32_255 : i32 to vector<1x32xi32>
    %670 = arith.cmpi slt, %574, %669 : vector<1x32xi32>
    %671 = arith.andi %668, %670 : vector<1x32xi1>
    %672 = arith.extui %671 : vector<1x32xi1> to vector<1x32xi32>
    %673 = arith.sitofp %672 : vector<1x32xi32> to vector<1x32xf32>
    %674 = vector.broadcast %673 : vector<1x32xf32> to vector<16x32xf32>
    %675 = arith.mulf %568, %674 : vector<16x32xf32>
    %676 = arith.truncf %675 : vector<16x32xf32> to vector<16x32xbf16>
    %677 = vector.broadcast %673 : vector<1x32xf32> to vector<16x32xf32>
    %678 = arith.mulf %573, %677 : vector<16x32xf32>
    %679 = arith.truncf %678 : vector<16x32xf32> to vector<16x32xbf16>
    %cst_256 = arith.constant dense<0.000000e+00> : vector<16x16xf32>
    %680 = tpu.matmul %676, %571, %cst_256 {dimension_numbers = #tpu.dot_dimension_numbers<[1], [1], [0], [0], [0, 0, 1, 0], [], []>} : vector<16x32xbf16>, vector<16x32xbf16>, vector<16x16xf32> -> vector<16x16xf32>
    %cst_257 = arith.constant 5.000000e-01 : f32
    %681 = vector.broadcast %cst_257 : f32 to vector<16x16xf32>
    %682 = arith.cmpf olt, %3, %681 : vector<16x16xf32>
    %cst_258 = arith.constant -1.000000e+20 : f32
    %683 = vector.broadcast %cst_258 : f32 to vector<16x16xf32>
    %684 = arith.select %682, %683, %680 : vector<16x16xi1>, vector<16x16xf32>
    %cst_259 = arith.constant dense<0xFF800000> : vector<16xf32>
    %685 = vector.multi_reduction <maximumf>, %684, %cst_259 [1] : vector<16x16xf32> to vector<16xf32>
    %686 = vector.shape_cast %685 : vector<16xf32> to vector<16x1xf32>
    %687 = vector.broadcast %686 : vector<16x1xf32> to vector<16x16xf32>
    %688 = arith.subf %684, %687 : vector<16x16xf32>
    %689 = math.exp %688 : vector<16x16xf32>
    %cst_260 = arith.constant dense<0.000000e+00> : vector<16xf32>
    %690 = vector.multi_reduction <add>, %689, %cst_260 [1] : vector<16x16xf32> to vector<16xf32>
    %691 = vector.shape_cast %690 : vector<16xf32> to vector<16x1xf32>
    %692 = tpu.reciprocal %691 {approx = true} : vector<16x1xf32> -> vector<16x1xf32>
    %693 = vector.broadcast %692 : vector<16x1xf32> to vector<16x16xf32>
    %694 = arith.mulf %689, %693 : vector<16x16xf32>
    %695 = arith.truncf %694 : vector<16x16xf32> to vector<16x16xbf16>
    %cst_261 = arith.constant dense<0.000000e+00> : vector<16x32xf32>
    %696 = tpu.matmul %695, %679, %cst_261 {dimension_numbers = #tpu.dot_dimension_numbers<[1], [0], [0], [1], [0, 0, 1, 1], [], []>} : vector<16x16xbf16>, vector<16x32xbf16>, vector<16x32xf32> -> vector<16x32xf32>
    %697 = arith.addf %666, %696 : vector<16x32xf32>
    %698 = arith.truncf %697 : vector<16x32xf32> to vector<16x32xbf16>
    %cst_262 = arith.constant dense<0.000000e+00> : vector<16x32xf32>
    %699 = tpu.matmul %698, %564, %cst_262 {dimension_numbers = #tpu.dot_dimension_numbers<[1], [0], [0], [1], [0, 0, 1, 1], [], []>} : vector<16x32xbf16>, vector<32x32xbf16>, vector<16x32xf32> -> vector<16x32xf32>
    %700 = vector.broadcast %566 : vector<1x32xf32> to vector<16x32xf32>
    %701 = arith.addf %699, %700 : vector<16x32xf32>
    %c1_263 = arith.constant 1 : index
    %c0_264 = arith.constant 0 : index
    %c0_265 = arith.constant 0 : index
    %702 = vector.load %arg16[%c1_263, %c0_264, %c0_265] : memref<2x1x32xf32, #tpu.memory_space<vmem>>, vector<1x1x32xf32>
    %703 = vector.shape_cast %702 : vector<1x1x32xf32> to vector<1x32xf32>
    %c1_266 = arith.constant 1 : index
    %c0_267 = arith.constant 0 : index
    %c0_268 = arith.constant 0 : index
    %704 = vector.load %arg17[%c1_266, %c0_267, %c0_268] : memref<2x1x32xf32, #tpu.memory_space<vmem>>, vector<1x1x32xf32>
    %705 = vector.shape_cast %704 : vector<1x1x32xf32> to vector<1x32xf32>
    %706 = arith.addf %701, %556 : vector<16x32xf32>
    %cst_269 = arith.constant dense<0.000000e+00> : vector<16xf32>
    %707 = vector.multi_reduction <add>, %706, %cst_269 [1] : vector<16x32xf32> to vector<16xf32>
    %708 = vector.shape_cast %707 : vector<16xf32> to vector<16x1xf32>
    %cst_270 = arith.constant 3.200000e+01 : f32
    %709 = vector.broadcast %cst_270 : f32 to vector<16x1xf32>
    %710 = arith.divf %708, %709 : vector<16x1xf32>
    %711 = vector.broadcast %710 : vector<16x1xf32> to vector<16x32xf32>
    %712 = arith.subf %706, %711 : vector<16x32xf32>
    %713 = arith.mulf %712, %712 : vector<16x32xf32>
    %cst_271 = arith.constant dense<0.000000e+00> : vector<16xf32>
    %714 = vector.multi_reduction <add>, %713, %cst_271 [1] : vector<16x32xf32> to vector<16xf32>
    %715 = vector.shape_cast %714 : vector<16xf32> to vector<16x1xf32>
    %cst_272 = arith.constant 3.200000e+01 : f32
    %716 = vector.broadcast %cst_272 : f32 to vector<16x1xf32>
    %717 = arith.divf %715, %716 : vector<16x1xf32>
    %cst_273 = arith.constant 9.99999974E-6 : f32
    %718 = vector.broadcast %cst_273 : f32 to vector<16x1xf32>
    %719 = arith.addf %717, %718 : vector<16x1xf32>
    %720 = math.rsqrt %719 : vector<16x1xf32>
    %721 = vector.broadcast %720 : vector<16x1xf32> to vector<16x32xf32>
    %722 = arith.mulf %712, %721 : vector<16x32xf32>
    %723 = vector.broadcast %703 : vector<1x32xf32> to vector<16x32xf32>
    %724 = arith.mulf %722, %723 : vector<16x32xf32>
    %725 = vector.broadcast %705 : vector<1x32xf32> to vector<16x32xf32>
    %726 = arith.addf %724, %725 : vector<16x32xf32>
    %727 = arith.truncf %726 : vector<16x32xf32> to vector<16x32xbf16>
    %c1_274 = arith.constant 1 : index
    %c0_275 = arith.constant 0 : index
    %c0_276 = arith.constant 0 : index
    %728 = vector.load %arg18[%c1_274, %c0_275, %c0_276] : memref<2x32x128xbf16, #tpu.memory_space<vmem>>, vector<1x32x128xbf16>
    %729 = vector.shape_cast %728 : vector<1x32x128xbf16> to vector<32x128xbf16>
    %cst_277 = arith.constant dense<0.000000e+00> : vector<16x128xf32>
    %730 = tpu.matmul %727, %729, %cst_277 {dimension_numbers = #tpu.dot_dimension_numbers<[1], [0], [0], [1], [0, 0, 1, 1], [], []>} : vector<16x32xbf16>, vector<32x128xbf16>, vector<16x128xf32> -> vector<16x128xf32>
    %c1_278 = arith.constant 1 : index
    %c0_279 = arith.constant 0 : index
    %c0_280 = arith.constant 0 : index
    %731 = vector.load %arg19[%c1_278, %c0_279, %c0_280] : memref<2x1x128xf32, #tpu.memory_space<vmem>>, vector<1x1x128xf32>
    %732 = vector.shape_cast %731 : vector<1x1x128xf32> to vector<1x128xf32>
    %733 = vector.broadcast %732 : vector<1x128xf32> to vector<16x128xf32>
    %734 = arith.addf %730, %733 : vector<16x128xf32>
    %cst_281 = arith.constant 0.000000e+00 : f32
    %735 = vector.broadcast %cst_281 : f32 to vector<16x128xf32>
    %736 = arith.maximumf %734, %735 : vector<16x128xf32>
    %737 = arith.truncf %736 : vector<16x128xf32> to vector<16x128xbf16>
    %c1_282 = arith.constant 1 : index
    %c0_283 = arith.constant 0 : index
    %c0_284 = arith.constant 0 : index
    %738 = vector.load %arg20[%c1_282, %c0_283, %c0_284] : memref<2x128x32xbf16, #tpu.memory_space<vmem>>, vector<1x128x32xbf16>
    %739 = vector.shape_cast %738 : vector<1x128x32xbf16> to vector<128x32xbf16>
    %cst_285 = arith.constant dense<0.000000e+00> : vector<16x32xf32>
    %740 = tpu.matmul %737, %739, %cst_285 {dimension_numbers = #tpu.dot_dimension_numbers<[1], [0], [0], [1], [0, 0, 1, 1], [], []>} : vector<16x128xbf16>, vector<128x32xbf16>, vector<16x32xf32> -> vector<16x32xf32>
    %c1_286 = arith.constant 1 : index
    %c0_287 = arith.constant 0 : index
    %c0_288 = arith.constant 0 : index
    %741 = vector.load %arg21[%c1_286, %c0_287, %c0_288] : memref<2x1x32xf32, #tpu.memory_space<vmem>>, vector<1x1x32xf32>
    %742 = vector.shape_cast %741 : vector<1x1x32xf32> to vector<1x32xf32>
    %743 = vector.broadcast %742 : vector<1x32xf32> to vector<16x32xf32>
    %744 = arith.addf %740, %743 : vector<16x32xf32>
    %c1_289 = arith.constant 1 : index
    %c0_290 = arith.constant 0 : index
    %c0_291 = arith.constant 0 : index
    %745 = vector.load %arg22[%c1_289, %c0_290, %c0_291] : memref<2x1x32xf32, #tpu.memory_space<vmem>>, vector<1x1x32xf32>
    %746 = vector.shape_cast %745 : vector<1x1x32xf32> to vector<1x32xf32>
    %c1_292 = arith.constant 1 : index
    %c0_293 = arith.constant 0 : index
    %c0_294 = arith.constant 0 : index
    %747 = vector.load %arg23[%c1_292, %c0_293, %c0_294] : memref<2x1x32xf32, #tpu.memory_space<vmem>>, vector<1x1x32xf32>
    %748 = vector.shape_cast %747 : vector<1x1x32xf32> to vector<1x32xf32>
    %749 = arith.addf %744, %726 : vector<16x32xf32>
    %cst_295 = arith.constant dense<0.000000e+00> : vector<16xf32>
    %750 = vector.multi_reduction <add>, %749, %cst_295 [1] : vector<16x32xf32> to vector<16xf32>
    %751 = vector.shape_cast %750 : vector<16xf32> to vector<16x1xf32>
    %cst_296 = arith.constant 3.200000e+01 : f32
    %752 = vector.broadcast %cst_296 : f32 to vector<16x1xf32>
    %753 = arith.divf %751, %752 : vector<16x1xf32>
    %754 = vector.broadcast %753 : vector<16x1xf32> to vector<16x32xf32>
    %755 = arith.subf %749, %754 : vector<16x32xf32>
    %756 = arith.mulf %755, %755 : vector<16x32xf32>
    %cst_297 = arith.constant dense<0.000000e+00> : vector<16xf32>
    %757 = vector.multi_reduction <add>, %756, %cst_297 [1] : vector<16x32xf32> to vector<16xf32>
    %758 = vector.shape_cast %757 : vector<16xf32> to vector<16x1xf32>
    %cst_298 = arith.constant 3.200000e+01 : f32
    %759 = vector.broadcast %cst_298 : f32 to vector<16x1xf32>
    %760 = arith.divf %758, %759 : vector<16x1xf32>
    %cst_299 = arith.constant 9.99999974E-6 : f32
    %761 = vector.broadcast %cst_299 : f32 to vector<16x1xf32>
    %762 = arith.addf %760, %761 : vector<16x1xf32>
    %763 = math.rsqrt %762 : vector<16x1xf32>
    %764 = vector.broadcast %763 : vector<16x1xf32> to vector<16x32xf32>
    %765 = arith.mulf %755, %764 : vector<16x32xf32>
    %766 = vector.broadcast %746 : vector<1x32xf32> to vector<16x32xf32>
    %767 = arith.mulf %765, %766 : vector<16x32xf32>
    %768 = vector.broadcast %748 : vector<1x32xf32> to vector<16x32xf32>
    %769 = arith.addf %767, %768 : vector<16x32xf32>
    %770 = arith.truncf %769 : vector<16x32xf32> to vector<16x32xbf16>
    %c0_300 = arith.constant 0 : index
    %c0_301 = arith.constant 0 : index
    %771 = vector.load %arg24[%c0_300, %c0_301] : memref<32x128xbf16, #tpu.memory_space<vmem>>, vector<32x128xbf16>
    %cst_302 = arith.constant dense<0.000000e+00> : vector<16x128xf32>
    %772 = tpu.matmul %770, %771, %cst_302 {dimension_numbers = #tpu.dot_dimension_numbers<[1], [0], [0], [1], [0, 0, 1, 1], [], []>} : vector<16x32xbf16>, vector<32x128xbf16>, vector<16x128xf32> -> vector<16x128xf32>
    %c0_303 = arith.constant 0 : index
    %c0_304 = arith.constant 0 : index
    %773 = vector.load %arg25[%c0_303, %c0_304] : memref<1x128xf32, #tpu.memory_space<vmem>>, vector<1x128xf32>
    %774 = vector.broadcast %773 : vector<1x128xf32> to vector<16x128xf32>
    %775 = arith.addf %772, %774 : vector<16x128xf32>
    %c0_305 = arith.constant 0 : index
    %c0_306 = arith.constant 0 : index
    %776 = vector.load %arg26[%c0_305, %c0_306] : memref<16x128xf32, #tpu.memory_space<vmem>>, vector<16x128xf32>
    tpu.vector_store %arg26[%c0_305, %c0_306], %775 {strides = array<i32>} : memref<16x128xf32, #tpu.memory_space<vmem>>, vector<16x128xf32>,
    return
  }
}

</mosaic_0001>

<bundles_post_ra>
// kernel: decoder_forward.1
= control target key start
LH: loop header
LB: loop body
LE: loop exit
PB: predicated region body
PF: predicated region fallthrough
CT: control target
= control target key end

     0   :  { %s5839_s0 = inlined_call_operand.vmem [shape: f32[16,32], index: 0, kind: input, shape index: {}]   ;;  %s5840_s1 = inlined_call_operand.vmem [shape: f32[16,32], index: 1, kind: input, shape index: {}]   ;;  %s5841_s2 = inlined_call_operand.vmem [shape: f32[16,16], index: 2, kind: input, shape index: {}]   ;;  %s5842_s3 = inlined_call_operand.vmem [shape: f32[16,16], index: 3, kind: input, shape index: {}]   ;;  %s5843_s4 = inlined_call_operand.vmem [shape: bf16[2,32,32], index: 4, kind: input, shape index: {}]   ;;  %s5844_s5 = inlined_call_operand.vmem [shape: bf16[2,32,32], index: 5, kind: input, shape index: {}]   ;;  %s5845_s6 = inlined_call_operand.vmem [shape: bf16[2,32,32], index: 6, kind: input, shape index: {}]   ;;  %s5846_s7 = inlined_call_operand.vmem [shape: bf16[2,32,32], index: 7, kind: input, shape index: {}]   ;;  %s5847_s8 = inlined_call_operand.vmem [shape: f32[2,1,32], index: 8, kind: input, shape index: {}]   ;;  %s5848_s9 = inlined_call_operand.vmem [shape: f32[2,1,32], index: 9, kind: input, shape index: {}]   ;;  %s5849_s10 = inlined_call_operand.vmem [shape: f32[2,1,32], index: 10, kind: input, shape index: {}]   ;;  %s5850_s11 = inlined_call_operand.vmem [shape: bf16[2,32,32], index: 11, kind: input, shape index: {}]   ;;  %s5851_s12 = inlined_call_operand.vmem [shape: bf16[2,32,32], index: 12, kind: input, shape index: {}]   ;;  %s5852_s13 = inlined_call_operand.vmem [shape: bf16[2,32,32], index: 13, kind: input, shape index: {}]   ;;  %s5853_s14 = inlined_call_operand.vmem [shape: bf16[2,32,32], index: 14, kind: input, shape index: {}]   ;;  %s5854_s15 = inlined_call_operand.vmem [shape: f32[2,1,32], index: 15, kind: input, shape index: {}]   ;;  %s5855_s16 = inlined_call_operand.vmem [shape: f32[2,1,32], index: 16, kind: input, shape index: {}]   ;;  %s5856_s17 = inlined_call_operand.vmem [shape: f32[2,1,32], index: 17, kind: input, shape index: {}]   ;;  %s5857_s18 = inlined_call_operand.vmem [shape: bf16[2,32,128], index: 18, kind: input, shape index: {}]   ;;  %s5858_s19 = inlined_call_operand.vmem [shape: f32[2,1,128], index: 19, kind: input, shape index: {}]   ;;  %s5859_s20 = inlined_call_operand.vmem [shape: bf16[2,128,32], index: 20, kind: input, shape index: {}]   ;;  %s5860_s21 = inlined_call_operand.vmem [shape: f32[2,1,32], index: 21, kind: input, shape index: {}]   ;;  %s5861_s22 = inlined_call_operand.vmem [shape: f32[2,1,32], index: 22, kind: input, shape index: {}]   ;;  %s5862_s23 = inlined_call_operand.vmem [shape: f32[2,1,32], index: 23, kind: input, shape index: {}]   ;;  %s5863_s24 = inlined_call_operand.vmem [shape: bf16[32,128], index: 24, kind: input, shape index: {}]   ;;  %s5864_s25 = inlined_call_operand.vmem [shape: f32[1,128], index: 25, kind: input, shape index: {}]   ;;  %s5865_s26 = inlined_call_operand.hbm [shape: f32[16,128], index: 26, kind: output, shape index: {}]  }
   0x1   :  { %5877 = sst [smem:[#allocation5_spill]] %s5839_s0 }
   0x2   :  { %5878 = sst [smem:[#allocation6_spill]] %s5840_s1 }
   0x3   :  { %5879 = sst [smem:[#allocation7_spill]] %s5841_s2 }
   0x4   :  { %5880 = sst [smem:[#allocation8_spill]] %s5842_s3 }
   0x5   :  { %5881 = sst [smem:[#allocation9_spill]] %s5843_s4 }
   0x6   :  { %5882 = sst [smem:[#allocation10_spill]] %s5844_s5 }
   0x7   :  { %5883 = sst [smem:[#allocation11_spill]] %s5845_s6 }
   0x8   :  { %5884 = sst [smem:[#allocation12_spill]] %s5846_s7 }
   0x9   :  { %5885 = sst [smem:[#allocation13_spill]] %s5847_s8 }
   0xa   :  { %5886 = sst [smem:[#allocation14_spill]] %s5848_s9 }
   0xb   :  { %5887 = sst [smem:[#allocation15_spill]] %s5849_s10 }
   0xc   :  { %s5888_s7 = sld [smem:[#allocation9_spill]]  ;;  %v4730_v1 = vmov 0.0   ;;  %vm4731_vm0 = vmmov 0   ;;  %vm123_vm1 = vcmask 261120  }
   0xd   :  { %4113 = vmatprep.subr.bf16.mxu1 %v4730_v1  ;;  %4129 = vmatprep.subr.bf16.mxu0 %v4730_v1  ;;  %s5889_s0 = sld [smem:[#allocation5_spill]] }
   0xe   :  { %4117 = vmatprep.mubr.msk.bf16.mxu1 %vm4731_vm0, %v4730_v1  ;;  %4133 = vmatprep.mubr.msk.bf16.mxu0 %vm4731_vm0, %v4730_v1  ;;  %s5890_s10 = sld [smem:[#allocation10_spill]] }
  0x12   :  { %v4502_v0 = vld [vmem:[%s5888_s7 + $0x8] sm:$0xff]   ;;  %v4503_v2 = vld [vmem:[%s5888_s7] sm:$0xff]  }
  0x13   :  { %4114 = vmatpush3.bf16.msra.mxu1 %v4502_v0  ;;  %v4883_v3 = vld [vmem:[%s5889_s0] sm:$0xff]  ;;  %v4888_v4 = vld [vmem:[%s5889_s0 + $0x8] sm:$0xff] }
  0x14   :  { %4115 = vmatprep.subr.bf16.mxu1 %v4730_v1  ;;  %v4504_v5 = vld [vmem:[%s5890_s10 + $0x8] sm:$0xff]   ;;  %v110_v6 = vpack.c.bf16 %v4888_v4, %v4883_v3  ;;  %v4505_v7 = vld [vmem:[%s5890_s10] sm:$0xff]  }
  0x17   :  { %4116 = vmatpush3.bf16.msra.mxu1 %v4503_v2 }
  0x18   :  { %4121 = vmatprep.subr.bf16.mxu1 %v4730_v1 }
  0x1a   :  { %4118 = vmatmul.mubr.msk.bf16.vlgmr.msra.gmra.mxu1 %vm123_vm1, %v110_v6 }
  0x1b   :  { %4122 = vmatpush3.bf16.msra.mxu1 %v4504_v5  ;;  %4125 = vmatprep.mubr.msk.bf16.mxu1 %vm4731_vm0, %v4730_v1 }
  0x1c   :  { %4123 = vmatprep.subr.bf16.mxu1 %v4730_v1 }
  0x1f   :  { %4124 = vmatpush3.bf16.msra.mxu1 %v4505_v7 }
  0x20   :  { %4137 = vmatprep.subr.bf16.mxu1 %v4730_v1 }
  0x22   :  { %4126 = vmatmul.mubr.msk.bf16.vlgmr.msra.gmra.mxu1 %vm123_vm1, %v110_v6 }
  0x23   :  { %4139 = vmatprep.mubr.msk.bf16.mxu1 %vm4731_vm0, %v4730_v1 }
  0x24   :  { %31 = vsyncpa [#allocation3], 0  ;;  %s5891_s28 = sld [smem:[#allocation11_spill]]  ;;  %v275_v10 = vlaneseq  ;;  %vm339_vm13 = vcmask 130048  }
  0x25   :  { %s5892_s9 = sld [smem:[#allocation7_spill]] }
  0x26   :  { %v276_v11 = vand.u32 127, %v275_v10  ;;  %s5893_s1 = sld [smem:[#allocation12_spill]] }
  0x27   :  { %s5894_s29 = sld [smem:[#allocation13_spill]] }
  0x28   :  { %vm531_vm2 = vcmp.ge.s32.totalorder %v276_v11, 16  ;;  %vm532_vm3 = vcmp.lt.s32.totalorder %v276_v11, 24  ;;  %vm657_vm4 = vcmp.ge.s32.totalorder %v276_v11, 24  ;;  %vm658_vm5 = vcmp.lt.s32.totalorder %v276_v11, 32  ;;  %s5895_s27 = sld [smem:[#allocation6_spill]] }
  0x29   :  { %vm533_vm6 = vmand %vm531_vm2, %vm532_vm3  ;;  %vm363_vm8 = vcmp.ge.s32.totalorder %v276_v11, 8  ;;  %vm364_vm9 = vcmp.lt.s32.totalorder %v276_v11, 16  ;;  %vm278_vm10 = vcmp.lt.s32.totalorder %v276_v11, 8  ;;  %s5896_s6 = sld [smem:[#allocation14_spill]] }
  0x2a   :  { %v4506_v8 = vld [vmem:[%s5891_s28 + $0x8] sm:$0xff]   ;;  %v4507_v9 = vld [vmem:[%s5891_s28] sm:$0xff]   ;;  %vm659_vm7 = vmand %vm657_vm4, %vm658_vm5  ;;  %v4922_v13 = vsel %vm533_vm6, 1.0, %v4730_v1  ;;  %v4947_v30 = vsel %vm278_vm10, 1.0, %v4730_v1  ;;  %s5897_s8 = sld [smem:[#allocation15_spill]] }
  0x2b   :  { %4130 = vmatpush3.bf16.msra.mxu0 %v4506_v8  ;;  %v4925_v14 = vsel %vm659_vm7, 1.0, %v4730_v1  ;;  %vm365_vm11 = vmand %vm363_vm8, %vm364_vm9  ;;  %v4991_v54 = vld [vmem:[%s5892_s9] sm:$0xff]  ;;  %v4997_v55 = vld [vmem:[%s5892_s9 + $0x8] sm:$0xff] }
  0x2c   :  { %4131 = vmatprep.subr.bf16.mxu0 %v4730_v1  ;;  %v4950_v31 = vsel %vm365_vm11, 1.0, %v4730_v1  ;;  %vm335_vm12 = vcmp.lt.f32.partialorder %v4991_v54, 0.5  ;;  %vm336_vm14 = vcmp.lt.f32.partialorder %v4997_v55, 0.5 }
  0x2f   :  { %4132 = vmatpush3.bf16.msra.mxu0 %v4507_v9 }
  0x30   :  { %4143 = vmatprep.subr.bf16.mxu0 %v4730_v1 }
  0x32   :  { %4134 = vmatmul.mubr.msk.bf16.vlgmr.msra.gmra.mxu0 %vm123_vm1, %v110_v6 }
  0x33   :  { %4145 = vmatprep.mubr.msk.bf16.mxu0 %vm4731_vm0, %v4730_v1 }
  0xda   :  { %v161_v12 = vpop.f32.mrf.mxu1 }
  0xdb   :  { %v4928_v17 = vmul.f32 %v4922_v13, %v161_v12  ;;  %v4931_v18 = vmul.f32 %v4925_v14, %v161_v12  ;;  %v282_v34 = vmul.f32 %v4947_v30, %v161_v12  ;;  %v368_v35 = vmul.f32 %v4950_v31, %v161_v12 }
  0xdc   :  { %v4119_v15 = vpop.f32.mrf.mxu1 }
  0xde   :  { %v164_v16 = vpop.f32.mrf.mxu1 }
  0xdf   :  { %v4934_v19 = vmul.f32 %v4922_v13, %v164_v16  ;;  %v4937_v20 = vmul.f32 %v4925_v14, %v164_v16  ;;  %v283_v32 = vmul.f32 %v4947_v30, %v164_v16  ;;  %v369_v33 = vmul.f32 %v4950_v31, %v164_v16 }
  0xe0   :  { %v4120_v21 = vpop.f32.mrf.mxu1 }
  0xe1   :  { %v538_v22 = vpack.c.bf16 %v4934_v19, %v4928_v17  ;;  %v664_v23 = vpack.c.bf16 %v4937_v20, %v4931_v18  ;;  %v284_v36 = vpack.c.bf16 %v283_v32, %v282_v34  ;;  %v370_v37 = vpack.c.bf16 %v369_v33, %v368_v35 }
  0xe2   :  { %v214_v24 = vpop.f32.mrf.mxu1 }
  0xe4   :  { %v4127_v25 = vpop.f32.mrf.mxu1 }
  0xe6   :  { %v217_v26 = vpop.f32.mrf.mxu1 }
  0xe7   :  { %v221_v27 = vpack.c.bf16 %v217_v26, %v214_v24 }
  0xe8   :  { %v4128_v28 = vpop.f32.mrf.mxu1 }
  0xe9   :  { %v4944_v29 = vsel %vm123_vm1, %v221_v27, 0 }
  0xea   :  { %4138 = vmatpush3.bf16.xpose.msra.mxu1 %v4944_v29  ;;  %4144 = vmatpush3.bf16.xpose.msra.mxu0 %v4944_v29 }
  0xeb   :  { %4149 = vmatprep.subr.bf16.mxu1 %v4730_v1  ;;  %4155 = vmatprep.subr.bf16.mxu0 %v4730_v1 }
  0xf1   :  { %4140 = vmatmul.mubr.msk.bf16.vlgmr.msra.gmra.mxu1 %vm123_vm1, %v284_v36  ;;  %4146 = vmatmul.mubr.msk.bf16.vlgmr.msra.gmra.mxu0 %vm123_vm1, %v370_v37 }
  0xf2   :  { %4151 = vmatprep.mubr.msk.bf16.mxu1 %vm4731_vm0, %v4730_v1  ;;  %4157 = vmatprep.mubr.msk.bf16.mxu0 %vm4731_vm0, %v4730_v1  ;;  %v268_v38 = vpop.f32.mrf.mxu0 }
  0xf3   :  { %v285_v40 = vmul.f32 %v4947_v30, %v268_v38  ;;  %v371_v41 = vmul.f32 %v4950_v31, %v268_v38  ;;  %v4971_v45 = vmul.f32 %v4922_v13, %v268_v38  ;;  %v4977_v48 = vmul.f32 %v4925_v14, %v268_v38 }
  0xf4   :  { %v4135_v39 = vpop.f32.mrf.mxu0 }
  0xf6   :  { %v271_v42 = vpop.f32.mrf.mxu0 }
  0xf7   :  { %v286_v43 = vmul.f32 %v4947_v30, %v271_v42  ;;  %v372_v44 = vmul.f32 %v4950_v31, %v271_v42  ;;  %v4974_v46 = vmul.f32 %v4922_v13, %v271_v42  ;;  %v4980_v49 = vmul.f32 %v4925_v14, %v271_v42 }
  0xf8   :  { %v4136_v47 = vpop.f32.mrf.mxu0 }
  0xf9   :  { %v373_v50 = vpack.c.bf16 %v372_v44, %v371_v41  ;;  %v287_v51 = vpack.c.bf16 %v286_v43, %v285_v40  ;;  %v541_v52 = vpack.c.bf16 %v4974_v46, %v4971_v45  ;;  %v667_v53 = vpack.c.bf16 %v4980_v49, %v4977_v48  ;;  %v4508_v48 = vld [vmem:[%s5893_s1 + $0x8] sm:$0xff]   ;;  %v4509_v49 = vld [vmem:[%s5893_s1] sm:$0xff]  }
  0xfb   :  { %4150 = vmatpush3.bf16.msra.mxu1 %v373_v50  ;;  %4156 = vmatpush3.bf16.msra.mxu0 %v287_v51 }
  0xfc   :  { %4161 = vmatprep.subr.bf16.mxu1 %v4730_v1  ;;  %4167 = vmatprep.subr.bf16.mxu0 %v4730_v1 }
 0x1b1   :  { %v328_v56 = vpop.f32.mrf.mxu1  ;;  %v411_v57 = vpop.f32.mrf.mxu0 }
 0x1b2   :  { %v418_v58 = vsel %vm335_vm12, -1e+20, %v411_v57  ;;  %v337_v7 = vsel %vm335_vm12, -1e+20, %v328_v56 }
 0x1b3   :  { %v4141_v59 = vpop.f32.mrf.mxu1  ;;  %v4147_v60 = vpop.f32.mrf.mxu0  ;;  %v420_v61 = vsel %vm339_vm13, %v418_v58, -inf  ;;  %v340_v8 = vsel %vm339_vm13, %v337_v7, -inf }
 0x1b4   :  { %421 = vmax.xlane.f32.xlu0 %v420_v61 }
 0x1b5   :  { %v331_v62 = vpop.f32.mrf.mxu1  ;;  %v414_v63 = vpop.f32.mrf.mxu0 }
 0x1b6   :  { %v419_v0 = vsel %vm336_vm14, -1e+20, %v414_v63  ;;  %v338_v27 = vsel %vm336_vm14, -1e+20, %v331_v62 }
 0x1b7   :  { %v4142_v2 = vpop.f32.mrf.mxu1  ;;  %v4148_v5 = vpop.f32.mrf.mxu0  ;;  %v423_v6 = vsel %vm339_vm13, %v419_v0, -inf  ;;  %v343_v28 = vsel %vm339_vm13, %v338_v27, -inf }
 0x1b8   :  { %424 = vmax.xlane.f32.xlu0 %v423_v6 }
 0x1bc   :  { %341 = vmax.xlane.f32.xlu0 %v340_v8 }
 0x23d   :  { %v422_v9 = vpop.xlane.xlu0 %421 }
 0x23e   :  { %v426_v10 = vsub.f32 %v418_v58, %v422_v9 }
 0x240   :  { %v428_v11 = vmul.f32 1.442695, %v426_v10 }
 0x241   :  { %v425_v12 = vpop.xlane.xlu0 %424 }
 0x242   :  { %4556 = vpow2.f32 %v428_v11  ;;  %v427_v15 = vsub.f32 %v419_v0, %v425_v12 }
 0x244   :  { %v430_v16 = vmul.f32 1.442695, %v427_v15 }
 0x245   :  { %v342_v39 = vpop.xlane.xlu0 %341 }
 0x246   :  { %4558 = vpow2.f32 %v430_v16  ;;  %v346_v40 = vsub.f32 %v337_v7, %v342_v39 }
 0x24f   :  { %v4557_v21 = vpop.eup %4556 }
 0x250   :  { %v432_v24 = vsel %vm339_vm13, %v4557_v21, 0.0 }
 0x251   :  { %433 = vadd.xlane.f32.xlu1 %v432_v24 }
 0x253   :  { %v4559_v25 = vpop.eup %4558 }
 0x254   :  { %v435_v26 = vsel %vm339_vm13, %v4559_v25, 0.0 }
 0x255   :  { %436 = vadd.xlane.f32.xlu1 %v435_v26 }
 0x259   :  { %344 = vmax.xlane.f32.xlu1 %v343_v28 }
 0x2da   :  { %v434_v32 = vpop.xlane.xlu1 %433 }
 0x2db   :  { %4560 = vrcp.f32 %v434_v32 }
 0x2de   :  { %v437_v33 = vpop.xlane.xlu1 %436 }
 0x2df   :  { %4562 = vrcp.f32 %v437_v33 }
 0x2e2   :  { %v345_v17 = vpop.xlane.xlu1 %344 }
 0x2e8   :  { %v4561_v34 = vpop.eup %4560 }
 0x2e9   :  { %v440_v36 = vmul.f32 %v4561_v34, %v4557_v21 }
 0x2ec   :  { %v4563_v35 = vpop.eup %4562 }
 0x2ed   :  { %v441_v37 = vmul.f32 %v4563_v35, %v4559_v25 }
 0x2ef   :  { %v442_v38 = vpack.c.bf16 %v441_v37, %v440_v36 }
 0x2f1   :  { %4152 = vmatmul.mubr.msk.bf16.vlgmr.msra.gmra.mxu1 %vm339_vm13, %v442_v38 }
 0x2f2   :  { %4162 = vmatpush3.bf16.xpose.msra.mxu1 %v4944_v29  ;;  %4163 = vmatprep.mubr.msk.bf16.mxu1 %vm4731_vm0, %v4730_v1 }
 0x2f3   :  { %4173 = vmatprep.subr.bf16.mxu1 %v4730_v1 }
 0x2f9   :  { %4164 = vmatmul.mubr.msk.bf16.vlgmr.msra.gmra.mxu1 %vm123_vm1, %v538_v22  ;;  %v348_v22 = vmul.f32 1.442695, %v346_v40 }
 0x2fa   :  { %4174 = vmatpush3.bf16.xpose.msra.mxu1 %v4944_v29  ;;  %4175 = vmatprep.mubr.msk.bf16.mxu1 %vm4731_vm0, %v4730_v1  ;;  %v347_v29 = vsub.f32 %v338_v27, %v345_v17 }
 0x2fb   :  { %4185 = vmatprep.subr.bf16.mxu1 %v4730_v1  ;;  %4564 = vpow2.f32 %v348_v22 }
 0x2fc   :  { %v350_v43 = vmul.f32 1.442695, %v347_v29 }
 0x2fe   :  { %4566 = vpow2.f32 %v350_v43 }
 0x301   :  { %4176 = vmatmul.mubr.msk.bf16.vlgmr.msra.gmra.mxu1 %vm123_vm1, %v664_v23 }
 0x302   :  { %4189 = vmatprep.mubr.msk.bf16.mxu1 %vm4731_vm0, %v4730_v1  ;;  %4186 = vmatpush3.bf16.msra.mxu1 %v4508_v48  ;;  %v3808_v48 = vld [vmem:[%s5897_s8] ss:$0 sm:$0xff] }
 0x303   :  { %4187 = vmatprep.subr.bf16.mxu1 %v4730_v1 }
 0x306   :  { %4188 = vmatpush3.bf16.msra.mxu1 %v4509_v49 }
 0x307   :  { %4201 = vmatprep.subr.bf16.mxu1 %v4730_v1 }
 0x308   :  { %v4565_v62 = vpop.eup %4564 }
 0x309   :  { %v352_v5 = vsel %vm339_vm13, %v4565_v62, 0.0 }
 0x30b   :  { %v4567_v7 = vpop.eup %4566 }
 0x30c   :  { %v355_v8 = vsel %vm339_vm13, %v4567_v7, 0.0 }
 0x3b1   :  { %v5033_v19 = vpop.f32.mrf.mxu1 }
 0x3b3   :  { %v4153_v41 = vpop.f32.mrf.mxu1 }
 0x3b5   :  { %v5035_v42 = vpop.f32.mrf.mxu1 }
 0x3b7   :  { %v4154_v44 = vpop.f32.mrf.mxu1 }
 0x3b9   :  { %v579_v47 = vpop.f32.mrf.mxu1 }
 0x3ba   :  { %v586_v18 = vsel %vm335_vm12, -1e+20, %v579_v47 }
 0x3bb   :  { %v4165_v20 = vpop.f32.mrf.mxu1  ;;  %v588_v23 = vsel %vm339_vm13, %v586_v18, -inf }
 0x3bc   :  { %589 = vmax.xlane.f32.xlu0 %v588_v23 }
 0x3bd   :  { %v582_v50 = vpop.f32.mrf.mxu1 }
 0x3be   :  { %v587_v51 = vsel %vm336_vm14, -1e+20, %v582_v50 }
 0x3bf   :  { %v4166_v56 = vpop.f32.mrf.mxu1  ;;  %v591_v57 = vsel %vm339_vm13, %v587_v51, -inf }
 0x3c0   :  { %592 = vmax.xlane.f32.xlu1 %v591_v57 }
 0x3c1   :  { %v705_v58 = vpop.f32.mrf.mxu1 }
 0x3c2   :  { %v712_v59 = vsel %vm335_vm12, -1e+20, %v705_v58 }
 0x3c3   :  { %v4177_v60 = vpop.f32.mrf.mxu1  ;;  %v714_v61 = vsel %vm339_vm13, %v712_v59, -inf }
 0x3c4   :  { %715 = vmax.xlane.f32.xlu0 %v714_v61 }
 0x3c5   :  { %v708_v63 = vpop.f32.mrf.mxu1 }
 0x3c6   :  { %v713_v0 = vsel %vm336_vm14, -1e+20, %v708_v63 }
 0x3c7   :  { %v4178_v2 = vpop.f32.mrf.mxu1  ;;  %v717_v6 = vsel %vm339_vm13, %v713_v0, -inf }
 0x3c8   :  { %353 = vadd.xlane.f32.xlu0 %v352_v5  ;;  %718 = vmax.xlane.f32.xlu1 %v717_v6 }
 0x3cc   :  { %356 = vadd.xlane.f32.xlu1 %v355_v8 }
 0x445   :  { %v590_v9 = vpop.xlane.xlu0 %589 }
 0x446   :  { %v594_v10 = vsub.f32 %v586_v18, %v590_v9 }
 0x448   :  { %v596_v11 = vmul.f32 1.442695, %v594_v10 }
 0x449   :  { %v593_v12 = vpop.xlane.xlu1 %592 }
 0x44a   :  { %4568 = vpow2.f32 %v596_v11  ;;  %v595_v15 = vsub.f32 %v587_v51, %v593_v12 }
 0x44c   :  { %v598_v16 = vmul.f32 1.442695, %v595_v15 }
 0x44d   :  { %v716_v21 = vpop.xlane.xlu0 %715 }
 0x44e   :  { %4570 = vpow2.f32 %v598_v16  ;;  %v720_v24 = vsub.f32 %v712_v59, %v716_v21 }
 0x450   :  { %v722_v25 = vmul.f32 1.442695, %v720_v24 }
 0x451   :  { %v719_v26 = vpop.xlane.xlu1 %718  ;;  %v354_v27 = vpop.xlane.xlu0 %353 }
 0x452   :  { %4572 = vpow2.f32 %v722_v25  ;;  %v721_v28 = vsub.f32 %v713_v0, %v719_v26  ;;  %v3803_v26 = vld [vmem:[%s5894_s29] ss:$0 sm:$0xff] }
 0x453   :  { %4574 = vrcp.f32 %v354_v27 }
 0x454   :  { %v724_v32 = vmul.f32 1.442695, %v721_v28 }
 0x455   :  { %v357_v33 = vpop.xlane.xlu1 %356 }
 0x456   :  { %4576 = vpow2.f32 %v724_v32 }
 0x457   :  { %v4569_v34 = vpop.eup %4568  ;;  %4578 = vrcp.f32 %v357_v33 }
 0x458   :  { %v600_v35 = vsel %vm339_vm13, %v4569_v34, 0.0 }
 0x459   :  { %601 = vadd.xlane.f32.xlu0 %v600_v35 }
 0x45b   :  { %v4571_v36 = vpop.eup %4570 }
 0x45c   :  { %v603_v37 = vsel %vm339_vm13, %v4571_v36, 0.0 }
 0x45d   :  { %604 = vadd.xlane.f32.xlu1 %v603_v37 }
 0x45f   :  { %v4573_v38 = vpop.eup %4572 }
 0x460   :  { %v726_v39 = vsel %vm339_vm13, %v4573_v38, 0.0  ;;  %v4575_v40 = vpop.eup %4574 }
 0x461   :  { %727 = vadd.xlane.f32.xlu0 %v726_v39  ;;  %v360_v41 = vmul.f32 %v4575_v40, %v4565_v62 }
 0x463   :  { %v4577_v17 = vpop.eup %4576 }
 0x464   :  { %v4579_v22 = vpop.eup %4578  ;;  %v729_v29 = vsel %vm339_vm13, %v4577_v17, 0.0 }
 0x465   :  { %730 = vadd.xlane.f32.xlu1 %v729_v29  ;;  %v361_v43 = vmul.f32 %v4579_v22, %v4567_v7 }
 0x467   :  { %v362_v44 = vpack.c.bf16 %v361_v43, %v360_v41 }
 0x469   :  { %4158 = vmatmul.mubr.msk.bf16.vlgmr.msra.gmra.mxu0 %vm339_vm13, %v362_v44 }
 0x46a   :  { %4168 = vmatpush3.bf16.msra.mxu0 %v541_v52  ;;  %4169 = vmatprep.mubr.msk.bf16.mxu0 %vm4731_vm0, %v4730_v1 }
 0x46b   :  { %4179 = vmatprep.subr.bf16.mxu0 %v4730_v1 }
 0x4e2   :  { %v602_v47 = vpop.xlane.xlu0 %601 }
 0x4e3   :  { %4580 = vrcp.f32 %v602_v47  ;;  %v4511_v47 = vld [vmem:[%s5851_s12] sm:$0xff]  }
 0x4e6   :  { %v605_v18 = vpop.xlane.xlu1 %604 }
 0x4e7   :  { %4582 = vrcp.f32 %v605_v18  ;;  %v87_v18 = vld [vmem:[%s5895_s27] sm:$0xff] }
 0x4ea   :  { %v728_v20 = vpop.xlane.xlu0 %727 }
 0x4eb   :  { %4584 = vrcp.f32 %v728_v20  ;;  %v88_v20 = vld [vmem:[%s5895_s27 + $0x8] sm:$0xff]  ;;  %s5898_s27 = sld [smem:[#allocation8_spill]] }
 0x4ee   :  { %v731_v23 = vpop.xlane.xlu1 %730 }
 0x4ef   :  { %4586 = vrcp.f32 %v731_v23  ;;  %v5107_v23 = vpack.c.bf16 %v88_v20, %v87_v18 }
 0x4f0   :  { %v4581_v50 = vpop.eup %4580 }
 0x4f1   :  { %v608_v56 = vmul.f32 %v4581_v50, %v4569_v34  ;;  %v4512_v50 = vld [vmem:[%s5850_s11 + $0x8] sm:$0xff]  }
 0x4f4   :  { %v4583_v51 = vpop.eup %4582 }
 0x4f5   :  { %v609_v57 = vmul.f32 %v4583_v51, %v4571_v36  ;;  %v4513_v51 = vld [vmem:[%s5850_s11] sm:$0xff]  }
 0x4f7   :  { %v610_v58 = vpack.c.bf16 %v609_v57, %v608_v56 }
 0x4f8   :  { %v4585_v45 = vpop.eup %4584 }
 0x4f9   :  { %4170 = vmatmul.mubr.msk.bf16.vlgmr.msra.gmra.mxu0 %vm339_vm13, %v610_v58  ;;  %v734_v52 = vmul.f32 %v4585_v45, %v4573_v38 }
 0x4fa   :  { %4180 = vmatpush3.bf16.msra.mxu0 %v667_v53  ;;  %4181 = vmatprep.mubr.msk.bf16.mxu0 %vm4731_vm0, %v4730_v1 }
 0x4fb   :  { %4193 = vmatprep.subr.bf16.mxu0 %v4730_v1 }
 0x4fc   :  { %v4587_v46 = vpop.eup %4586 }
 0x4fd   :  { %v735_v59 = vmul.f32 %v4587_v46, %v4577_v17 }
 0x4ff   :  { %v736_v60 = vpack.c.bf16 %v735_v59, %v734_v52 }
 0x501   :  { %4182 = vmatmul.mubr.msk.bf16.vlgmr.msra.gmra.mxu0 %vm339_vm13, %v736_v60 }
 0x502   :  { %4197 = vmatprep.mubr.msk.bf16.mxu0 %vm4731_vm0, %v4730_v1  ;;  %4194 = vmatpush3.bf16.msra.mxu0 %v4512_v50 }
 0x503   :  { %4195 = vmatprep.subr.bf16.mxu0 %v4730_v1 }
 0x506   :  { %4196 = vmatpush3.bf16.msra.mxu0 %v4513_v51 }
 0x507   :  { %4209 = vmatprep.subr.bf16.mxu0 %v4730_v1 }
 0x529   :  { %v524_v61 = vpop.f32.mrf.mxu0 }
 0x52a   :  { %v525_v8 = vadd.f32 %v524_v61, %v5033_v19  ;;  %v3807_v61 = vld [vmem:[%s5896_s6] ss:$0 sm:$0xff] }
 0x52b   :  { %v4159_v62 = vpop.f32.mrf.mxu0 }
 0x52d   :  { %v527_v63 = vpop.f32.mrf.mxu0 }
 0x52e   :  { %v528_v9 = vadd.f32 %v527_v63, %v5035_v42 }
 0x52f   :  { %v4160_v0 = vpop.f32.mrf.mxu0 }
 0x5b9   :  { %v648_v53 = vpop.f32.mrf.mxu0 }
 0x5ba   :  { %v655_v11 = vadd.f32 %v648_v53, %v525_v8 }
 0x5bb   :  { %v4171_v2 = vpop.f32.mrf.mxu0 }
 0x5bd   :  { %v651_v5 = vpop.f32.mrf.mxu0 }
 0x5be   :  { %v656_v12 = vadd.f32 %v651_v5, %v528_v9  ;;  %v4514_v5 = vld [vmem:[%s5852_s13 + $0x8] sm:$0xff]  }
 0x5bf   :  { %v4172_v6 = vpop.f32.mrf.mxu0 }
 0x5c1   :  { %v774_v7 = vpop.f32.mrf.mxu0 }
 0x5c2   :  { %v781_v16 = vadd.f32 %v774_v7, %v655_v11  ;;  %v4515_v7 = vld [vmem:[%s5852_s13] sm:$0xff]  }
 0x5c3   :  { %v4183_v10 = vpop.f32.mrf.mxu0 }
 0x5c5   :  { %v777_v15 = vpop.f32.mrf.mxu0 }
 0x5c6   :  { %v782_v21 = vadd.f32 %v777_v15, %v656_v12 }
 0x5c7   :  { %v4184_v24 = vpop.f32.mrf.mxu0 }
 0x5c8   :  { %v783_v25 = vpack.c.bf16 %v782_v21, %v781_v16 }
 0x5ca   :  { %4190 = vmatmul.mubr.msk.bf16.vlgmr.msra.gmra.mxu1 %vm123_vm1, %v783_v25 }
 0x5cb   :  { %4205 = vmatprep.mubr.msk.bf16.mxu1 %vm4731_vm0, %v4730_v1 }
 0x68a   :  { %v839_v19 = vpop.f32.mrf.mxu1 }
 0x68b   :  { %v840_v27 = vadd.f32 %v3803_v26, %v839_v19 }
 0x68c   :  { %v4191_v42 = vpop.f32.mrf.mxu1 }
 0x68d   :  { %v848_v28 = vadd.f32 %v840_v27, %v4883_v3 }
 0x68e   :  { %v842_v32 = vpop.f32.mrf.mxu1 }
 0x68f   :  { %v843_v33 = vadd.f32 %v3803_v26, %v842_v32  ;;  %v850_v34 = vsel %vm123_vm1, %v848_v28, 0.0 }
 0x690   :  { %851 = vadd.xlane.f32.xlu0 %v850_v34  ;;  %v4192_v35 = vpop.f32.mrf.mxu1 }
 0x691   :  { %v849_v36 = vadd.f32 %v843_v33, %v4888_v4  ;;  %v4510_v4 = vld [vmem:[%s5851_s12 + $0x8] sm:$0xff]  }
 0x692   :  { %4202 = vmatpush3.bf16.msra.mxu1 %v4510_v4 }
 0x693   :  { %v853_v37 = vsel %vm123_vm1, %v849_v36, 0.0  ;;  %4203 = vmatprep.subr.bf16.mxu1 %v4730_v1 }
 0x694   :  { %854 = vadd.xlane.f32.xlu1 %v853_v37 }
 0x696   :  { %4204 = vmatpush3.bf16.msra.mxu1 %v4511_v47 }
 0x697   :  { %4217 = vmatprep.subr.bf16.mxu1 %v4730_v1 }
 0x699   :  { %4206 = vmatmul.mubr.msk.bf16.vlgmr.msra.gmra.mxu1 %vm123_vm1, %v5107_v23 }
 0x69a   :  { %4219 = vmatprep.mubr.msk.bf16.mxu1 %vm4731_vm0, %v4730_v1 }
 0x719   :  { %v852_v38 = vpop.xlane.xlu0 %851 }
 0x71a   :  { %v857_v39 = vmul.f32 0.03125, %v852_v38 }
 0x71c   :  { %v859_v40 = vsub.f32 %v848_v28, %v857_v39 }
 0x71d   :  { %v855_v17 = vpop.xlane.xlu1 %854 }
 0x71e   :  { %v858_v22 = vmul.f32 0.03125, %v855_v17  ;;  %v861_v29 = vmul.f32 %v859_v40, %v859_v40 }
 0x720   :  { %v860_v41 = vsub.f32 %v849_v36, %v858_v22  ;;  %v863_v3 = vsel %vm123_vm1, %v861_v29, 0.0 }
 0x721   :  { %864 = vadd.xlane.f32.xlu0 %v863_v3 }
 0x722   :  { %v862_v43 = vmul.f32 %v860_v41, %v860_v41 }
 0x724   :  { %v866_v44 = vsel %vm123_vm1, %v862_v43, 0.0 }
 0x725   :  { %867 = vadd.xlane.f32.xlu1 %v866_v44 }
 0x759   :  { %v1017_v8 = vpop.f32.mrf.mxu1 }
 0x75b   :  { %v4207_v9 = vpop.f32.mrf.mxu1 }
 0x75d   :  { %v1020_v10 = vpop.f32.mrf.mxu1 }
 0x75e   :  { %v1024_v11 = vpack.c.bf16 %v1020_v10, %v1017_v8 }
 0x75f   :  { %v4208_v12 = vpop.f32.mrf.mxu1 }
 0x760   :  { %v5150_v15 = vsel %vm123_vm1, %v1024_v11, 0 }
 0x761   :  { %4218 = vmatpush3.bf16.xpose.msra.mxu1 %v5150_v15 }
 0x762   :  { %4229 = vmatprep.subr.bf16.mxu1 %v4730_v1 }
 0x7aa   :  { %v865_v56 = vpop.xlane.xlu0 %864 }
 0x7ab   :  { %v869_v57 = vmul.f32 0.03125, %v865_v56 }
 0x7ad   :  { %v871_v58 = vadd.f32 1e-05, %v869_v57  ;;  %v5207_v57 = vld [vmem:[%s5898_s27] sm:$0xff] }
 0x7ae   :  { %v868_v45 = vpop.xlane.xlu1 %867  ;;  %vm1131_vm15 = vcmp.lt.f32.partialorder %v5207_v57, 0.5 }
 0x7af   :  { %4588 = vrsqrt.f32 %v871_v58  ;;  %v870_v46 = vmul.f32 0.03125, %v868_v45  ;;  %v5213_v58 = vld [vmem:[%s5898_s27 + $0x8] sm:$0xff] }
 0x7b0   :  { %vm1132_vm2 = vcmp.lt.f32.partialorder %v5213_v58, 0.5 }
 0x7b1   :  { %v872_v52 = vadd.f32 1e-05, %v870_v46 }
 0x7b3   :  { %4590 = vrsqrt.f32 %v872_v52 }
 0x7bc   :  { %v4589_v59 = vpop.eup %4588 }
 0x7bd   :  { %v875_v60 = vmul.f32 %v4589_v59, %v859_v40 }
 0x7bf   :  { %v883_v0 = vmul.f32 %v3807_v61, %v875_v60 }
 0x7c0   :  { %v4591_v62 = vpop.eup %4590 }
 0x7c1   :  { %v876_v63 = vmul.f32 %v4591_v62, %v860_v41  ;;  %v5128_v53 = vadd.f32 %v3808_v48, %v883_v0 }
 0x7c3   :  { %v884_v49 = vmul.f32 %v3807_v61, %v876_v63 }
 0x7c5   :  { %v5130_v2 = vadd.f32 %v3808_v48, %v884_v49 }
 0x7c7   :  { %v910_v6 = vpack.c.bf16 %v5130_v2, %v5128_v53 }
 0x7c9   :  { %4198 = vmatmul.mubr.msk.bf16.vlgmr.msra.gmra.mxu0 %vm123_vm1, %v910_v6 }
 0x7ca   :  { %4210 = vmatpush3.bf16.msra.mxu0 %v4514_v5  ;;  %4213 = vmatprep.mubr.msk.bf16.mxu0 %vm4731_vm0, %v4730_v1 }
 0x7cb   :  { %4211 = vmatprep.subr.bf16.mxu0 %v4730_v1 }
 0x7ce   :  { %4212 = vmatpush3.bf16.msra.mxu0 %v4515_v7 }
 0x7cf   :  { %4223 = vmatprep.subr.bf16.mxu0 %v4730_v1 }
 0x7d1   :  { %4214 = vmatmul.mubr.msk.bf16.vlgmr.msra.gmra.mxu0 %vm123_vm1, %v5107_v23 }
 0x7d2   :  { %4225 = vmatprep.mubr.msk.bf16.mxu0 %vm4731_vm0, %v4730_v1  ;;  %4224 = vmatpush3.bf16.xpose.msra.mxu0 %v5150_v15 }
 0x7d3   :  { %4235 = vmatprep.subr.bf16.mxu0 %v4730_v1 }
 0x889   :  { %v960_v16 = vpop.f32.mrf.mxu0 }
 0x88a   :  { %v1078_v24 = vmul.f32 %v4947_v30, %v960_v16  ;;  %v1158_v25 = vmul.f32 %v4950_v31, %v960_v16  ;;  %v5159_v26 = vmul.f32 %v4922_v13, %v960_v16  ;;  %v5162_v19 = vmul.f32 %v4925_v14, %v960_v16 }
 0x88b   :  { %v4199_v21 = vpop.f32.mrf.mxu0 }
 0x88d   :  { %v963_v27 = vpop.f32.mrf.mxu0 }
 0x88e   :  { %v1079_v42 = vmul.f32 %v4947_v30, %v963_v27  ;;  %v1159_v28 = vmul.f32 %v4950_v31, %v963_v27  ;;  %v5167_v32 = vmul.f32 %v4922_v13, %v963_v27  ;;  %v5170_v33 = vmul.f32 %v4925_v14, %v963_v27 }
 0x88f   :  { %v4200_v34 = vpop.f32.mrf.mxu0 }
 0x890   :  { %v1080_v35 = vpack.c.bf16 %v1079_v42, %v1078_v24  ;;  %v1160_v36 = vpack.c.bf16 %v1159_v28, %v1158_v25  ;;  %v1323_v37 = vpack.c.bf16 %v5167_v32, %v5159_v26  ;;  %v1444_v38 = vpack.c.bf16 %v5170_v33, %v5162_v19 }
 0x891   :  { %v1071_v39 = vpop.f32.mrf.mxu0 }
 0x892   :  { %4220 = vmatmul.mubr.msk.bf16.vlgmr.msra.gmra.mxu1 %vm123_vm1, %v1080_v35  ;;  %4226 = vmatmul.mubr.msk.bf16.vlgmr.msra.gmra.mxu0 %vm123_vm1, %v1160_v36  ;;  %v1081_v17 = vmul.f32 %v4947_v30, %v1071_v39  ;;  %v1161_v22 = vmul.f32 %v4950_v31, %v1071_v39  ;;  %v5189_v47 = vmul.f32 %v4922_v13, %v1071_v39 }
 0x893   :  { %v4215_v40 = vpop.f32.mrf.mxu0  ;;  %4231 = vmatprep.mubr.msk.bf16.mxu1 %vm4731_vm0, %v4730_v1  ;;  %4237 = vmatprep.mubr.msk.bf16.mxu0 %vm4731_vm0, %v4730_v1  ;;  %v5192_v18 = vmul.f32 %v4925_v14, %v1071_v39 }
 0x895   :  { %v1074_v29 = vpop.f32.mrf.mxu0 }
 0x896   :  { %v1082_v41 = vmul.f32 %v4947_v30, %v1074_v29  ;;  %v1162_v3 = vmul.f32 %v4950_v31, %v1074_v29  ;;  %v5195_v20 = vmul.f32 %v4922_v13, %v1074_v29  ;;  %v5198_v50 = vmul.f32 %v4925_v14, %v1074_v29 }
 0x897   :  { %v4216_v43 = vpop.f32.mrf.mxu0 }
 0x898   :  { %v1163_v44 = vpack.c.bf16 %v1162_v3, %v1161_v22  ;;  %v1083_v4 = vpack.c.bf16 %v1082_v41, %v1081_v17  ;;  %v1326_v51 = vpack.c.bf16 %v5195_v20, %v5189_v47  ;;  %v1447_v56 = vpack.c.bf16 %v5198_v50, %v5192_v18  ;;  %v4516_v18 = vld [vmem:[%s5853_s14 + $0x8] sm:$0xff]   ;;  %v4517_v50 = vld [vmem:[%s5853_s14] sm:$0xff]  }
 0x89a   :  { %4230 = vmatpush3.bf16.msra.mxu1 %v1163_v44  ;;  %4236 = vmatpush3.bf16.msra.mxu0 %v1083_v4 }
 0x89b   :  { %4241 = vmatprep.subr.bf16.mxu1 %v4730_v1  ;;  %4247 = vmatprep.subr.bf16.mxu0 %v4730_v1 }
 0x952   :  { %v1124_v45 = vpop.f32.mrf.mxu1  ;;  %v1201_v46 = vpop.f32.mrf.mxu0 }
 0x953   :  { %v1208_v52 = vsel %vm1131_vm15, -1e+20, %v1201_v46  ;;  %v1133_v21 = vsel %vm1131_vm15, -1e+20, %v1124_v45 }
 0x954   :  { %v4221_v59 = vpop.f32.mrf.mxu1  ;;  %v4227_v60 = vpop.f32.mrf.mxu0  ;;  %v1210_v61 = vsel %vm339_vm13, %v1208_v52, -inf  ;;  %v1135_v27 = vsel %vm339_vm13, %v1133_v21, -inf }
 0x955   :  { %1211 = vmax.xlane.f32.xlu0 %v1210_v61 }
 0x956   :  { %v1127_v62 = vpop.f32.mrf.mxu1  ;;  %v1204_v63 = vpop.f32.mrf.mxu0 }
 0x957   :  { %v1209_v0 = vsel %vm1132_vm2, -1e+20, %v1204_v63  ;;  %v1134_v42 = vsel %vm1132_vm2, -1e+20, %v1127_v62 }
 0x958   :  { %v4222_v48 = vpop.f32.mrf.mxu1  ;;  %v4228_v49 = vpop.f32.mrf.mxu0  ;;  %v1213_v5 = vsel %vm339_vm13, %v1209_v0, -inf  ;;  %v1138_v28 = vsel %vm339_vm13, %v1134_v42, -inf }
 0x959   :  { %1214 = vmax.xlane.f32.xlu1 %v1213_v5 }
 0x9de   :  { %v1212_v6 = vpop.xlane.xlu0 %1211 }
 0x9df   :  { %v1216_v7 = vsub.f32 %v1208_v52, %v1212_v6 }
 0x9e1   :  { %v1218_v8 = vmul.f32 1.442695, %v1216_v7 }
 0x9e2   :  { %v1215_v9 = vpop.xlane.xlu1 %1214 }
 0x9e3   :  { %4592 = vpow2.f32 %v1218_v8  ;;  %v1217_v10 = vsub.f32 %v1209_v0, %v1215_v9 }
 0x9e5   :  { %v1220_v11 = vmul.f32 1.442695, %v1217_v10 }
 0x9e7   :  { %4594 = vpow2.f32 %v1220_v11 }
 0x9f0   :  { %v4593_v12 = vpop.eup %4592 }
 0x9f1   :  { %v1222_v16 = vsel %vm339_vm13, %v4593_v12, 0.0 }
 0x9f2   :  { %1223 = vadd.xlane.f32.xlu0 %v1222_v16 }
 0x9f4   :  { %v4595_v24 = vpop.eup %4594 }
 0x9f5   :  { %v1225_v25 = vsel %vm339_vm13, %v4595_v24, 0.0 }
 0x9f6   :  { %1226 = vadd.xlane.f32.xlu1 %v1225_v25  ;;  %1136 = vmax.xlane.f32.xlu0 %v1135_v27 }
 0x9fa   :  { %1139 = vmax.xlane.f32.xlu1 %v1138_v28 }
 0xa7b   :  { %v1224_v34 = vpop.xlane.xlu0 %1223 }
 0xa7c   :  { %4596 = vrcp.f32 %v1224_v34 }
 0xa7f   :  { %v1227_v35 = vpop.xlane.xlu1 %1226  ;;  %v1137_v29 = vpop.xlane.xlu0 %1136 }
 0xa80   :  { %4598 = vrcp.f32 %v1227_v35  ;;  %v1141_v41 = vsub.f32 %v1133_v21, %v1137_v29 }
 0xa83   :  { %v1140_v26 = vpop.xlane.xlu1 %1139 }
 0xa89   :  { %v4597_v36 = vpop.eup %4596 }
 0xa8a   :  { %v1230_v40 = vmul.f32 %v4597_v36, %v4593_v12 }
 0xa8d   :  { %v4599_v39 = vpop.eup %4598 }
 0xa8e   :  { %v1231_v17 = vmul.f32 %v4599_v39, %v4595_v24 }
 0xa90   :  { %v1232_v22 = vpack.c.bf16 %v1231_v17, %v1230_v40 }
 0xa92   :  { %4232 = vmatmul.mubr.msk.bf16.vlgmr.msra.gmra.mxu1 %vm339_vm13, %v1232_v22 }
 0xa93   :  { %4242 = vmatpush3.bf16.xpose.msra.mxu1 %v5150_v15  ;;  %4243 = vmatprep.mubr.msk.bf16.mxu1 %vm4731_vm0, %v4730_v1 }
 0xa94   :  { %4253 = vmatprep.subr.bf16.mxu1 %v4730_v1 }
 0xa9a   :  { %4244 = vmatmul.mubr.msk.bf16.vlgmr.msra.gmra.mxu1 %vm123_vm1, %v1323_v37  ;;  %v1143_v37 = vmul.f32 1.442695, %v1141_v41 }
 0xa9b   :  { %4254 = vmatpush3.bf16.xpose.msra.mxu1 %v5150_v15  ;;  %4255 = vmatprep.mubr.msk.bf16.mxu1 %vm4731_vm0, %v4730_v1  ;;  %v1142_v15 = vsub.f32 %v1134_v42, %v1140_v26 }
 0xa9c   :  { %4265 = vmatprep.subr.bf16.mxu1 %v4730_v1  ;;  %4600 = vpow2.f32 %v1143_v37 }
 0xa9d   :  { %v1145_v44 = vmul.f32 1.442695, %v1142_v15 }
 0xa9f   :  { %4602 = vpow2.f32 %v1145_v44 }
 0xaa2   :  { %4256 = vmatmul.mubr.msk.bf16.vlgmr.msra.gmra.mxu1 %vm123_vm1, %v1444_v38 }
 0xaa3   :  { %4269 = vmatprep.mubr.msk.bf16.mxu1 %vm4731_vm0, %v4730_v1  ;;  %4266 = vmatpush3.bf16.msra.mxu1 %v4516_v18 }
 0xaa4   :  { %4267 = vmatprep.subr.bf16.mxu1 %v4730_v1 }
 0xaa7   :  { %4268 = vmatpush3.bf16.msra.mxu1 %v4517_v50 }
 0xaa8   :  { %4281 = vmatprep.subr.bf16.mxu1 %v4730_v1 }
 0xaa9   :  { %v4601_v48 = vpop.eup %4600 }
 0xaaa   :  { %v1147_v7 = vsel %vm339_vm13, %v4601_v48, 0.0 }
 0xaac   :  { %v4603_v9 = vpop.eup %4602 }
 0xaad   :  { %v1150_v10 = vsel %vm339_vm13, %v4603_v9, 0.0 }
 0xb52   :  { %v5249_v32 = vpop.f32.mrf.mxu1 }
 0xb54   :  { %v4233_v3 = vpop.f32.mrf.mxu1 }
 0xb56   :  { %v5251_v43 = vpop.f32.mrf.mxu1 }
 0xb58   :  { %v4234_v4 = vpop.f32.mrf.mxu1 }
 0xb5a   :  { %v1364_v45 = vpop.f32.mrf.mxu1 }
 0xb5b   :  { %v1371_v19 = vsel %vm1131_vm15, -1e+20, %v1364_v45 }
 0xb5c   :  { %v4245_v33 = vpop.f32.mrf.mxu1  ;;  %v1373_v38 = vsel %vm339_vm13, %v1371_v19, -inf }
 0xb5d   :  { %1374 = vmax.xlane.f32.xlu0 %v1373_v38 }
 0xb5e   :  { %v1367_v46 = vpop.f32.mrf.mxu1 }
 0xb5f   :  { %v1372_v52 = vsel %vm1132_vm2, -1e+20, %v1367_v46 }
 0xb60   :  { %v4246_v59 = vpop.f32.mrf.mxu1  ;;  %v1376_v60 = vsel %vm339_vm13, %v1372_v52, -inf }
 0xb61   :  { %1377 = vmax.xlane.f32.xlu1 %v1376_v60 }
 0xb62   :  { %v1485_v61 = vpop.f32.mrf.mxu1 }
 0xb63   :  { %v1492_v62 = vsel %vm1131_vm15, -1e+20, %v1485_v61 }
 0xb64   :  { %v4257_v63 = vpop.f32.mrf.mxu1  ;;  %v1494_v0 = vsel %vm339_vm13, %v1492_v62, -inf }
 0xb65   :  { %1495 = vmax.xlane.f32.xlu0 %v1494_v0 }
 0xb66   :  { %v1488_v49 = vpop.f32.mrf.mxu1 }
 0xb67   :  { %v1493_v5 = vsel %vm1132_vm2, -1e+20, %v1488_v49 }
 0xb68   :  { %v4258_v6 = vpop.f32.mrf.mxu1  ;;  %v1497_v8 = vsel %vm339_vm13, %v1493_v5, -inf }
 0xb69   :  { %1148 = vadd.xlane.f32.xlu0 %v1147_v7  ;;  %1498 = vmax.xlane.f32.xlu1 %v1497_v8 }
 0xb6d   :  { %1151 = vadd.xlane.f32.xlu1 %v1150_v10 }
 0xbe6   :  { %v1375_v11 = vpop.xlane.xlu0 %1374 }
 0xbe7   :  { %v1379_v12 = vsub.f32 %v1371_v19, %v1375_v11 }
 0xbe9   :  { %v1381_v16 = vmul.f32 1.442695, %v1379_v12 }
 0xbea   :  { %v1378_v21 = vpop.xlane.xlu1 %1377 }
 0xbeb   :  { %4604 = vpow2.f32 %v1381_v16  ;;  %v1380_v24 = vsub.f32 %v1372_v52, %v1378_v21 }
 0xbed   :  { %v1383_v25 = vmul.f32 1.442695, %v1380_v24 }
 0xbee   :  { %v1496_v27 = vpop.xlane.xlu0 %1495 }
 0xbef   :  { %4606 = vpow2.f32 %v1383_v25  ;;  %v1500_v42 = vsub.f32 %v1492_v62, %v1496_v27 }
 0xbf1   :  { %v1502_v28 = vmul.f32 1.442695, %v1500_v42 }
 0xbf2   :  { %v1499_v34 = vpop.xlane.xlu1 %1498  ;;  %v1149_v35 = vpop.xlane.xlu0 %1148 }
 0xbf3   :  { %4608 = vpow2.f32 %v1502_v28  ;;  %v1501_v36 = vsub.f32 %v1493_v5, %v1499_v34 }
 0xbf4   :  { %4610 = vrcp.f32 %v1149_v35 }
 0xbf5   :  { %v1504_v39 = vmul.f32 1.442695, %v1501_v36 }
 0xbf6   :  { %v1152_v40 = vpop.xlane.xlu1 %1151 }
 0xbf7   :  { %4612 = vpow2.f32 %v1504_v39  ;;  %v3826_v39 = vld [vmem:[%s5854_s15] ss:$0 sm:$0xff] }
 0xbf8   :  { %v4605_v17 = vpop.eup %4604  ;;  %4614 = vrcp.f32 %v1152_v40 }
 0xbf9   :  { %v1385_v22 = vsel %vm339_vm13, %v4605_v17, 0.0 }
 0xbfa   :  { %1386 = vadd.xlane.f32.xlu0 %v1385_v22 }
 0xbfc   :  { %v4607_v29 = vpop.eup %4606 }
 0xbfd   :  { %v1388_v41 = vsel %vm339_vm13, %v4607_v29, 0.0 }
 0xbfe   :  { %1389 = vadd.xlane.f32.xlu1 %v1388_v41 }
 0xc00   :  { %v4609_v26 = vpop.eup %4608 }
 0xc01   :  { %v1506_v37 = vsel %vm339_vm13, %v4609_v26, 0.0  ;;  %v4611_v15 = vpop.eup %4610 }
 0xc02   :  { %1507 = vadd.xlane.f32.xlu0 %v1506_v37  ;;  %v1155_v45 = vmul.f32 %v4611_v15, %v4601_v48 }
 0xc04   :  { %v4613_v3 = vpop.eup %4612 }
 0xc05   :  { %v4615_v44 = vpop.eup %4614  ;;  %v1509_v4 = vsel %vm339_vm13, %v4613_v3, 0.0 }
 0xc06   :  { %1510 = vadd.xlane.f32.xlu1 %v1509_v4  ;;  %v1156_v19 = vmul.f32 %v4615_v44, %v4603_v9 }
 0xc08   :  { %v1157_v33 = vpack.c.bf16 %v1156_v19, %v1155_v45 }
 0xc0a   :  { %4238 = vmatmul.mubr.msk.bf16.vlgmr.msra.gmra.mxu0 %vm339_vm13, %v1157_v33 }
 0xc0b   :  { %4248 = vmatpush3.bf16.msra.mxu0 %v1326_v51  ;;  %4249 = vmatprep.mubr.msk.bf16.mxu0 %vm4731_vm0, %v4730_v1 }
 0xc0c   :  { %4259 = vmatprep.subr.bf16.mxu0 %v4730_v1 }
 0xc83   :  { %v1387_v38 = vpop.xlane.xlu0 %1386 }
 0xc84   :  { %4616 = vrcp.f32 %v1387_v38 }
 0xc87   :  { %v1390_v46 = vpop.xlane.xlu1 %1389 }
 0xc88   :  { %4618 = vrcp.f32 %v1390_v46 }
 0xc8b   :  { %v1508_v52 = vpop.xlane.xlu0 %1507 }
 0xc8c   :  { %4620 = vrcp.f32 %v1508_v52 }
 0xc8f   :  { %v1511_v59 = vpop.xlane.xlu1 %1510 }
 0xc90   :  { %4622 = vrcp.f32 %v1511_v59  ;;  %v4519_v59 = vld [vmem:[%s5857_s18] sm:$0xff]  }
 0xc91   :  { %v4617_v60 = vpop.eup %4616 }
 0xc92   :  { %v1393_v62 = vmul.f32 %v4617_v60, %v4605_v17  ;;  %v4520_v60 = vld [vmem:[%s5859_s20 + $0x38] sm:$0xff]  }
 0xc95   :  { %v4619_v61 = vpop.eup %4618 }
 0xc96   :  { %v1394_v63 = vmul.f32 %v4619_v61, %v4607_v29  ;;  %v4521_v61 = vld [vmem:[%s5859_s20 + $0x30] sm:$0xff]  }
 0xc98   :  { %v1395_v0 = vpack.c.bf16 %v1394_v63, %v1393_v62  ;;  %v4522_v62 = vld [vmem:[%s5859_s20 + $0x28] sm:$0xff]   ;;  %v4523_v63 = vld [vmem:[%s5859_s20 + $0x20] sm:$0xff]  }
 0xc99   :  { %v4621_v47 = vpop.eup %4620 }
 0xc9a   :  { %4250 = vmatmul.mubr.msk.bf16.vlgmr.msra.gmra.mxu0 %vm339_vm13, %v1395_v0  ;;  %v1514_v51 = vmul.f32 %v4621_v47, %v4609_v26  ;;  %v4524_v0 = vld [vmem:[%s5859_s20 + $0x18] sm:$0xff]  }
 0xc9b   :  { %4260 = vmatpush3.bf16.msra.mxu0 %v1447_v56  ;;  %4261 = vmatprep.mubr.msk.bf16.mxu0 %vm4731_vm0, %v4730_v1 }
 0xc9c   :  { %4273 = vmatprep.subr.bf16.mxu0 %v4730_v1 }
 0xc9d   :  { %v4623_v20 = vpop.eup %4622 }
 0xc9e   :  { %v1515_v48 = vmul.f32 %v4623_v20, %v4613_v3 }
 0xca0   :  { %v1516_v49 = vpack.c.bf16 %v1515_v48, %v1514_v51 }
 0xca2   :  { %4262 = vmatmul.mubr.msk.bf16.vlgmr.msra.gmra.mxu0 %vm339_vm13, %v1516_v49 }
 0xca3   :  { %4277 = vmatprep.mubr.msk.bf16.mxu0 %vm4731_vm0, %v4730_v1 }
 0xcca   :  { %v1314_v5 = vpop.f32.mrf.mxu0 }
 0xccb   :  { %v1315_v16 = vadd.f32 %v1314_v5, %v5249_v32 }
 0xccc   :  { %v4239_v6 = vpop.f32.mrf.mxu0 }
 0xcce   :  { %v1317_v7 = vpop.f32.mrf.mxu0 }
 0xccf   :  { %v1318_v21 = vadd.f32 %v1317_v7, %v5251_v43 }
 0xcd0   :  { %v4240_v8 = vpop.f32.mrf.mxu0 }
 0xcd1   :  { %v3830_v8 = vld [vmem:[%s5855_s16] ss:$0 sm:$0xff] }
 0xd5a   :  { %v1433_v56 = vpop.f32.mrf.mxu0 }
 0xd5b   :  { %v1440_v25 = vadd.f32 %v1433_v56, %v1315_v16 }
 0xd5c   :  { %v4251_v9 = vpop.f32.mrf.mxu0 }
 0xd5d   :  { %v3831_v9 = vld [vmem:[%s5856_s17] ss:$0 sm:$0xff] }
 0xd5e   :  { %v1436_v10 = vpop.f32.mrf.mxu0 }
 0xd5f   :  { %v1441_v27 = vadd.f32 %v1436_v10, %v1318_v21  ;;  %v4525_v21 = vld [vmem:[%s5859_s20 + $0x10] sm:$0xff]  }
 0xd60   :  { %v4252_v11 = vpop.f32.mrf.mxu0 }
 0xd62   :  { %v1554_v12 = vpop.f32.mrf.mxu0 }
 0xd63   :  { %v1561_v28 = vadd.f32 %v1554_v12, %v1440_v25  ;;  %v4527_v25 = vld [vmem:[%s5859_s20] sm:$0xff]  }
 0xd64   :  { %v4263_v24 = vpop.f32.mrf.mxu0 }
 0xd65   :  { %v4526_v24 = vld [vmem:[%s5859_s20 + $0x8] sm:$0xff]  }
 0xd66   :  { %v1557_v42 = vpop.f32.mrf.mxu0 }
 0xd67   :  { %v1562_v34 = vadd.f32 %v1557_v42, %v1441_v27  ;;  %v3832_v27 = vld [vmem:[%s5858_s19] ss:$0 sm:$0xff] }
 0xd68   :  { %v4264_v35 = vpop.f32.mrf.mxu0 }
 0xd69   :  { %v1563_v36 = vpack.c.bf16 %v1562_v34, %v1561_v28 }
 0xd6b   :  { %4270 = vmatmul.mubr.msk.bf16.vlgmr.msra.gmra.mxu1 %vm123_vm1, %v1563_v36 }
 0xd6c   :  { %4297 = vmatprep.mubr.msk.bf16.mxu1 %vm4731_vm0, %v4730_v1  ;;  %4282 = vmatpush3.bf16.msra.mxu1 %v4520_v60 }
 0xd6d   :  { %4283 = vmatprep.subr.bf16.mxu1 %v4730_v1 }
 0xd70   :  { %4284 = vmatpush3.bf16.msra.mxu1 %v4521_v61 }
 0xd71   :  { %4285 = vmatprep.subr.bf16.mxu1 %v4730_v1 }
 0xd74   :  { %4286 = vmatpush3.bf16.msra.mxu1 %v4522_v62  ;;  %v4528_v62 = vld [vmem:[%s5888_s7 + $0x18] sm:$0xff]  }
 0xd75   :  { %4287 = vmatprep.subr.bf16.mxu1 %v4730_v1 }
 0xd78   :  { %4288 = vmatpush3.bf16.msra.mxu1 %v4523_v63  ;;  %v4529_v63 = vld [vmem:[%s5888_s7 + $0x10] sm:$0xff]  }
 0xd79   :  { %4289 = vmatprep.subr.bf16.mxu1 %v4730_v1 }
 0xd7c   :  { %4290 = vmatpush3.bf16.msra.mxu1 %v4524_v0 }
 0xd7d   :  { %4291 = vmatprep.subr.bf16.mxu1 %v4730_v1 }
 0xd80   :  { %4292 = vmatpush3.bf16.msra.mxu1 %v4525_v21  ;;  %v4531_v21 = vld [vmem:[%s5890_s10 + $0x10] sm:$0xff]  }
 0xd81   :  { %4293 = vmatprep.subr.bf16.mxu1 %v4730_v1 }
 0xd84   :  { %4294 = vmatpush3.bf16.msra.mxu1 %v4526_v24  ;;  %v4532_v24 = vld [vmem:[%s5891_s28 + $0x18] sm:$0xff]  }
 0xd85   :  { %4295 = vmatprep.subr.bf16.mxu1 %v4730_v1 }
 0xd88   :  { %4296 = vmatpush3.bf16.msra.mxu1 %v4527_v25  ;;  %v4533_v25 = vld [vmem:[%s5891_s28 + $0x10] sm:$0xff]  }
 0xd89   :  { %4331 = vmatprep.subr.bf16.mxu1 %v4730_v1 }
 0xe2b   :  { %v1619_v32 = vpop.f32.mrf.mxu1 }
 0xe2c   :  { %v1620_v40 = vadd.f32 %v3826_v39, %v1619_v32 }
 0xe2d   :  { %v4271_v43 = vpop.f32.mrf.mxu1 }
 0xe2e   :  { %v1628_v17 = vadd.f32 %v1620_v40, %v5128_v53 }
 0xe2f   :  { %v1622_v22 = vpop.f32.mrf.mxu1 }
 0xe30   :  { %v1623_v29 = vadd.f32 %v3826_v39, %v1622_v22  ;;  %v1630_v41 = vsel %vm123_vm1, %v1628_v17, 0.0 }
 0xe31   :  { %1631 = vadd.xlane.f32.xlu0 %v1630_v41  ;;  %v4272_v26 = vpop.f32.mrf.mxu1 }
 0xe32   :  { %v1629_v37 = vadd.f32 %v1623_v29, %v5130_v2  ;;  %v4518_v2 = vld [vmem:[%s5857_s18 + $0x8] sm:$0xff]  }
 0xe33   :  { %4274 = vmatpush3.bf16.msra.mxu0 %v4518_v2 }
 0xe34   :  { %v1633_v15 = vsel %vm123_vm1, %v1629_v37, 0.0  ;;  %4275 = vmatprep.subr.bf16.mxu0 %v4730_v1 }
 0xe35   :  { %1634 = vadd.xlane.f32.xlu1 %v1633_v15 }
 0xe37   :  { %4276 = vmatpush3.bf16.msra.mxu0 %v4519_v59 }
 0xe38   :  { %4301 = vmatprep.subr.bf16.mxu0 %v4730_v1 }
 0xeba   :  { %v1632_v3 = vpop.xlane.xlu0 %1631 }
 0xebb   :  { %v1636_v44 = vmul.f32 0.03125, %v1632_v3 }
 0xebd   :  { %v1638_v4 = vsub.f32 %v1628_v17, %v1636_v44  ;;  %v3836_v17 = vld [vmem:[%s5860_s21] ss:$0 sm:$0xff] }
 0xebe   :  { %v1635_v45 = vpop.xlane.xlu1 %1634 }
 0xebf   :  { %v1637_v19 = vmul.f32 0.03125, %v1635_v45  ;;  %v1640_v33 = vmul.f32 %v1638_v4, %v1638_v4 }
 0xec1   :  { %v1639_v38 = vsub.f32 %v1629_v37, %v1637_v19  ;;  %v1642_v53 = vsel %vm123_vm1, %v1640_v33, 0.0 }
 0xec2   :  { %1643 = vadd.xlane.f32.xlu0 %v1642_v53 }
 0xec3   :  { %v1641_v46 = vmul.f32 %v1639_v38, %v1639_v38 }
 0xec5   :  { %v1645_v52 = vsel %vm123_vm1, %v1641_v46, 0.0 }
 0xec6   :  { %1646 = vadd.xlane.f32.xlu1 %v1645_v52 }
 0xf4b   :  { %v1644_v47 = vpop.xlane.xlu0 %1643 }
 0xf4c   :  { %v1648_v20 = vmul.f32 0.03125, %v1644_v47 }
 0xf4e   :  { %v1650_v51 = vadd.f32 1e-05, %v1648_v20 }
 0xf4f   :  { %v1647_v48 = vpop.xlane.xlu1 %1646 }
 0xf50   :  { %4624 = vrsqrt.f32 %v1650_v51  ;;  %v1649_v49 = vmul.f32 0.03125, %v1647_v48 }
 0xf52   :  { %v1651_v5 = vadd.f32 1e-05, %v1649_v49 }
 0xf54   :  { %4626 = vrsqrt.f32 %v1651_v5 }
 0xf5d   :  { %v4625_v6 = vpop.eup %4624 }
 0xf5e   :  { %v1654_v7 = vmul.f32 %v4625_v6, %v1638_v4 }
 0xf60   :  { %v1662_v56 = vmul.f32 %v3830_v8, %v1654_v7  ;;  %v3845_v7 = vld [vmem:[%s5861_s22] ss:$0 sm:$0xff] }
 0xf61   :  { %v4627_v18 = vpop.eup %4626 }
 0xf62   :  { %v1655_v50 = vmul.f32 %v4627_v18, %v1639_v38  ;;  %v1670_v11 = vadd.f32 %v3831_v9, %v1662_v56  ;;  %v3846_v56 = vld [vmem:[%s5862_s23] ss:$0 sm:$0xff] }
 0xf64   :  { %v1663_v10 = vmul.f32 %v3830_v8, %v1655_v50 }
 0xf66   :  { %v1671_v12 = vadd.f32 %v3831_v9, %v1663_v10 }
 0xf68   :  { %v1672_v16 = vpack.c.bf16 %v1671_v12, %v1670_v11 }
 0xf6a   :  { %4278 = vmatmul.mubr.msk.bf16.vlgmr.msra.gmra.mxu0 %vm123_vm1, %v1672_v16 }
 0xf6b   :  { %4305 = vmatprep.mubr.msk.bf16.mxu0 %vm4731_vm0, %v4730_v1  ;;  %4302 = vmatpush3.bf16.msra.mxu0 %v4528_v62 }
 0xf6c   :  { %4303 = vmatprep.subr.bf16.mxu0 %v4730_v1 }
 0xf6f   :  { %4304 = vmatpush3.bf16.msra.mxu0 %v4529_v63 }
 0xf70   :  { %4309 = vmatprep.subr.bf16.mxu0 %v4730_v1 }
0x102a   :  { %v1733_v42 = vpop.f32.mrf.mxu0 }
0x102b   :  { %v1734_v34 = vadd.f32 %v3832_v27, %v1733_v42 }
0x102c   :  { %v4279_v28 = vpop.f32.mrf.mxu0 }
0x102d   :  { %v1740_v32 = vmax.f32 %v1734_v34, 0.0 }
0x102e   :  { %v1736_v35 = vpop.f32.mrf.mxu0 }
0x102f   :  { %v1737_v36 = vadd.f32 %v3832_v27, %v1736_v35 }
0x1030   :  { %v4280_v39 = vpop.f32.mrf.mxu0 }
0x1031   :  { %v1741_v40 = vmax.f32 %v1737_v36, 0.0 }
0x1033   :  { %v1742_v43 = vpack.c.bf16 %v1741_v40, %v1740_v32 }
0x1035   :  { %4298 = vmatmul.mubr.bf16.vlgmr.msra.gmra.mxu1 %v1742_v43 }
0x1036   :  { %4333 = vmatprep.mubr.msk.bf16.mxu1 %vm4731_vm0, %v4730_v1 }
0x10f5   :  { %v1848_v22 = vpop.f32.mrf.mxu1 }
0x10f6   :  { %v1849_v29 = vadd.f32 %v3836_v17, %v1848_v22 }
0x10f7   :  { %v4299_v41 = vpop.f32.mrf.mxu1 }
0x10f8   :  { %v1857_v26 = vadd.f32 %v1849_v29, %v1670_v11 }
0x10f9   :  { %v1851_v37 = vpop.f32.mrf.mxu1 }
0x10fa   :  { %v1852_v15 = vadd.f32 %v3836_v17, %v1851_v37  ;;  %v1859_v3 = vsel %vm123_vm1, %v1857_v26, 0.0 }
0x10fb   :  { %1860 = vadd.xlane.f32.xlu0 %v1859_v3  ;;  %v4300_v44 = vpop.f32.mrf.mxu1 }
0x10fc   :  { %v1858_v4 = vadd.f32 %v1852_v15, %v1671_v12  ;;  %v4530_v12 = vld [vmem:[%s5890_s10 + $0x18] sm:$0xff]  }
0x10fe   :  { %v1862_v45 = vsel %vm123_vm1, %v1858_v4, 0.0 }
0x10ff   :  { %1863 = vadd.xlane.f32.xlu1 %v1862_v45 }
0x1184   :  { %v1861_v19 = vpop.xlane.xlu0 %1860 }
0x1185   :  { %v1865_v33 = vmul.f32 0.03125, %v1861_v19 }
0x1187   :  { %v1867_v38 = vsub.f32 %v1857_v26, %v1865_v33 }
0x1188   :  { %v1864_v53 = vpop.xlane.xlu1 %1863 }
0x1189   :  { %v1866_v46 = vmul.f32 0.03125, %v1864_v53  ;;  %v1869_v52 = vmul.f32 %v1867_v38, %v1867_v38 }
0x118b   :  { %v1868_v2 = vsub.f32 %v1858_v4, %v1866_v46  ;;  %v1871_v59 = vsel %vm123_vm1, %v1869_v52, 0.0 }
0x118c   :  { %1872 = vadd.xlane.f32.xlu0 %v1871_v59 }
0x118d   :  { %v1870_v60 = vmul.f32 %v1868_v2, %v1868_v2 }
0x118f   :  { %v1874_v61 = vsel %vm123_vm1, %v1870_v60, 0.0 }
0x1190   :  { %1875 = vadd.xlane.f32.xlu1 %v1874_v61 }
0x1215   :  { %v1873_v0 = vpop.xlane.xlu0 %1872 }
0x1216   :  { %v1877_v47 = vmul.f32 0.03125, %v1873_v0 }
0x1218   :  { %v1879_v20 = vadd.f32 1e-05, %v1877_v47 }
0x1219   :  { %v1876_v51 = vpop.xlane.xlu1 %1875 }
0x121a   :  { %4628 = vrsqrt.f32 %v1879_v20  ;;  %v1878_v48 = vmul.f32 0.03125, %v1876_v51 }
0x121c   :  { %v1880_v49 = vadd.f32 1e-05, %v1878_v48 }
0x121e   :  { %4630 = vrsqrt.f32 %v1880_v49 }
0x1227   :  { %v4629_v5 = vpop.eup %4628 }
0x1228   :  { %v1883_v6 = vmul.f32 %v4629_v5, %v1867_v38 }
0x122a   :  { %v1891_v50 = vmul.f32 %v3845_v7, %v1883_v6 }
0x122b   :  { %v4631_v8 = vpop.eup %4630 }
0x122c   :  { %v1884_v18 = vmul.f32 %v4631_v8, %v1868_v2  ;;  %v5385_v10 = vadd.f32 %v3846_v56, %v1891_v50 }
0x122e   :  { %v1892_v9 = vmul.f32 %v3845_v7, %v1884_v18 }
0x1230   :  { %v5387_v11 = vadd.f32 %v3846_v56, %v1892_v9 }
0x1232   :  { %v1923_v16 = vpack.c.bf16 %v5387_v11, %v5385_v10 }
0x1234   :  { %4306 = vmatmul.mubr.msk.bf16.vlgmr.msra.gmra.mxu0 %vm123_vm1, %v1923_v16 }
0x1235   :  { %4310 = vmatpush3.bf16.msra.mxu0 %v4530_v12  ;;  %4313 = vmatprep.mubr.msk.bf16.mxu0 %vm4731_vm0, %v4730_v1 }
0x1236   :  { %4311 = vmatprep.subr.bf16.mxu0 %v4730_v1 }
0x1239   :  { %4312 = vmatpush3.bf16.msra.mxu0 %v4531_v21 }
0x123a   :  { %4317 = vmatprep.subr.bf16.mxu0 %v4730_v1 }
0x123c   :  { %4314 = vmatmul.mubr.msk.bf16.vlgmr.msra.gmra.mxu0 %vm123_vm1, %v1923_v16 }
0x123d   :  { %4318 = vmatpush3.bf16.msra.mxu0 %v4532_v24  ;;  %4321 = vmatprep.mubr.msk.bf16.mxu0 %vm4731_vm0, %v4730_v1 }
0x123e   :  { %4319 = vmatprep.subr.bf16.mxu0 %v4730_v1 }
0x1241   :  { %4320 = vmatpush3.bf16.msra.mxu0 %v4533_v25 }
0x1242   :  { %4325 = vmatprep.subr.bf16.mxu0 %v4730_v1 }
0x1244   :  { %4322 = vmatmul.mubr.msk.bf16.vlgmr.msra.gmra.mxu0 %vm123_vm1, %v1923_v16 }
0x1245   :  { %4327 = vmatprep.mubr.msk.bf16.mxu0 %vm4731_vm0, %v4730_v1 }
0x12f4   :  { %v1973_v27 = vpop.f32.mrf.mxu0 }
0x12f5   :  { %v5417_v34 = vmul.f32 %v4922_v13, %v1973_v27  ;;  %v5420_v35 = vmul.f32 %v4925_v14, %v1973_v27  ;;  %v2087_v4 = vmul.f32 %v4947_v30, %v1973_v27  ;;  %v2165_v45 = vmul.f32 %v4950_v31, %v1973_v27 }
0x12f6   :  { %v4307_v42 = vpop.f32.mrf.mxu0 }
0x12f8   :  { %v1976_v28 = vpop.f32.mrf.mxu0 }
0x12f9   :  { %v5423_v36 = vmul.f32 %v4922_v13, %v1976_v28  ;;  %v5426_v39 = vmul.f32 %v4925_v14, %v1976_v28  ;;  %v2088_v37 = vmul.f32 %v4947_v30, %v1976_v28  ;;  %v2166_v3 = vmul.f32 %v4950_v31, %v1976_v28 }
0x12fa   :  { %v4308_v32 = vpop.f32.mrf.mxu0 }
0x12fb   :  { %v2330_v40 = vpack.c.bf16 %v5423_v36, %v5417_v34  ;;  %v2451_v43 = vpack.c.bf16 %v5426_v39, %v5420_v35  ;;  %v2089_v33 = vpack.c.bf16 %v2088_v37, %v2087_v4  ;;  %v2167_v38 = vpack.c.bf16 %v2166_v3, %v2165_v45 }
0x12fc   :  { %v2026_v17 = vpop.f32.mrf.mxu0 }
0x12fe   :  { %v4315_v22 = vpop.f32.mrf.mxu0 }
0x1300   :  { %v2029_v29 = vpop.f32.mrf.mxu0 }
0x1301   :  { %v2033_v41 = vpack.c.bf16 %v2029_v29, %v2026_v17 }
0x1302   :  { %v4316_v26 = vpop.f32.mrf.mxu0 }
0x1303   :  { %v5434_v15 = vsel %vm123_vm1, %v2033_v41, 0 }
0x1304   :  { %v2080_v44 = vpop.f32.mrf.mxu0  ;;  %4326 = vmatpush3.bf16.xpose.msra.mxu0 %v5434_v15  ;;  %4332 = vmatpush3.bf16.xpose.msra.mxu1 %v5434_v15 }
0x1305   :  { %4337 = vmatprep.subr.bf16.mxu0 %v4730_v1  ;;  %4343 = vmatprep.subr.bf16.mxu1 %v4730_v1  ;;  %v2090_v53 = vmul.f32 %v4947_v30, %v2080_v44  ;;  %v2168_v46 = vmul.f32 %v4950_v31, %v2080_v44  ;;  %v5446_v52 = vmul.f32 %v4922_v13, %v2080_v44 }
0x1306   :  { %v4323_v19 = vpop.f32.mrf.mxu0  ;;  %v5457_v63 = vmul.f32 %v4925_v14, %v2080_v44 }
0x1308   :  { %v2083_v2 = vpop.f32.mrf.mxu0 }
0x1309   :  { %v2091_v59 = vmul.f32 %v4947_v30, %v2083_v2  ;;  %v2169_v60 = vmul.f32 %v4950_v31, %v2083_v2  ;;  %v5451_v61 = vmul.f32 %v4922_v13, %v2083_v2  ;;  %v5454_v62 = vmul.f32 %v4925_v14, %v2083_v2 }
0x130a   :  { %v4324_v0 = vpop.f32.mrf.mxu0 }
0x130b   :  { %4328 = vmatmul.mubr.msk.bf16.vlgmr.msra.gmra.mxu0 %vm123_vm1, %v2089_v33  ;;  %4334 = vmatmul.mubr.msk.bf16.vlgmr.msra.gmra.mxu1 %vm123_vm1, %v2167_v38  ;;  %v2170_v47 = vpack.c.bf16 %v2169_v60, %v2168_v46  ;;  %v2092_v20 = vpack.c.bf16 %v2091_v59, %v2090_v53  ;;  %v2333_v51 = vpack.c.bf16 %v5451_v61, %v5446_v52 }
0x130c   :  { %4339 = vmatprep.mubr.msk.bf16.mxu0 %vm4731_vm0, %v4730_v1  ;;  %4345 = vmatprep.mubr.msk.bf16.mxu1 %vm4731_vm0, %v4730_v1  ;;  %v2454_v48 = vpack.c.bf16 %v5454_v62, %v5457_v63  ;;  %v4534_v62 = vld [vmem:[%s5893_s1 + $0x18] sm:$0xff]   ;;  %v4535_v63 = vld [vmem:[%s5893_s1 + $0x10] sm:$0xff]  }
0x130d   :  { %4338 = vmatpush3.bf16.msra.mxu0 %v2170_v47  ;;  %4344 = vmatpush3.bf16.msra.mxu1 %v2092_v20 }
0x130e   :  { %4349 = vmatprep.subr.bf16.mxu0 %v4730_v1  ;;  %4355 = vmatprep.subr.bf16.mxu1 %v4730_v1 }
0x13cb   :  { %v2133_v49 = vpop.f32.mrf.mxu0  ;;  %v2208_v5 = vpop.f32.mrf.mxu1 }
0x13cc   :  { %v2215_v6 = vsel %vm335_vm12, -1e+20, %v2208_v5  ;;  %v2140_v29 = vsel %vm335_vm12, -1e+20, %v2133_v49 }
0x13cd   :  { %v4329_v7 = vpop.f32.mrf.mxu0  ;;  %v4335_v8 = vpop.f32.mrf.mxu1  ;;  %v2217_v18 = vsel %vm339_vm13, %v2215_v6, -inf  ;;  %v2142_v26 = vsel %vm339_vm13, %v2140_v29, -inf }
0x13ce   :  { %2218 = vmax.xlane.f32.xlu0 %v2217_v18 }
0x13cf   :  { %v2136_v50 = vpop.f32.mrf.mxu0  ;;  %v2211_v56 = vpop.f32.mrf.mxu1 }
0x13d0   :  { %v2216_v9 = vsel %vm336_vm14, -1e+20, %v2211_v56  ;;  %v2141_v3 = vsel %vm336_vm14, -1e+20, %v2136_v50 }
0x13d1   :  { %v4330_v12 = vpop.f32.mrf.mxu0  ;;  %v4336_v16 = vpop.f32.mrf.mxu1  ;;  %v2220_v21 = vsel %vm339_vm13, %v2216_v9, -inf  ;;  %v2145_v44 = vsel %vm339_vm13, %v2141_v3, -inf }
0x13d2   :  { %2221 = vmax.xlane.f32.xlu1 %v2220_v21 }
0x1457   :  { %v2219_v24 = vpop.xlane.xlu0 %2218 }
0x1458   :  { %v2223_v25 = vsub.f32 %v2215_v6, %v2219_v24 }
0x145a   :  { %v2225_v27 = vmul.f32 1.442695, %v2223_v25 }
0x145b   :  { %v2222_v42 = vpop.xlane.xlu1 %2221 }
0x145c   :  { %4632 = vpow2.f32 %v2225_v27  ;;  %v2224_v28 = vsub.f32 %v2216_v9, %v2222_v42 }
0x145e   :  { %v2227_v32 = vmul.f32 1.442695, %v2224_v28 }
0x1460   :  { %4634 = vpow2.f32 %v2227_v32 }
0x1469   :  { %v4633_v17 = vpop.eup %4632 }
0x146a   :  { %v2229_v22 = vsel %vm339_vm13, %v4633_v17, 0.0 }
0x146b   :  { %2230 = vadd.xlane.f32.xlu0 %v2229_v22 }
0x146d   :  { %v4635_v41 = vpop.eup %4634 }
0x146e   :  { %v2232_v37 = vsel %vm339_vm13, %v4635_v41, 0.0 }
0x146f   :  { %2143 = vmax.xlane.f32.xlu0 %v2142_v26  ;;  %2233 = vadd.xlane.f32.xlu1 %v2232_v37 }
0x1473   :  { %2146 = vmax.xlane.f32.xlu1 %v2145_v44 }
0x14f4   :  { %v2231_v4 = vpop.xlane.xlu0 %2230 }
0x14f5   :  { %4636 = vrcp.f32 %v2231_v4 }
0x14f8   :  { %v2234_v45 = vpop.xlane.xlu1 %2233  ;;  %v2144_v2 = vpop.xlane.xlu0 %2143 }
0x14f9   :  { %4638 = vrcp.f32 %v2234_v45  ;;  %v2148_v59 = vsub.f32 %v2140_v29, %v2144_v2 }
0x14fc   :  { %v2147_v34 = vpop.xlane.xlu1 %2146 }
0x1502   :  { %v4637_v19 = vpop.eup %4636 }
0x1503   :  { %v2237_v38 = vmul.f32 %v4637_v19, %v4633_v17 }
0x1506   :  { %v4639_v33 = vpop.eup %4638 }
0x1507   :  { %v2238_v53 = vmul.f32 %v4639_v33, %v4635_v41 }
0x1509   :  { %v2239_v46 = vpack.c.bf16 %v2238_v53, %v2237_v38 }
0x150b   :  { %4340 = vmatmul.mubr.msk.bf16.vlgmr.msra.gmra.mxu0 %vm339_vm13, %v2239_v46 }
0x150c   :  { %4350 = vmatpush3.bf16.xpose.msra.mxu0 %v5434_v15  ;;  %4351 = vmatprep.mubr.msk.bf16.mxu0 %vm4731_vm0, %v4730_v1 }
0x150d   :  { %4361 = vmatprep.subr.bf16.mxu0 %v4730_v1 }
0x1513   :  { %4352 = vmatmul.mubr.msk.bf16.vlgmr.msra.gmra.mxu0 %vm123_vm1, %v2330_v40  ;;  %v2150_v40 = vmul.f32 1.442695, %v2148_v59 }
0x1514   :  { %4362 = vmatpush3.bf16.xpose.msra.mxu0 %v5434_v15  ;;  %4363 = vmatprep.mubr.msk.bf16.mxu0 %vm4731_vm0, %v4730_v1  ;;  %v2149_v15 = vsub.f32 %v2141_v3, %v2147_v34 }
0x1515   :  { %4373 = vmatprep.subr.bf16.mxu0 %v4730_v1  ;;  %4640 = vpow2.f32 %v2150_v40 }
0x1516   :  { %v2152_v47 = vmul.f32 1.442695, %v2149_v15 }
0x1518   :  { %4642 = vpow2.f32 %v2152_v47 }
0x151b   :  { %4364 = vmatmul.mubr.msk.bf16.vlgmr.msra.gmra.mxu0 %vm123_vm1, %v2451_v43 }
0x151c   :  { %4377 = vmatprep.mubr.msk.bf16.mxu0 %vm4731_vm0, %v4730_v1  ;;  %4374 = vmatpush3.bf16.msra.mxu0 %v4534_v62 }
0x151d   :  { %4375 = vmatprep.subr.bf16.mxu0 %v4730_v1 }
0x1520   :  { %4376 = vmatpush3.bf16.msra.mxu0 %v4535_v63 }
0x1521   :  { %4389 = vmatprep.subr.bf16.mxu0 %v4730_v1 }
0x1522   :  { %v4641_v12 = vpop.eup %4640 }
0x1523   :  { %v2154_v25 = vsel %vm339_vm13, %v4641_v12, 0.0 }
0x1525   :  { %v4643_v42 = vpop.eup %4642 }
0x1526   :  { %v2157_v54 = vsel %vm339_vm13, %v4643_v42, 0.0 }
0x15cb   :  { %v5504_v36 = vpop.f32.mrf.mxu0 }
0x15cd   :  { %v4341_v60 = vpop.f32.mrf.mxu0 }
0x15cf   :  { %v5506_v0 = vpop.f32.mrf.mxu0 }
0x15d1   :  { %v4342_v20 = vpop.f32.mrf.mxu0 }
0x15d3   :  { %v2371_v49 = vpop.f32.mrf.mxu0 }
0x15d4   :  { %v2378_v35 = vsel %vm335_vm12, -1e+20, %v2371_v49 }
0x15d5   :  { %v4353_v39 = vpop.f32.mrf.mxu0  ;;  %v2380_v43 = vsel %vm339_vm13, %v2378_v35, -inf }
0x15d6   :  { %2381 = vmax.xlane.f32.xlu0 %v2380_v43 }
0x15d7   :  { %v2374_v5 = vpop.f32.mrf.mxu0 }
0x15d8   :  { %v2379_v6 = vsel %vm336_vm14, -1e+20, %v2374_v5 }
0x15d9   :  { %v4354_v7 = vpop.f32.mrf.mxu0  ;;  %v2383_v8 = vsel %vm339_vm13, %v2379_v6, -inf }
0x15da   :  { %2384 = vmax.xlane.f32.xlu1 %v2383_v8 }
0x15db   :  { %v2492_v18 = vpop.f32.mrf.mxu0 }
0x15dc   :  { %v2499_v50 = vsel %vm335_vm12, -1e+20, %v2492_v18 }
0x15dd   :  { %v4365_v56 = vpop.f32.mrf.mxu0  ;;  %v2501_v9 = vsel %vm339_vm13, %v2499_v50, -inf }
0x15de   :  { %2502 = vmax.xlane.f32.xlu0 %v2501_v9 }
0x15df   :  { %v2495_v16 = vpop.f32.mrf.mxu0 }
0x15e0   :  { %v2500_v21 = vsel %vm336_vm14, -1e+20, %v2495_v16 }
0x15e1   :  { %v4366_v24 = vpop.f32.mrf.mxu0  ;;  %v2504_v27 = vsel %vm339_vm13, %v2500_v21, -inf }
0x15e2   :  { %2155 = vadd.xlane.f32.xlu0 %v2154_v25  ;;  %2505 = vmax.xlane.f32.xlu1 %v2504_v27 }
0x15e6   :  { %2158 = vadd.xlane.f32.xlu1 %v2157_v54 }
0x165f   :  { %v2382_v28 = vpop.xlane.xlu0 %2381 }
0x1660   :  { %v2386_v32 = vsub.f32 %v2378_v35, %v2382_v28 }
0x1662   :  { %v2388_v17 = vmul.f32 1.442695, %v2386_v32 }
0x1663   :  { %v2385_v22 = vpop.xlane.xlu1 %2384 }
0x1664   :  { %4644 = vpow2.f32 %v2388_v17  ;;  %v2387_v29 = vsub.f32 %v2379_v6, %v2385_v22 }
0x1666   :  { %v2390_v41 = vmul.f32 1.442695, %v2387_v29 }
0x1667   :  { %v2503_v55 = vpop.xlane.xlu0 %2502 }
0x1668   :  { %4646 = vpow2.f32 %v2390_v41  ;;  %v2507_v26 = vsub.f32 %v2499_v50, %v2503_v55 }
0x166a   :  { %v2509_v37 = vmul.f32 1.442695, %v2507_v26 }
0x166b   :  { %v2506_v3 = vpop.xlane.xlu1 %2505  ;;  %v2156_v44 = vpop.xlane.xlu0 %2155 }
0x166c   :  { %4648 = vpow2.f32 %v2509_v37  ;;  %v2508_v4 = vsub.f32 %v2500_v21, %v2506_v3 }
0x166d   :  { %4650 = vrcp.f32 %v2156_v44  ;;  %v3881_v44 = vld [vmem:[%s5894_s29 + $0x1] ss:$0 sm:$0xff] }
0x166e   :  { %v2511_v45 = vmul.f32 1.442695, %v2508_v4 }
0x166f   :  { %v2159_v19 = vpop.xlane.xlu1 %2158 }
0x1670   :  { %4652 = vpow2.f32 %v2511_v45 }
0x1671   :  { %v4645_v33 = vpop.eup %4644  ;;  %4654 = vrcp.f32 %v2159_v19 }
0x1672   :  { %v2392_v38 = vsel %vm339_vm13, %v4645_v33, 0.0 }
0x1673   :  { %2393 = vadd.xlane.f32.xlu0 %v2392_v38 }
0x1675   :  { %v4647_v53 = vpop.eup %4646 }
0x1676   :  { %v2395_v46 = vsel %vm339_vm13, %v4647_v53, 0.0 }
0x1677   :  { %2396 = vadd.xlane.f32.xlu1 %v2395_v46 }
0x1679   :  { %v4649_v2 = vpop.eup %4648 }
0x167a   :  { %v2513_v59 = vsel %vm339_vm13, %v4649_v2, 0.0  ;;  %v4651_v34 = vpop.eup %4650 }
0x167b   :  { %2514 = vadd.xlane.f32.xlu0 %v2513_v59  ;;  %v2162_v47 = vmul.f32 %v4651_v34, %v4641_v12 }
0x167d   :  { %v4653_v40 = vpop.eup %4652 }
0x167e   :  { %v4655_v15 = vpop.eup %4654  ;;  %v2516_v60 = vsel %vm339_vm13, %v4653_v40, 0.0 }
0x167f   :  { %2517 = vadd.xlane.f32.xlu1 %v2516_v60  ;;  %v2163_v20 = vmul.f32 %v4655_v15, %v4643_v42 }
0x1681   :  { %v2164_v49 = vpack.c.bf16 %v2163_v20, %v2162_v47 }
0x1683   :  { %4346 = vmatmul.mubr.msk.bf16.vlgmr.msra.gmra.mxu1 %vm339_vm13, %v2164_v49 }
0x1684   :  { %4356 = vmatpush3.bf16.msra.mxu1 %v2333_v51  ;;  %4357 = vmatprep.mubr.msk.bf16.mxu1 %vm4731_vm0, %v4730_v1 }
0x1685   :  { %4367 = vmatprep.subr.bf16.mxu1 %v4730_v1 }
0x16fc   :  { %v2394_v35 = vpop.xlane.xlu0 %2393 }
0x16fd   :  { %4656 = vrcp.f32 %v2394_v35 }
0x1700   :  { %v2397_v39 = vpop.xlane.xlu1 %2396 }
0x1701   :  { %4658 = vrcp.f32 %v2397_v39  ;;  %v4537_v39 = vld [vmem:[%s5851_s12 + $0x10] sm:$0xff]  }
0x1704   :  { %v2515_v43 = vpop.xlane.xlu0 %2514 }
0x1705   :  { %4660 = vrcp.f32 %v2515_v43  ;;  %v4538_v43 = vld [vmem:[%s5850_s11 + $0x18] sm:$0xff]  }
0x1708   :  { %v2518_v5 = vpop.xlane.xlu1 %2517 }
0x1709   :  { %4662 = vrcp.f32 %v2518_v5  ;;  %v4539_v5 = vld [vmem:[%s5850_s11 + $0x10] sm:$0xff]  }
0x170a   :  { %v4657_v6 = vpop.eup %4656 }
0x170b   :  { %v2400_v8 = vmul.f32 %v4657_v6, %v4645_v33 }
0x170e   :  { %v4659_v7 = vpop.eup %4658 }
0x170f   :  { %v2401_v18 = vmul.f32 %v4659_v7, %v4647_v53 }
0x1711   :  { %v2402_v50 = vpack.c.bf16 %v2401_v18, %v2400_v8 }
0x1712   :  { %v4661_v52 = vpop.eup %4660 }
0x1713   :  { %4358 = vmatmul.mubr.msk.bf16.vlgmr.msra.gmra.mxu1 %vm339_vm13, %v2402_v50  ;;  %v2521_v51 = vmul.f32 %v4661_v52, %v4649_v2 }
0x1714   :  { %4368 = vmatpush3.bf16.msra.mxu1 %v2454_v48  ;;  %4369 = vmatprep.mubr.msk.bf16.mxu1 %vm4731_vm0, %v4730_v1 }
0x1715   :  { %4381 = vmatprep.subr.bf16.mxu1 %v4730_v1 }
0x1716   :  { %v4663_v61 = vpop.eup %4662 }
0x1717   :  { %v2522_v56 = vmul.f32 %v4663_v61, %v4653_v40 }
0x1719   :  { %v2523_v9 = vpack.c.bf16 %v2522_v56, %v2521_v51  ;;  %v3887_v56 = vld [vmem:[%s5896_s6 + $0x1] ss:$0 sm:$0xff] }
0x171b   :  { %4370 = vmatmul.mubr.msk.bf16.vlgmr.msra.gmra.mxu1 %vm339_vm13, %v2523_v9 }
0x171c   :  { %4385 = vmatprep.mubr.msk.bf16.mxu1 %vm4731_vm0, %v4730_v1  ;;  %4382 = vmatpush3.bf16.msra.mxu1 %v4538_v43 }
0x171d   :  { %4383 = vmatprep.subr.bf16.mxu1 %v4730_v1 }
0x1720   :  { %4384 = vmatpush3.bf16.msra.mxu1 %v4539_v5 }
0x1721   :  { %4397 = vmatprep.subr.bf16.mxu1 %v4730_v1 }
0x1743   :  { %v2321_v12 = vpop.f32.mrf.mxu1 }
0x1744   :  { %v2322_v28 = vadd.f32 %v2321_v12, %v5504_v36 }
0x1745   :  { %v4347_v16 = vpop.f32.mrf.mxu1 }
0x1747   :  { %v2324_v21 = vpop.f32.mrf.mxu1 }
0x1748   :  { %v2325_v32 = vadd.f32 %v2324_v21, %v5506_v0  ;;  %v3888_v21 = vld [vmem:[%s5897_s8 + $0x1] ss:$0 sm:$0xff] }
0x1749   :  { %v4348_v24 = vpop.f32.mrf.mxu1 }
0x17d3   :  { %v2440_v48 = vpop.f32.mrf.mxu1 }
0x17d4   :  { %v2447_v22 = vadd.f32 %v2440_v48, %v2322_v28  ;;  %v4540_v48 = vld [vmem:[%s5852_s13 + $0x18] sm:$0xff]  }
0x17d5   :  { %v4359_v25 = vpop.f32.mrf.mxu1 }
0x17d7   :  { %v2443_v27 = vpop.f32.mrf.mxu1 }
0x17d8   :  { %v2448_v29 = vadd.f32 %v2443_v27, %v2325_v32  ;;  %v4541_v27 = vld [vmem:[%s5852_s13 + $0x10] sm:$0xff]  }
0x17d9   :  { %v4360_v42 = vpop.f32.mrf.mxu1 }
0x17db   :  { %v2561_v54 = vpop.f32.mrf.mxu1 }
0x17dc   :  { %v2568_v55 = vadd.f32 %v2561_v54, %v2447_v22 }
0x17dd   :  { %v4371_v17 = vpop.f32.mrf.mxu1 }
0x17df   :  { %v2564_v41 = vpop.f32.mrf.mxu1 }
0x17e0   :  { %v2569_v26 = vadd.f32 %v2564_v41, %v2448_v29 }
0x17e1   :  { %v4372_v37 = vpop.f32.mrf.mxu1 }
0x17e2   :  { %v2570_v3 = vpack.c.bf16 %v2569_v26, %v2568_v55 }
0x17e4   :  { %4378 = vmatmul.mubr.msk.bf16.vlgmr.msra.gmra.mxu0 %vm123_vm1, %v2570_v3 }
0x17e5   :  { %4393 = vmatprep.mubr.msk.bf16.mxu0 %vm4731_vm0, %v4730_v1 }
0x18a4   :  { %v2626_v36 = vpop.f32.mrf.mxu0 }
0x18a5   :  { %v2627_v4 = vadd.f32 %v3881_v44, %v2626_v36 }
0x18a6   :  { %v4379_v0 = vpop.f32.mrf.mxu0 }
0x18a7   :  { %v2637_v45 = vadd.f32 %v2627_v4, %v5385_v10 }
0x18a8   :  { %v2629_v19 = vpop.f32.mrf.mxu0 }
0x18a9   :  { %v2630_v33 = vadd.f32 %v3881_v44, %v2629_v19  ;;  %v2639_v38 = vsel %vm123_vm1, %v2637_v45, 0.0 }
0x18aa   :  { %2640 = vadd.xlane.f32.xlu0 %v2639_v38  ;;  %v4380_v53 = vpop.f32.mrf.mxu0 }
0x18ab   :  { %v2638_v46 = vadd.f32 %v2630_v33, %v5387_v11  ;;  %v4536_v11 = vld [vmem:[%s5851_s12 + $0x18] sm:$0xff]  }
0x18ac   :  { %4390 = vmatpush3.bf16.msra.mxu0 %v4536_v11 }
0x18ad   :  { %v2642_v2 = vsel %vm123_vm1, %v2638_v46, 0.0  ;;  %4391 = vmatprep.subr.bf16.mxu0 %v4730_v1 }
0x18ae   :  { %2643 = vadd.xlane.f32.xlu1 %v2642_v2 }
0x18b0   :  { %4392 = vmatpush3.bf16.msra.mxu0 %v4537_v39 }
0x18b1   :  { %4405 = vmatprep.subr.bf16.mxu0 %v4730_v1 }
0x18b3   :  { %4394 = vmatmul.mubr.msk.bf16.vlgmr.msra.gmra.mxu0 %vm123_vm1, %v5107_v23 }
0x18b4   :  { %4407 = vmatprep.mubr.msk.bf16.mxu0 %vm4731_vm0, %v4730_v1 }
0x1933   :  { %v2641_v59 = vpop.xlane.xlu0 %2640 }
0x1934   :  { %v2645_v34 = vmul.f32 0.03125, %v2641_v59 }
0x1936   :  { %v2647_v40 = vsub.f32 %v2637_v45, %v2645_v34 }
0x1937   :  { %v2644_v15 = vpop.xlane.xlu1 %2643 }
0x1938   :  { %v2646_v60 = vmul.f32 0.03125, %v2644_v15  ;;  %v2649_v47 = vmul.f32 %v2647_v40, %v2647_v40 }
0x193a   :  { %v2648_v20 = vsub.f32 %v2638_v46, %v2646_v60  ;;  %v2651_v10 = vsel %vm123_vm1, %v2649_v47, 0.0 }
0x193b   :  { %2652 = vadd.xlane.f32.xlu0 %v2651_v10 }
0x193c   :  { %v2650_v49 = vmul.f32 %v2648_v20, %v2648_v20 }
0x193e   :  { %v2654_v35 = vsel %vm123_vm1, %v2650_v49, 0.0 }
0x193f   :  { %2655 = vadd.xlane.f32.xlu1 %v2654_v35 }
0x1973   :  { %v2806_v42 = vpop.f32.mrf.mxu0 }
0x1975   :  { %v4395_v54 = vpop.f32.mrf.mxu0 }
0x1977   :  { %v2809_v28 = vpop.f32.mrf.mxu0 }
0x1978   :  { %v2813_v32 = vpack.c.bf16 %v2809_v28, %v2806_v42 }
0x1979   :  { %v4396_v17 = vpop.f32.mrf.mxu0 }
0x197a   :  { %v5613_v22 = vsel %vm123_vm1, %v2813_v32, 0 }
0x197b   :  { %4406 = vmatpush3.bf16.xpose.msra.mxu0 %v5613_v22 }
0x197c   :  { %4417 = vmatprep.subr.bf16.mxu0 %v4730_v1 }
0x19c4   :  { %v2653_v6 = vpop.xlane.xlu0 %2652 }
0x19c5   :  { %v2657_v7 = vmul.f32 0.03125, %v2653_v6 }
0x19c7   :  { %v2659_v8 = vadd.f32 1e-05, %v2657_v7 }
0x19c8   :  { %v2656_v18 = vpop.xlane.xlu1 %2655 }
0x19c9   :  { %4664 = vrsqrt.f32 %v2659_v8  ;;  %v2658_v50 = vmul.f32 0.03125, %v2656_v18 }
0x19cb   :  { %v2660_v52 = vadd.f32 1e-05, %v2658_v50 }
0x19cd   :  { %4666 = vrsqrt.f32 %v2660_v52 }
0x19d6   :  { %v4665_v61 = vpop.eup %4664 }
0x19d7   :  { %v2663_v51 = vmul.f32 %v4665_v61, %v2647_v40 }
0x19d9   :  { %v2671_v16 = vmul.f32 %v3887_v56, %v2663_v51 }
0x19da   :  { %v4667_v9 = vpop.eup %4666 }
0x19db   :  { %v2664_v12 = vmul.f32 %v4667_v9, %v2648_v20  ;;  %v5591_v62 = vadd.f32 %v3888_v21, %v2671_v16 }
0x19dd   :  { %v2672_v24 = vmul.f32 %v3887_v56, %v2664_v12 }
0x19df   :  { %v5593_v63 = vadd.f32 %v3888_v21, %v2672_v24 }
0x19e1   :  { %v2703_v25 = vpack.c.bf16 %v5593_v63, %v5591_v62 }
0x19e3   :  { %4386 = vmatmul.mubr.msk.bf16.vlgmr.msra.gmra.mxu1 %vm123_vm1, %v2703_v25 }
0x19e4   :  { %4398 = vmatpush3.bf16.msra.mxu1 %v4540_v48  ;;  %4401 = vmatprep.mubr.msk.bf16.mxu1 %vm4731_vm0, %v4730_v1 }
0x19e5   :  { %4399 = vmatprep.subr.bf16.mxu1 %v4730_v1 }
0x19e8   :  { %4400 = vmatpush3.bf16.msra.mxu1 %v4541_v27 }
0x19e9   :  { %4411 = vmatprep.subr.bf16.mxu1 %v4730_v1 }
0x19eb   :  { %4402 = vmatmul.mubr.msk.bf16.vlgmr.msra.gmra.mxu1 %vm123_vm1, %v5107_v23 }
0x19ec   :  { %4413 = vmatprep.mubr.msk.bf16.mxu1 %vm4731_vm0, %v4730_v1  ;;  %4412 = vmatpush3.bf16.xpose.msra.mxu1 %v5613_v22 }
0x19ed   :  { %4423 = vmatprep.subr.bf16.mxu1 %v4730_v1 }
0x1aa3   :  { %v2753_v23 = vpop.f32.mrf.mxu1 }
0x1aa4   :  { %v2867_v41 = vmul.f32 %v4947_v30, %v2753_v23  ;;  %v2945_v55 = vmul.f32 %v4950_v31, %v2753_v23  ;;  %v5622_v26 = vmul.f32 %v4922_v13, %v2753_v23  ;;  %v5625_v37 = vmul.f32 %v4925_v14, %v2753_v23 }
0x1aa5   :  { %v4387_v29 = vpop.f32.mrf.mxu1 }
0x1aa7   :  { %v2756_v3 = vpop.f32.mrf.mxu1 }
0x1aa8   :  { %v2868_v44 = vmul.f32 %v4947_v30, %v2756_v3  ;;  %v2946_v36 = vmul.f32 %v4950_v31, %v2756_v3  ;;  %v5630_v4 = vmul.f32 %v4922_v13, %v2756_v3  ;;  %v5633_v0 = vmul.f32 %v4925_v14, %v2756_v3 }
0x1aa9   :  { %v4388_v45 = vpop.f32.mrf.mxu1 }
0x1aaa   :  { %v2869_v19 = vpack.c.bf16 %v2868_v44, %v2867_v41  ;;  %v2947_v33 = vpack.c.bf16 %v2946_v36, %v2945_v55  ;;  %v3110_v38 = vpack.c.bf16 %v5630_v4, %v5622_v26  ;;  %v3231_v53 = vpack.c.bf16 %v5633_v0, %v5625_v37 }
0x1aab   :  { %v2860_v46 = vpop.f32.mrf.mxu1 }
0x1aac   :  { %4408 = vmatmul.mubr.msk.bf16.vlgmr.msra.gmra.mxu0 %vm123_vm1, %v2869_v19  ;;  %4414 = vmatmul.mubr.msk.bf16.vlgmr.msra.gmra.mxu1 %vm123_vm1, %v2947_v33  ;;  %v2870_v59 = vmul.f32 %v4947_v30, %v2860_v46  ;;  %v2948_v34 = vmul.f32 %v4950_v31, %v2860_v46  ;;  %v5652_v49 = vmul.f32 %v4922_v13, %v2860_v46 }
0x1aad   :  { %v4403_v2 = vpop.f32.mrf.mxu1  ;;  %4419 = vmatprep.mubr.msk.bf16.mxu0 %vm4731_vm0, %v4730_v1  ;;  %4425 = vmatprep.mubr.msk.bf16.mxu1 %vm4731_vm0, %v4730_v1  ;;  %v5655_v35 = vmul.f32 %v4925_v14, %v2860_v46 }
0x1aaf   :  { %v2863_v40 = vpop.f32.mrf.mxu1 }
0x1ab0   :  { %v2871_v15 = vmul.f32 %v4947_v30, %v2863_v40  ;;  %v2949_v60 = vmul.f32 %v4950_v31, %v2863_v40  ;;  %v5658_v11 = vmul.f32 %v4922_v13, %v2863_v40  ;;  %v5661_v30 = vmul.f32 %v4925_v14, %v2863_v40 }
0x1ab1   :  { %v4404_v47 = vpop.f32.mrf.mxu1 }
0x1ab2   :  { %v2950_v20 = vpack.c.bf16 %v2949_v60, %v2948_v34  ;;  %v2872_v10 = vpack.c.bf16 %v2871_v15, %v2870_v59  ;;  %v3113_v31 = vpack.c.bf16 %v5658_v11, %v5652_v49  ;;  %v3234_v39 = vpack.c.bf16 %v5661_v30, %v5655_v35  ;;  %v4542_v35 = vld [vmem:[%s5853_s14 + $0x18] sm:$0xff]   ;;  %v4543_v30 = vld [vmem:[%s5853_s14 + $0x10] sm:$0xff]  }
0x1ab4   :  { %4418 = vmatpush3.bf16.msra.mxu0 %v2950_v20  ;;  %4424 = vmatpush3.bf16.msra.mxu1 %v2872_v10 }
0x1ab5   :  { %4429 = vmatprep.subr.bf16.mxu0 %v4730_v1  ;;  %4435 = vmatprep.subr.bf16.mxu1 %v4730_v1 }
0x1b6c   :  { %v2913_v43 = vpop.f32.mrf.mxu0  ;;  %v2988_v5 = vpop.f32.mrf.mxu1 }
0x1b6d   :  { %v2995_v6 = vsel %vm1131_vm15, -1e+20, %v2988_v5  ;;  %v2920_v27 = vsel %vm1131_vm15, -1e+20, %v2913_v43 }
0x1b6e   :  { %v4409_v7 = vpop.f32.mrf.mxu0  ;;  %v4415_v8 = vpop.f32.mrf.mxu1  ;;  %v2997_v18 = vsel %vm339_vm13, %v2995_v6, -inf  ;;  %v2922_v54 = vsel %vm339_vm13, %v2920_v27, -inf }
0x1b6f   :  { %2998 = vmax.xlane.f32.xlu0 %v2997_v18 }
0x1b70   :  { %v2916_v13 = vpop.f32.mrf.mxu0  ;;  %v2991_v50 = vpop.f32.mrf.mxu1 }
0x1b71   :  { %v2996_v14 = vsel %vm1132_vm2, -1e+20, %v2991_v50  ;;  %v2921_v32 = vsel %vm1132_vm2, -1e+20, %v2916_v13 }
0x1b72   :  { %v4410_v52 = vpop.f32.mrf.mxu0  ;;  %v4416_v61 = vpop.f32.mrf.mxu1  ;;  %v3000_v51 = vsel %vm339_vm13, %v2996_v14, -inf  ;;  %v2925_v17 = vsel %vm339_vm13, %v2921_v32, -inf }
0x1b73   :  { %3001 = vmax.xlane.f32.xlu1 %v3000_v51 }
0x1bf8   :  { %v2999_v56 = vpop.xlane.xlu0 %2998 }
0x1bf9   :  { %v3003_v9 = vsub.f32 %v2995_v6, %v2999_v56 }
0x1bfb   :  { %v3005_v12 = vmul.f32 1.442695, %v3003_v9 }
0x1bfc   :  { %v3002_v16 = vpop.xlane.xlu1 %3001 }
0x1bfd   :  { %4668 = vpow2.f32 %v3005_v12  ;;  %v3004_v21 = vsub.f32 %v2996_v14, %v3002_v16 }
0x1bff   :  { %v3007_v24 = vmul.f32 1.442695, %v3004_v21 }
0x1c01   :  { %4670 = vpow2.f32 %v3007_v24 }
0x1c0a   :  { %v4669_v48 = vpop.eup %4668 }
0x1c0b   :  { %v3009_v25 = vsel %vm339_vm13, %v4669_v48, 0.0 }
0x1c0c   :  { %3010 = vadd.xlane.f32.xlu0 %v3009_v25 }
0x1c0e   :  { %v4671_v42 = vpop.eup %4670 }
0x1c0f   :  { %v3012_v28 = vsel %vm339_vm13, %v4671_v42, 0.0 }
0x1c10   :  { %2923 = vmax.xlane.f32.xlu0 %v2922_v54  ;;  %3013 = vadd.xlane.f32.xlu1 %v3012_v28 }
0x1c14   :  { %2926 = vmax.xlane.f32.xlu1 %v2925_v17 }
0x1c95   :  { %v3011_v23 = vpop.xlane.xlu0 %3010 }
0x1c96   :  { %4672 = vrcp.f32 %v3011_v23 }
0x1c99   :  { %v3014_v29 = vpop.xlane.xlu1 %3013  ;;  %v2924_v45 = vpop.xlane.xlu0 %2923 }
0x1c9a   :  { %4674 = vrcp.f32 %v3014_v29  ;;  %v2928_v19 = vsub.f32 %v2920_v27, %v2924_v45 }
0x1c9c   :  { %v2930_v33 = vmul.f32 1.442695, %v2928_v19 }
0x1c9d   :  { %v2927_v26 = vpop.xlane.xlu1 %2926 }
0x1c9e   :  { %4676 = vpow2.f32 %v2930_v33 }
0x1ca3   :  { %v4673_v41 = vpop.eup %4672 }
0x1ca4   :  { %v3017_v3 = vmul.f32 %v4673_v41, %v4669_v48 }
0x1ca7   :  { %v4675_v55 = vpop.eup %4674 }
0x1ca8   :  { %v3018_v44 = vmul.f32 %v4675_v55, %v4671_v42 }
0x1caa   :  { %v3019_v36 = vpack.c.bf16 %v3018_v44, %v3017_v3 }
0x1cab   :  { %v4677_v6 = vpop.eup %4676 }
0x1cac   :  { %4420 = vmatmul.mubr.msk.bf16.vlgmr.msra.gmra.mxu0 %vm339_vm13, %v3019_v36  ;;  %v2934_v13 = vsel %vm339_vm13, %v4677_v6, 0.0 }
0x1cad   :  { %4430 = vmatpush3.bf16.xpose.msra.mxu0 %v5613_v22  ;;  %4431 = vmatprep.mubr.msk.bf16.mxu0 %vm4731_vm0, %v4730_v1 }
0x1cae   :  { %4441 = vmatprep.subr.bf16.mxu0 %v4730_v1 }
0x1cb4   :  { %4432 = vmatmul.mubr.msk.bf16.vlgmr.msra.gmra.mxu0 %vm123_vm1, %v3110_v38 }
0x1cb5   :  { %4442 = vmatpush3.bf16.xpose.msra.mxu0 %v5613_v22  ;;  %4443 = vmatprep.mubr.msk.bf16.mxu0 %vm4731_vm0, %v4730_v1  ;;  %v2929_v22 = vsub.f32 %v2921_v32, %v2927_v26 }
0x1cb6   :  { %4453 = vmatprep.subr.bf16.mxu0 %v4730_v1 }
0x1cb7   :  { %v2932_v2 = vmul.f32 1.442695, %v2929_v22 }
0x1cb9   :  { %4678 = vpow2.f32 %v2932_v2 }
0x1cbc   :  { %4444 = vmatmul.mubr.msk.bf16.vlgmr.msra.gmra.mxu0 %vm123_vm1, %v3231_v53 }
0x1cbd   :  { %4457 = vmatprep.mubr.msk.bf16.mxu0 %vm4731_vm0, %v4730_v1  ;;  %4454 = vmatpush3.bf16.msra.mxu0 %v4542_v35  ;;  %v4552_v35 = vld [vmem:[%s5859_s20 + $0x48] sm:$0xff]  }
0x1cbe   :  { %4455 = vmatprep.subr.bf16.mxu0 %v4730_v1 }
0x1cc1   :  { %4456 = vmatpush3.bf16.msra.mxu0 %v4543_v30  ;;  %v4553_v30 = vld [vmem:[%s5859_s20 + $0x40] sm:$0xff]  }
0x1cc2   :  { %4469 = vmatprep.subr.bf16.mxu0 %v4730_v1 }
0x1cc6   :  { %v4679_v14 = vpop.eup %4678 }
0x1cc7   :  { %v2937_v57 = vsel %vm339_vm13, %v4679_v14, 0.0 }
0x1d6c   :  { %v5700_v4 = vpop.f32.mrf.mxu0 }
0x1d6e   :  { %v4421_v38 = vpop.f32.mrf.mxu0 }
0x1d70   :  { %v5702_v46 = vpop.f32.mrf.mxu0 }
0x1d72   :  { %v4422_v59 = vpop.f32.mrf.mxu0 }
0x1d74   :  { %v3151_v34 = vpop.f32.mrf.mxu0 }
0x1d75   :  { %v3158_v37 = vsel %vm1131_vm15, -1e+20, %v3151_v34 }
0x1d76   :  { %v4433_v0 = vpop.f32.mrf.mxu0  ;;  %v3160_v53 = vsel %vm339_vm13, %v3158_v37, -inf }
0x1d77   :  { %3161 = vmax.xlane.f32.xlu0 %v3160_v53 }
0x1d78   :  { %v3154_v40 = vpop.f32.mrf.mxu0 }
0x1d79   :  { %v3159_v15 = vsel %vm1132_vm2, -1e+20, %v3154_v40 }
0x1d7a   :  { %v4434_v60 = vpop.f32.mrf.mxu0  ;;  %v3163_v47 = vsel %vm339_vm13, %v3159_v15, -inf }
0x1d7b   :  { %3164 = vmax.xlane.f32.xlu1 %v3163_v47 }
0x1d7c   :  { %v3272_v20 = vpop.f32.mrf.mxu0 }
0x1d7d   :  { %v3279_v10 = vsel %vm1131_vm15, -1e+20, %v3272_v20 }
0x1d7e   :  { %v4445_v43 = vpop.f32.mrf.mxu0  ;;  %v3281_v5 = vsel %vm339_vm13, %v3279_v10, -inf }
0x1d7f   :  { %3282 = vmax.xlane.f32.xlu0 %v3281_v5 }
0x1d80   :  { %v3275_v7 = vpop.f32.mrf.mxu0 }
0x1d81   :  { %v3280_v8 = vsel %vm1132_vm2, -1e+20, %v3275_v7 }
0x1d82   :  { %v4446_v18 = vpop.f32.mrf.mxu0  ;;  %v3284_v50 = vsel %vm339_vm13, %v3280_v8, -inf }
0x1d83   :  { %2935 = vadd.xlane.f32.xlu0 %v2934_v13  ;;  %3285 = vmax.xlane.f32.xlu1 %v3284_v50 }
0x1d87   :  { %2938 = vadd.xlane.f32.xlu1 %v2937_v57 }
0x1e00   :  { %v3162_v52 = vpop.xlane.xlu0 %3161 }
0x1e01   :  { %v3166_v61 = vsub.f32 %v3158_v37, %v3162_v52 }
0x1e03   :  { %v3168_v51 = vmul.f32 1.442695, %v3166_v61 }
0x1e04   :  { %v3165_v56 = vpop.xlane.xlu1 %3164 }
0x1e05   :  { %4680 = vpow2.f32 %v3168_v51  ;;  %v3167_v9 = vsub.f32 %v3159_v15, %v3165_v56  ;;  %v3923_v56 = vld [vmem:[%s5854_s15 + $0x1] ss:$0 sm:$0xff] }
0x1e07   :  { %v3170_v12 = vmul.f32 1.442695, %v3167_v9 }
0x1e08   :  { %v3283_v58 = vpop.xlane.xlu0 %3282 }
0x1e09   :  { %4682 = vpow2.f32 %v3170_v12  ;;  %v3287_v16 = vsub.f32 %v3279_v10, %v3283_v58 }
0x1e0b   :  { %v3289_v21 = vmul.f32 1.442695, %v3287_v16 }
0x1e0c   :  { %v3286_v24 = vpop.xlane.xlu1 %3285  ;;  %v2936_v48 = vpop.xlane.xlu0 %2935 }
0x1e0d   :  { %4684 = vpow2.f32 %v3289_v21  ;;  %v3288_v25 = vsub.f32 %v3280_v8, %v3286_v24 }
0x1e0e   :  { %4686 = vrcp.f32 %v2936_v48 }
0x1e0f   :  { %v3291_v27 = vmul.f32 1.442695, %v3288_v25 }
0x1e10   :  { %v2939_v42 = vpop.xlane.xlu1 %2938 }
0x1e11   :  { %4688 = vpow2.f32 %v3291_v27 }
0x1e12   :  { %v4681_v54 = vpop.eup %4680  ;;  %4690 = vrcp.f32 %v2939_v42 }
0x1e13   :  { %v3172_v28 = vsel %vm339_vm13, %v4681_v54, 0.0 }
0x1e14   :  { %3173 = vadd.xlane.f32.xlu0 %v3172_v28 }
0x1e16   :  { %v4683_v32 = vpop.eup %4682 }
0x1e17   :  { %v3175_v17 = vsel %vm339_vm13, %v4683_v32, 0.0 }
0x1e18   :  { %3176 = vadd.xlane.f32.xlu1 %v3175_v17 }
0x1e1a   :  { %v4685_v23 = vpop.eup %4684 }
0x1e1b   :  { %v3293_v29 = vsel %vm339_vm13, %v4685_v23, 0.0  ;;  %v4687_v41 = vpop.eup %4686 }
0x1e1c   :  { %3294 = vadd.xlane.f32.xlu0 %v3293_v29  ;;  %v2942_v36 = vmul.f32 %v4687_v41, %v4677_v6 }
0x1e1e   :  { %v4689_v55 = vpop.eup %4688 }
0x1e1f   :  { %v4691_v3 = vpop.eup %4690  ;;  %v3296_v44 = vsel %vm339_vm13, %v4689_v55, 0.0 }
0x1e20   :  { %3297 = vadd.xlane.f32.xlu1 %v3296_v44  ;;  %v2943_v45 = vmul.f32 %v4691_v3, %v4679_v14  ;;  %v4546_v3 = vld [vmem:[%s5859_s20 + $0x78] sm:$0xff]   ;;  %v4547_v44 = vld [vmem:[%s5859_s20 + $0x70] sm:$0xff]  }
0x1e22   :  { %v2944_v19 = vpack.c.bf16 %v2943_v45, %v2942_v36  ;;  %v4548_v36 = vld [vmem:[%s5859_s20 + $0x68] sm:$0xff]   ;;  %v4549_v45 = vld [vmem:[%s5859_s20 + $0x60] sm:$0xff]  }
0x1e24   :  { %4426 = vmatmul.mubr.msk.bf16.vlgmr.msra.gmra.mxu1 %vm339_vm13, %v2944_v19  ;;  %v4550_v19 = vld [vmem:[%s5859_s20 + $0x58] sm:$0xff]  }
0x1e25   :  { %4436 = vmatpush3.bf16.msra.mxu1 %v3113_v31  ;;  %4437 = vmatprep.mubr.msk.bf16.mxu1 %vm4731_vm0, %v4730_v1 }
0x1e26   :  { %4447 = vmatprep.subr.bf16.mxu1 %v4730_v1 }
0x1e9d   :  { %v3174_v26 = vpop.xlane.xlu0 %3173 }
0x1e9e   :  { %4692 = vrcp.f32 %v3174_v26 }
0x1ea1   :  { %v3177_v33 = vpop.xlane.xlu1 %3176 }
0x1ea2   :  { %4694 = vrcp.f32 %v3177_v33 }
0x1ea5   :  { %v3295_v22 = vpop.xlane.xlu0 %3294 }
0x1ea6   :  { %4696 = vrcp.f32 %v3295_v22 }
0x1ea9   :  { %v3298_v38 = vpop.xlane.xlu1 %3297 }
0x1eaa   :  { %4698 = vrcp.f32 %v3298_v38 }
0x1eab   :  { %v4693_v2 = vpop.eup %4692 }
0x1eac   :  { %v3180_v34 = vmul.f32 %v4693_v2, %v4681_v54 }
0x1eaf   :  { %v4695_v59 = vpop.eup %4694 }
0x1eb0   :  { %v3181_v37 = vmul.f32 %v4695_v59, %v4683_v32 }
0x1eb2   :  { %v3182_v0 = vpack.c.bf16 %v3181_v37, %v3180_v34 }
0x1eb3   :  { %v4697_v49 = vpop.eup %4696 }
0x1eb4   :  { %4438 = vmatmul.mubr.msk.bf16.vlgmr.msra.gmra.mxu1 %vm339_vm13, %v3182_v0  ;;  %v3301_v31 = vmul.f32 %v4697_v49, %v4685_v23  ;;  %v3929_v0 = vld [vmem:[%s5855_s16 + $0x1] ss:$0 sm:$0xff] }
0x1eb5   :  { %4448 = vmatpush3.bf16.msra.mxu1 %v3234_v39  ;;  %4449 = vmatprep.mubr.msk.bf16.mxu1 %vm4731_vm0, %v4730_v1 }
0x1eb6   :  { %4461 = vmatprep.subr.bf16.mxu1 %v4730_v1 }
0x1eb7   :  { %v4699_v11 = vpop.eup %4698 }
0x1eb8   :  { %v3302_v53 = vmul.f32 %v4699_v11, %v4689_v55  ;;  %v4545_v55 = vld [vmem:[%s5857_s18 + $0x10] sm:$0xff]  }
0x1eba   :  { %v3303_v40 = vpack.c.bf16 %v3302_v53, %v3301_v31  ;;  %v3930_v53 = vld [vmem:[%s5856_s17 + $0x1] ss:$0 sm:$0xff] }
0x1ebc   :  { %4450 = vmatmul.mubr.msk.bf16.vlgmr.msra.gmra.mxu1 %vm339_vm13, %v3303_v40 }
0x1ebd   :  { %4465 = vmatprep.mubr.msk.bf16.mxu1 %vm4731_vm0, %v4730_v1 }
0x1ee4   :  { %v3101_v15 = vpop.f32.mrf.mxu1 }
0x1ee5   :  { %v3102_v7 = vadd.f32 %v3101_v15, %v5700_v4 }
0x1ee6   :  { %v4427_v60 = vpop.f32.mrf.mxu1 }
0x1ee8   :  { %v3104_v47 = vpop.f32.mrf.mxu1 }
0x1ee9   :  { %v3105_v8 = vadd.f32 %v3104_v47, %v5702_v46 }
0x1eea   :  { %v4428_v20 = vpop.f32.mrf.mxu1 }
0x1eeb   :  { %v4551_v20 = vld [vmem:[%s5859_s20 + $0x50] sm:$0xff]  }
0x1f74   :  { %v3220_v39 = vpop.f32.mrf.mxu1 }
0x1f75   :  { %v3227_v13 = vadd.f32 %v3220_v39, %v3102_v7  ;;  %v3936_v39 = vld [vmem:[%s5858_s19 + $0x1] ss:$0 sm:$0xff] }
0x1f76   :  { %v4439_v10 = vpop.f32.mrf.mxu1 }
0x1f78   :  { %v3223_v43 = vpop.f32.mrf.mxu1 }
0x1f79   :  { %v3228_v50 = vadd.f32 %v3223_v43, %v3105_v8 }
0x1f7a   :  { %v4440_v5 = vpop.f32.mrf.mxu1 }
0x1f7c   :  { %v3341_v6 = vpop.f32.mrf.mxu1 }
0x1f7d   :  { %v3348_v57 = vadd.f32 %v3341_v6, %v3227_v13 }
0x1f7e   :  { %v4451_v18 = vpop.f32.mrf.mxu1 }
0x1f80   :  { %v3344_v14 = vpop.f32.mrf.mxu1 }
0x1f81   :  { %v3349_v52 = vadd.f32 %v3344_v14, %v3228_v50  ;;  %v3957_v14 = vld [vmem:[%s5860_s21 + $0x1] ss:$0 sm:$0xff] }
0x1f82   :  { %v4452_v61 = vpop.f32.mrf.mxu1 }
0x1f83   :  { %v3350_v51 = vpack.c.bf16 %v3349_v52, %v3348_v57 }
0x1f85   :  { %4458 = vmatmul.mubr.msk.bf16.vlgmr.msra.gmra.mxu0 %vm123_vm1, %v3350_v51 }
0x1f86   :  { %4485 = vmatprep.mubr.msk.bf16.mxu0 %vm4731_vm0, %v4730_v1  ;;  %4470 = vmatpush3.bf16.msra.mxu0 %v4546_v3 }
0x1f87   :  { %4471 = vmatprep.subr.bf16.mxu0 %v4730_v1 }
0x1f8a   :  { %4472 = vmatpush3.bf16.msra.mxu0 %v4547_v44 }
0x1f8b   :  { %4473 = vmatprep.subr.bf16.mxu0 %v4730_v1 }
0x1f8e   :  { %4474 = vmatpush3.bf16.msra.mxu0 %v4548_v36 }
0x1f8f   :  { %4475 = vmatprep.subr.bf16.mxu0 %v4730_v1 }
0x1f92   :  { %4476 = vmatpush3.bf16.msra.mxu0 %v4549_v45  ;;  %v3968_v45 = vld [vmem:[%s5861_s22 + $0x1] ss:$0 sm:$0xff]  ;;  %s4732_s22 = smov [#allocation2]  }
0x1f93   :  { %4477 = vmatprep.subr.bf16.mxu0 %v4730_v1  ;;  %s3771_s9 = sshll.u32 %s4732_s22, 4  ;;  %s3772_s9 = int_to_ptr.vmem [resolvable:$true] %s3771_s9 }
0x1f94   :  { %p4713_p1 = scmp.lt.s32.totalorder %s3772_s9, %s3772_s9 }
0x1f96   :  { %4478 = vmatpush3.bf16.msra.mxu0 %v4550_v19 }
0x1f97   :  { %4479 = vmatprep.subr.bf16.mxu0 %v4730_v1 }
0x1f9a   :  { %4480 = vmatpush3.bf16.msra.mxu0 %v4551_v20 }
0x1f9b   :  { %4481 = vmatprep.subr.bf16.mxu0 %v4730_v1 }
0x1f9e   :  { %4482 = vmatpush3.bf16.msra.mxu0 %v4552_v35 }
0x1f9f   :  { %4483 = vmatprep.subr.bf16.mxu0 %v4730_v1 }
0x1fa2   :  { %4484 = vmatpush3.bf16.msra.mxu0 %v4553_v30 }
0x2045   :  { %v3406_v4 = vpop.f32.mrf.mxu0 }
0x2046   :  { %v3407_v9 = vadd.f32 %v3923_v56, %v3406_v4 }
0x2047   :  { %v4459_v46 = vpop.f32.mrf.mxu0 }
0x2048   :  { %v3417_v12 = vadd.f32 %v3407_v9, %v5591_v62 }
0x2049   :  { %v3409_v58 = vpop.f32.mrf.mxu0 }
0x204a   :  { %v3410_v16 = vadd.f32 %v3923_v56, %v3409_v58  ;;  %v3419_v21 = vsel %vm123_vm1, %v3417_v12, 0.0 }
0x204b   :  { %3420 = vadd.xlane.f32.xlu0 %v3419_v21  ;;  %v4460_v24 = vpop.f32.mrf.mxu0 }
0x204c   :  { %v3418_v48 = vadd.f32 %v3410_v16, %v5593_v63  ;;  %v4544_v63 = vld [vmem:[%s5857_s18 + $0x18] sm:$0xff]  }
0x204d   :  { %4462 = vmatpush3.bf16.msra.mxu1 %v4544_v63 }
0x204e   :  { %v3422_v25 = vsel %vm123_vm1, %v3418_v48, 0.0  ;;  %4463 = vmatprep.subr.bf16.mxu1 %v4730_v1 }
0x204f   :  { %3423 = vadd.xlane.f32.xlu1 %v3422_v25 }
0x2051   :  { %4464 = vmatpush3.bf16.msra.mxu1 %v4545_v55 }
0x2052   :  { %4489 = vmatprep.subr.bf16.mxu1 %v4730_v1 }
0x20d4   :  { %v3421_v27 = vpop.xlane.xlu0 %3420 }
0x20d5   :  { %v3425_v42 = vmul.f32 0.03125, %v3421_v27 }
0x20d7   :  { %v3427_v54 = vsub.f32 %v3417_v12, %v3425_v42 }
0x20d8   :  { %v3424_v28 = vpop.xlane.xlu1 %3423 }
0x20d9   :  { %v3426_v32 = vmul.f32 0.03125, %v3424_v28  ;;  %v3429_v17 = vmul.f32 %v3427_v54, %v3427_v54 }
0x20db   :  { %v3428_v23 = vsub.f32 %v3418_v48, %v3426_v32  ;;  %v3431_v62 = vsel %vm123_vm1, %v3429_v17, 0.0  ;;  %v4554_v17 = vld [vmem:[%s5863_s24 + $0x8] sm:$0xff]  }
0x20dc   :  { %3432 = vadd.xlane.f32.xlu0 %v3431_v62 }
0x20dd   :  { %v3430_v29 = vmul.f32 %v3428_v23, %v3428_v23 }
0x20df   :  { %v3434_v41 = vsel %vm123_vm1, %v3430_v29, 0.0 }
0x20e0   :  { %3435 = vadd.xlane.f32.xlu1 %v3434_v41 }
0x2165   :  { %v3433_v26 = vpop.xlane.xlu0 %3432 }
0x2166   :  { %v3437_v33 = vmul.f32 0.03125, %v3433_v26 }
0x2168   :  { %v3439_v22 = vadd.f32 1e-05, %v3437_v33 }
0x2169   :  { %v3436_v38 = vpop.xlane.xlu1 %3435 }
0x216a   :  { %4700 = vrsqrt.f32 %v3439_v22  ;;  %v3438_v2 = vmul.f32 0.03125, %v3436_v38 }
0x216c   :  { %v3440_v59 = vadd.f32 1e-05, %v3438_v2 }
0x216e   :  { %4702 = vrsqrt.f32 %v3440_v59 }
0x2177   :  { %v4701_v34 = vpop.eup %4700 }
0x2178   :  { %v3443_v37 = vmul.f32 %v4701_v34, %v3427_v54  ;;  %v3970_v34 = vld [vmem:[%s5864_s25] ss:$0 sm:$0xff] }
0x217a   :  { %v3451_v31 = vmul.f32 %v3929_v0, %v3443_v37 }
0x217b   :  { %v4703_v49 = vpop.eup %4702 }
0x217c   :  { %v3444_v11 = vmul.f32 %v4703_v49, %v3428_v23  ;;  %v3459_v15 = vadd.f32 %v3930_v53, %v3451_v31  ;;  %v4555_v23 = vld [vmem:[%s5863_s24] sm:$0xff]  }
0x217e   :  { %v3452_v40 = vmul.f32 %v3929_v0, %v3444_v11 }
0x2180   :  { %v3460_v60 = vadd.f32 %v3930_v53, %v3452_v40 }
0x2182   :  { %v3461_v47 = vpack.c.bf16 %v3460_v60, %v3459_v15 }
0x2184   :  { %4466 = vmatmul.mubr.msk.bf16.vlgmr.msra.gmra.mxu1 %vm123_vm1, %v3461_v47 }
0x2185   :  { %4493 = vmatprep.mubr.msk.bf16.mxu1 %vm4731_vm0, %v4730_v1  ;;  %4490 = vmatpush3.bf16.msra.mxu1 %v4554_v17 }
0x2186   :  { %4491 = vmatprep.subr.bf16.mxu1 %v4730_v1  ;;  %v3969_v1 = vld [vmem:[%s5862_s23 + $0x1] ss:$0 sm:$0xff]  ;;  %s4708_s23 = scalar_lea.vmem %s3772_s9, 256 }
0x2187   :  { %p4709_p0 = scmp.ne.s32.totalorder %s3772_s9, %s4708_s23  ;;  %p4714_p2 = scmp.lt.s32.totalorder %s4708_s23, %s4708_s23 }
0x2189   :  { %4492 = vmatpush3.bf16.msra.mxu1 %v4555_v23  ;;  %p4715_p3 = por %p4714_p2, %p4713_p1 }
0x218b   :  { %p4716_p4 = pnand %p4715_p3, %p4709_p0 }
0x2244   :  { %v3524_v10 = vpop.f32.mrf.mxu1 }
0x2245   :  { %v3525_v5 = vadd.f32 %v3936_v39, %v3524_v10 }
0x2246   :  { %v4467_v43 = vpop.f32.mrf.mxu1 }
0x2247   :  { %v3531_v18 = vmax.f32 %v3525_v5, 0.0 }
0x2248   :  { %v3527_v6 = vpop.f32.mrf.mxu1 }
0x2249   :  { %v3528_v7 = vadd.f32 %v3936_v39, %v3527_v6 }
0x224a   :  { %v4468_v8 = vpop.f32.mrf.mxu1 }
0x224b   :  { %v3532_v13 = vmax.f32 %v3528_v7, 0.0 }
0x224d   :  { %v3533_v50 = vpack.c.bf16 %v3532_v13, %v3531_v18 }
0x224f   :  { %4486 = vmatmul.mubr.bf16.vlgmr.msra.gmra.mxu0 %v3533_v50 }
0x230f   :  { %v3641_v57 = vpop.f32.mrf.mxu0 }
0x2310   :  { %v3642_v52 = vadd.f32 %v3957_v14, %v3641_v57 }
0x2311   :  { %v4487_v61 = vpop.f32.mrf.mxu0 }
0x2312   :  { %v3652_v51 = vadd.f32 %v3642_v52, %v3459_v15 }
0x2313   :  { %v3644_v56 = vpop.f32.mrf.mxu0 }
0x2314   :  { %v3645_v4 = vadd.f32 %v3957_v14, %v3644_v56  ;;  %v3654_v9 = vsel %vm123_vm1, %v3652_v51, 0.0 }
0x2315   :  { %3655 = vadd.xlane.f32.xlu0 %v3654_v9  ;;  %v4488_v46 = vpop.f32.mrf.mxu0 }
0x2316   :  { %v3653_v12 = vadd.f32 %v3645_v4, %v3460_v60 }
0x2318   :  { %v3657_v58 = vsel %vm123_vm1, %v3653_v12, 0.0 }
0x2319   :  { %3658 = vadd.xlane.f32.xlu1 %v3657_v58 }
0x239e   :  { %v3656_v16 = vpop.xlane.xlu0 %3655 }
0x239f   :  { %v3660_v21 = vmul.f32 0.03125, %v3656_v16 }
0x23a1   :  { %v3662_v24 = vsub.f32 %v3652_v51, %v3660_v21 }
0x23a2   :  { %v3659_v48 = vpop.xlane.xlu1 %3658 }
0x23a3   :  { %v3661_v25 = vmul.f32 0.03125, %v3659_v48  ;;  %v3664_v27 = vmul.f32 %v3662_v24, %v3662_v24 }
0x23a5   :  { %v3663_v42 = vsub.f32 %v3653_v12, %v3661_v25  ;;  %v3666_v54 = vsel %vm123_vm1, %v3664_v27, 0.0 }
0x23a6   :  { %3667 = vadd.xlane.f32.xlu0 %v3666_v54 }
0x23a7   :  { %v3665_v28 = vmul.f32 %v3663_v42, %v3663_v42 }
0x23a9   :  { %v3669_v32 = vsel %vm123_vm1, %v3665_v28, 0.0 }
0x23aa   :  { %3670 = vadd.xlane.f32.xlu1 %v3669_v32 }
0x242f   :  { %v3668_v62 = vpop.xlane.xlu0 %3667 }
0x2430   :  { %v3672_v29 = vmul.f32 0.03125, %v3668_v62 }
0x2432   :  { %v3674_v41 = vadd.f32 1e-05, %v3672_v29 }
0x2433   :  { %v3671_v63 = vpop.xlane.xlu1 %3670 }
0x2434   :  { %4704 = vrsqrt.f32 %v3674_v41  ;;  %v3673_v55 = vmul.f32 0.03125, %v3671_v63 }
0x2436   :  { %v3675_v3 = vadd.f32 1e-05, %v3673_v55 }
0x2438   :  { %4706 = vrsqrt.f32 %v3675_v3 }
0x2441   :  { %v4705_v44 = vpop.eup %4704 }
0x2442   :  { %v3678_v36 = vmul.f32 %v4705_v44, %v3662_v24 }
0x2444   :  { %v3686_v33 = vmul.f32 %v3968_v45, %v3678_v36 }
0x2445   :  { %v4707_v19 = vpop.eup %4706 }
0x2446   :  { %v3679_v26 = vmul.f32 %v4707_v19, %v3663_v42  ;;  %v3694_v38 = vadd.f32 %v3969_v1, %v3686_v33 }
0x2448   :  { %v3687_v22 = vmul.f32 %v3968_v45, %v3679_v26 }
0x244a   :  { %v3695_v2 = vadd.f32 %v3969_v1, %v3687_v22 }
0x244c   :  { %v3696_v59 = vpack.c.bf16 %v3695_v2, %v3694_v38 }
0x244e   :  { %4494 = vmatmul.mubr.msk.bf16.vlgmr.msra.gmra.mxu1 %vm123_vm1, %v3696_v59 }
0x250e   :  { %v3757_v37 = vpop.f32.mrf.mxu1 }
0x250f   :  { %v3758_v0 = vadd.f32 %v3970_v34, %v3757_v37 }
0x2510   :  { %v4495_v49 = vpop.f32.mrf.mxu1 }
0x2511   :  { %3764 = vst [vmem:[#allocation2] sm:$0xff] %v3758_v0 }
0x2512   :  { %v3760_v11 = vpop.f32.mrf.mxu1 }
0x2513   :  { %v3761_v31 = vadd.f32 %v3970_v34, %v3760_v11 }
0x2514   :  { %v4496_v53 = vpop.f32.mrf.mxu1 }
0x2515   :  { %3765 = vst [vmem:[#allocation2 + $0x8] sm:$0xff] %v3761_v31 }
0x2516   :  { %4719 = shalt.err (!%p4716_p4)
}
0x2517   :  { %s4733_s1 = smov 128   ;;  %s4734_s25 = smov 8  }
0x2518   :  { %3777 = dma.vmem_to_hbm [thread:$0]  %s3772_s9, 256, %s5865_s26, [#allocation3], %s4733_s1, %s4733_s1, %s4734_s25  }
0x2519   :  { %4728 = dma.done.wait [#allocation3], 256  }
0x251a   :  { %4729 = vsyncadd [#allocation3], 4294967040 }
0x251b   :  { %3781 = vsyncpa [#allocation3], 1 }

</bundles_post_ra>
